<compile_context>
chip_gen: v7x
topology: tpu7x:2x2x1
jax: 0.10.0
libtpu: 0.0.40
codegen_flags: <defaults>
</compile_context>

<pallas_src>
import functools

import jax
import jax.numpy as jnp
from jax import lax
from jax.experimental import pallas as pl
from jax.experimental.pallas import tpu as pltpu

# Module hyperparameters (from the PyTorch source)
N_EMBD = 384
N_HEAD = 6
HEAD_SIZE = N_EMBD // N_HEAD   # 64
BLOCK_SIZE = 256               # max context; we only need T <= BLOCK_SIZE
LN_EPS = 1e-5


def _layernorm(x, gamma, beta):
    mu = jnp.mean(x, axis=-1, keepdims=True)
    var = jnp.mean((x - mu) ** 2, axis=-1, keepdims=True)
    return (x - mu) * lax.rsqrt(var + LN_EPS) * gamma + beta


def block_kernel(mask_ref, x_ref,
                 ln1_g_ref, ln1_b_ref,
                 wqkv_ref, wproj_ref, bproj_ref,
                 ln2_g_ref, ln2_b_ref,
                 w1_ref, b1_ref, w2_ref, b2_ref,
                 out_ref,
                 sa_ref,
                 *, n_head, head_size):
    Bb, T, C = x_ref.shape
    R = Bb * T

    x = x_ref[...].reshape(R, C)                    # (R, C) f32
    mask = mask_ref[...]                            # (T, T) additive causal mask, f32

    # ---- ln1 + fused QKV projection ----
    h1 = _layernorm(x, ln1_g_ref[0], ln1_b_ref[0])  # f32
    h1b = h1.astype(jnp.bfloat16)                   # bf16 operand for all MXU calls

    # one (R, C) @ (C, 3C) matmul; head scale already folded into the q columns
    qkv = jnp.dot(h1b, wqkv_ref[...], preferred_element_type=jnp.float32)
    qkvb = qkv.astype(jnp.bfloat16)                 # (R, 3C)

    # ---- per-head causal attention (static unroll over 6 heads) ----
    for h in range(n_head):
        lo = h * head_size
        hi = lo + head_size
        qh = qkvb[:, lo:hi].reshape(Bb, T, head_size)
        kh = qkvb[:, C + lo:C + hi].reshape(Bb, T, head_size)
        vh = qkvb[:, 2 * C + lo:2 * C + hi].reshape(Bb, T, head_size)

        # contraction over head dim (no explicit kh.T / XLU relayout)
        wei = jnp.einsum('bqd,bkd->bqk', qh, kh,
                         preferred_element_type=jnp.float32)      # (Bb, T, T) f32
        wei = wei + mask                                          # stays f32
        wei = wei - jnp.max(wei, axis=-1, keepdims=True)
        p = jnp.exp(wei)
        p = p * pl.reciprocal(jnp.sum(p, axis=-1, keepdims=True), approx=True)
        oh = jnp.einsum('bqk,bkd->bqd', p.astype(jnp.bfloat16), vh,
                        preferred_element_type=jnp.float32)       # (Bb, T, hs)

        # stash this head's output into its column band of the (R, C) scratch
        sa_ref[:, lo:hi] = oh.reshape(R, head_size).astype(jnp.bfloat16)

    # ---- fused output projection: one (R, C) @ (C, C) matmul ----
    proj = jnp.dot(sa_ref[...], wproj_ref[...],
                   preferred_element_type=jnp.float32) + bproj_ref[0]
    x1 = x + proj                                   # residual 1 (f32)

    # ---- ln2 + feed-forward ----
    h2 = _layernorm(x1, ln2_g_ref[0], ln2_b_ref[0])
    ff = jnp.dot(h2.astype(jnp.bfloat16), w1_ref[...],
                 preferred_element_type=jnp.float32) + b1_ref[0]
    ff = jnp.maximum(ff, 0.0)                       # ReLU
    ff = jnp.dot(ff.astype(jnp.bfloat16), w2_ref[...],
                 preferred_element_type=jnp.float32) + b2_ref[0]

    out_ref[...] = (x1 + ff).reshape(Bb, T, C)      # residual 2


def _prep_kernel_params(p):
    """Reorder/scale/cast weights for the kernel (params dict itself stays f32)."""
    scale = float(HEAD_SIZE) ** -0.5
    wqkv = jnp.concatenate([p["wq"] * scale, p["wk"], p["wv"]], axis=1)  # (C, 3C)
    return dict(
        ln1_g=p["ln1_g"], ln1_b=p["ln1_b"],
        wqkv=wqkv.astype(jnp.bfloat16),              # scale folded into q columns
        wproj=p["wproj"].astype(jnp.bfloat16),       # (C, C)
        bproj=p["bproj"],
        ln2_g=p["ln2_g"], ln2_b=p["ln2_b"],
        w1=p["w1"].astype(jnp.bfloat16), b1=p["b1"],
        w2=p["w2"].astype(jnp.bfloat16), b2=p["b2"],
    )


def _tpu_vmem_capacity_bytes():
    """Best-effort physical VMEM capacity query; conservative fallback."""
    default = 64 * 1024 * 1024
    try:
        info = pltpu.get_tpu_info()
        return int(getattr(info, "vmem_capacity_bytes", default))
    except Exception:
        return default


def transformer_block(x, params):
    """x: (B, T, C) float32. params: dict of f32 weights (see init_params)."""
    B, T, C = x.shape
    assert C == N_EMBD and T <= BLOCK_SIZE
    kp = _prep_kernel_params(params)

    # Generation-conditional knobs: 128 MiB parts (v5e/v6e) -> 64 MiB scoped
    # limit and 512-row matmul target; 64 MiB parts (v7x) -> 32 MiB / 256 rows.
    vmem_cap = _tpu_vmem_capacity_bytes()
    vmem_limit = min(vmem_cap // 2, 64 * 1024 * 1024)
    target_rows = 512 if vmem_cap >= 128 * 1024 * 1024 else 256

    # Pad T to a multiple of 8 (sublane constraint). Padded rows are discarded;
    # the causal mask keeps real rows from ever attending to padded key columns.
    Tp = max(8, ((T + 7) // 8) * 8)
    if Tp != T:
        x = jnp.pad(x, ((0, 0), (0, Tp - T), (0, 0)))

    # Batch Bb sequences per grid step so matmuls see ~target_rows rows, but
    # keep grid >= 2 when possible (dual-TC v7x sharding + DMA overlap).
    target_bb = max(1, target_rows // Tp)
    if B >= 2:
        target_bb = min(target_bb, max(1, B // 2))
    Bb = 1
    for d in range(min(B, target_bb), 0, -1):
        if B % d == 0:
            Bb = d
            break
    grid = (B // Bb,)

    # Additive causal mask, built once and kept resident (same block each step).
    row = lax.broadcasted_iota(jnp.int32, (Tp, Tp), 0)
    col = lax.broadcasted_iota(jnp.int32, (Tp, Tp), 1)
    mask = jnp.where(row >= col, 0.0, -1e30).astype(jnp.float32)

    kernel = functools.partial(block_kernel, n_head=N_HEAD, head_size=HEAD_SIZE)

    def full(shape):
        return pl.BlockSpec(shape, lambda b, _s=shape: tuple(0 for _ in _s))

    in_specs = [
        full((Tp, Tp)),                                   # causal mask
        pl.BlockSpec((Bb, Tp, C), lambda b: (b, 0, 0)),   # x
        full((1, C)), full((1, C)),                       # ln1 gamma/beta
        full((C, 3 * C)),                                 # fused Wqkv (bf16)
        full((C, C)), full((1, C)),                       # proj W, b
        full((1, C)), full((1, C)),                       # ln2 gamma/beta
        full((C, 4 * C)), full((1, 4 * C)),               # ffwd W1, b1
        full((4 * C, C)), full((1, C)),                   # ffwd W2, b2
    ]

    # Advisory cost estimate so XLA schedules around the custom call.
    flops = 2 * B * Tp * (12 * C * C + 2 * Tp * C)
    transcendentals = B * N_HEAD * Tp * Tp
    weight_bytes = sum(int(v.size) * v.dtype.itemsize for v in kp.values())
    bytes_accessed = 2 * B * Tp * C * 4 + weight_bytes + Tp * Tp * 4

    out = pl.pallas_call(
        kernel,
        out_shape=jax.ShapeDtypeStruct((B, Tp, C), jnp.float32),
        grid_spec=pltpu.PrefetchScalarGridSpec(
            num_scalar_prefetch=0,
            grid=grid,
            in_specs=in_specs,
            out_specs=pl.BlockSpec((Bb, Tp, C), lambda b: (b, 0, 0)),
            scratch_shapes=[pltpu.VMEM((Bb * Tp, C), jnp.bfloat16)],  # sa buffer
        ),
        compiler_params=pltpu.CompilerParams(
            dimension_semantics=("parallel",),
            vmem_limit_bytes=vmem_limit,
        ),
        cost_estimate=pl.CostEstimate(
            flops=flops,
            transcendentals=transcendentals,
            bytes_accessed=bytes_accessed,
        ),
    )(mask, x,
      kp["ln1_g"], kp["ln1_b"],
      kp["wqkv"], kp["wproj"], kp["bproj"],
      kp["ln2_g"], kp["ln2_b"],
      kp["w1"], kp["b1"], kp["w2"], kp["b2"])

    return out[:, :T, :] if Tp != T else out


def init_params(key):
    """Deterministic synthetic weights. Linear weights are (in, out): y = x @ W + b."""
    ks = jax.random.split(key, 10)
    C = N_EMBD
    u = lambda k, shape, fan_in: jax.random.uniform(
        k, shape, jnp.float32, -1.0 / (fan_in ** 0.5), 1.0 / (fan_in ** 0.5))
    return {
        "ln1_g": jnp.ones((1, C), jnp.float32),
        "ln1_b": jnp.zeros((1, C), jnp.float32),
        # q/k/v: per-head (C, head_size) projections concatenated along out dim
        "wq": u(ks[0], (C, C), C),
        "wk": u(ks[1], (C, C), C),
        "wv": u(ks[2], (C, C), C),
        "wproj": u(ks[3], (C, C), C),
        "bproj": u(ks[4], (1, C), C),
        "ln2_g": jnp.ones((1, C), jnp.float32),
        "ln2_b": jnp.zeros((1, C), jnp.float32),
        "w1": u(ks[5], (C, 4 * C), C),
        "b1": u(ks[6], (1, 4 * C), C),
        "w2": u(ks[7], (4 * C, C), 4 * C),
        "b2": u(ks[8], (1, C), 4 * C),
    }


def reference_block(x, p):
    """Pure-JAX f32 reference matching the PyTorch forward (eval mode)."""
    def ln(v, g, b):
        mu = jnp.mean(v, axis=-1, keepdims=True)
        var = jnp.mean((v - mu) ** 2, axis=-1, keepdims=True)
        return (v - mu) / jnp.sqrt(var + LN_EPS) * g[0] + b[0]

    B, T, C = x.shape
    h1 = ln(x, p["ln1_g"], p["ln1_b"])
    q = h1 @ p["wq"]; k = h1 @ p["wk"]; v = h1 @ p["wv"]
    qh = q.reshape(B, T, N_HEAD, HEAD_SIZE).transpose(0, 2, 1, 3)
    kh = k.reshape(B, T, N_HEAD, HEAD_SIZE).transpose(0, 2, 1, 3)
    vh = v.reshape(B, T, N_HEAD, HEAD_SIZE).transpose(0, 2, 1, 3)
    wei = jnp.einsum("bhqd,bhkd->bhqk", qh, kh) * HEAD_SIZE ** -0.5
    mask = jnp.tril(jnp.ones((T, T), bool))
    wei = jnp.where(mask, wei, -jnp.inf)
    wei = jax.nn.softmax(wei, axis=-1)
    o = jnp.einsum("bhqk,bhkd->bhqd", wei, vh).transpose(0, 2, 1, 3).reshape(B, T, C)
    x1 = x + (o @ p["wproj"] + p["bproj"][0])
    h2 = ln(x1, p["ln2_g"], p["ln2_b"])
    ff = jnp.maximum(h2 @ p["w1"] + p["b1"][0], 0.0) @ p["w2"] + p["b2"][0]
    return x1 + ff


if __name__ == "__main__":
    key = jax.random.PRNGKey(0)
    k_x, k_p = jax.random.split(key)

    B, T = 2, 16
    x = jax.random.normal(k_x, (B, T, N_EMBD), jnp.float32)
    params = init_params(k_p)

    out = transformer_block(x, params)
    out = jax.block_until_ready(out)

    ref = reference_block(x, params)
    assert out.shape == (B, T, N_EMBD)
    max_err = float(jnp.max(jnp.abs(out - ref)))
    # Kernel uses bf16 MXU operands with f32 accumulation and an approximate
    # softmax reciprocal -> looser tolerance than a pure-f32 comparison.
    assert jnp.allclose(out, ref, atol=7e-2, rtol=2e-2), max_err

    print("KERNEL_OK")
</pallas_src>

<mosaic_0001>
module attributes {stable_mosaic.version = 11 : i64} {
  func.func @block_kernel(%arg0: i32, %arg1: memref<16x16xf32, #tpu.memory_space<vmem>>, %arg2: memref<1x16x384xf32, #tpu.memory_space<vmem>>, %arg3: memref<1x384xf32, #tpu.memory_space<vmem>>, %arg4: memref<1x384xf32, #tpu.memory_space<vmem>>, %arg5: memref<384x1152xbf16, #tpu.memory_space<vmem>>, %arg6: memref<384x384xbf16, #tpu.memory_space<vmem>>, %arg7: memref<1x384xf32, #tpu.memory_space<vmem>>, %arg8: memref<1x384xf32, #tpu.memory_space<vmem>>, %arg9: memref<1x384xf32, #tpu.memory_space<vmem>>, %arg10: memref<384x1536xbf16, #tpu.memory_space<vmem>>, %arg11: memref<1x1536xf32, #tpu.memory_space<vmem>>, %arg12: memref<1536x384xbf16, #tpu.memory_space<vmem>>, %arg13: memref<1x384xf32, #tpu.memory_space<vmem>>, %arg14: memref<1x16x384xf32, #tpu.memory_space<vmem>>, %arg15: memref<16x384xbf16, #tpu.memory_space<vmem>>) attributes {dimension_semantics = [#tpu.dimension_semantics<parallel>], iteration_bounds = array<i64: 2>, scalar_prefetch = 0 : i64, scratch_operands = 1 : i64, tpu.core_type = #tpu.core_type<tc>, window_params = [{pipeline_mode = #tpu.pipeline_mode<synchronous>, transform_indices = @transform_0, window_bounds = array<i64: 16, 16>}, {transform_indices = @transform_1, window_bounds = array<i64: 1, 16, 384>}, {pipeline_mode = #tpu.pipeline_mode<synchronous>, transform_indices = @transform_2, window_bounds = array<i64: 1, 384>}, {pipeline_mode = #tpu.pipeline_mode<synchronous>, transform_indices = @transform_3, window_bounds = array<i64: 1, 384>}, {pipeline_mode = #tpu.pipeline_mode<synchronous>, transform_indices = @transform_4, window_bounds = array<i64: 384, 1152>}, {pipeline_mode = #tpu.pipeline_mode<synchronous>, transform_indices = @transform_5, window_bounds = array<i64: 384, 384>}, {pipeline_mode = #tpu.pipeline_mode<synchronous>, transform_indices = @transform_6, window_bounds = array<i64: 1, 384>}, {pipeline_mode = #tpu.pipeline_mode<synchronous>, transform_indices = @transform_7, window_bounds = array<i64: 1, 384>}, {pipeline_mode = #tpu.pipeline_mode<synchronous>, transform_indices = @transform_8, window_bounds = array<i64: 1, 384>}, {pipeline_mode = #tpu.pipeline_mode<synchronous>, transform_indices = @transform_9, window_bounds = array<i64: 384, 1536>}, {pipeline_mode = #tpu.pipeline_mode<synchronous>, transform_indices = @transform_10, window_bounds = array<i64: 1, 1536>}, {pipeline_mode = #tpu.pipeline_mode<synchronous>, transform_indices = @transform_11, window_bounds = array<i64: 1536, 384>}, {pipeline_mode = #tpu.pipeline_mode<synchronous>, transform_indices = @transform_12, window_bounds = array<i64: 1, 384>}, {transform_indices = @transform_13, window_bounds = array<i64: 1, 16, 384>}]} {
    %c0 = arith.constant 0 : index
    %c0_0 = arith.constant 0 : index
    %c0_1 = arith.constant 0 : index
    %0 = vector.load %arg2[%c0, %c0_0, %c0_1] : memref<1x16x384xf32, #tpu.memory_space<vmem>>, vector<1x16x384xf32>
    %1 = vector.shape_cast %0 : vector<1x16x384xf32> to vector<16x384xf32>
    %c0_2 = arith.constant 0 : index
    %c0_3 = arith.constant 0 : index
    %2 = vector.load %arg1[%c0_2, %c0_3] : memref<16x16xf32, #tpu.memory_space<vmem>>, vector<16x16xf32>
    %c0_4 = arith.constant 0 : index
    %c0_5 = arith.constant 0 : index
    %3 = vector.load %arg3[%c0_4, %c0_5] : memref<1x384xf32, #tpu.memory_space<vmem>>, vector<1x384xf32>
    %4 = vector.shape_cast %3 : vector<1x384xf32> to vector<384xf32>
    %c0_6 = arith.constant 0 : index
    %c0_7 = arith.constant 0 : index
    %5 = vector.load %arg4[%c0_6, %c0_7] : memref<1x384xf32, #tpu.memory_space<vmem>>, vector<1x384xf32>
    %6 = vector.shape_cast %5 : vector<1x384xf32> to vector<384xf32>
    %cst = arith.constant dense<0.000000e+00> : vector<16xf32>
    %7 = vector.multi_reduction <add>, %1, %cst [1] : vector<16x384xf32> to vector<16xf32>
    %8 = vector.shape_cast %7 : vector<16xf32> to vector<16x1xf32>
    %cst_8 = arith.constant 3.840000e+02 : f32
    %9 = vector.broadcast %cst_8 : f32 to vector<16x1xf32>
    %10 = arith.divf %8, %9 : vector<16x1xf32>
    %11 = vector.broadcast %10 : vector<16x1xf32> to vector<16x384xf32>
    %12 = arith.subf %1, %11 : vector<16x384xf32>
    %13 = arith.mulf %12, %12 : vector<16x384xf32>
    %cst_9 = arith.constant dense<0.000000e+00> : vector<16xf32>
    %14 = vector.multi_reduction <add>, %13, %cst_9 [1] : vector<16x384xf32> to vector<16xf32>
    %15 = vector.shape_cast %14 : vector<16xf32> to vector<16x1xf32>
    %cst_10 = arith.constant 3.840000e+02 : f32
    %16 = vector.broadcast %cst_10 : f32 to vector<16x1xf32>
    %17 = arith.divf %15, %16 : vector<16x1xf32>
    %18 = vector.broadcast %10 : vector<16x1xf32> to vector<16x384xf32>
    %19 = arith.subf %1, %18 : vector<16x384xf32>
    %cst_11 = arith.constant 9.99999974E-6 : f32
    %20 = vector.broadcast %cst_11 : f32 to vector<16x1xf32>
    %21 = arith.addf %17, %20 : vector<16x1xf32>
    %22 = math.rsqrt %21 : vector<16x1xf32>
    %23 = vector.broadcast %22 : vector<16x1xf32> to vector<16x384xf32>
    %24 = arith.mulf %19, %23 : vector<16x384xf32>
    %25 = vector.shape_cast %4 : vector<384xf32> to vector<1x384xf32>
    %26 = vector.broadcast %25 : vector<1x384xf32> to vector<16x384xf32>
    %27 = arith.mulf %24, %26 : vector<16x384xf32>
    %28 = vector.shape_cast %6 : vector<384xf32> to vector<1x384xf32>
    %29 = vector.broadcast %28 : vector<1x384xf32> to vector<16x384xf32>
    %30 = arith.addf %27, %29 : vector<16x384xf32>
    %31 = arith.truncf %30 : vector<16x384xf32> to vector<16x384xbf16>
    %c0_12 = arith.constant 0 : index
    %c0_13 = arith.constant 0 : index
    %32 = vector.load %arg5[%c0_12, %c0_13] : memref<384x1152xbf16, #tpu.memory_space<vmem>>, vector<384x1152xbf16>
    %cst_14 = arith.constant dense<0.000000e+00> : vector<16x1152xf32>
    %33 = tpu.matmul %31, %32, %cst_14 {dimension_numbers = #tpu.dot_dimension_numbers<[1], [0], [0], [1], [0, 0, 1, 1], [], []>} : vector<16x384xbf16>, vector<384x1152xbf16>, vector<16x1152xf32> -> vector<16x1152xf32>
    %34 = arith.truncf %33 : vector<16x1152xf32> to vector<16x1152xbf16>
    %35 = vector.extract_strided_slice %34 {offsets = [0, 0], sizes = [16, 64], strides = [1, 1]} : vector<16x1152xbf16> to vector<16x64xbf16>
    %36 = vector.shape_cast %35 : vector<16x64xbf16> to vector<1x16x64xbf16>
    %37 = vector.extract_strided_slice %34 {offsets = [0, 384], sizes = [16, 64], strides = [1, 1]} : vector<16x1152xbf16> to vector<16x64xbf16>
    %38 = vector.shape_cast %37 : vector<16x64xbf16> to vector<1x16x64xbf16>
    %39 = vector.extract_strided_slice %34 {offsets = [0, 768], sizes = [16, 64], strides = [1, 1]} : vector<16x1152xbf16> to vector<16x64xbf16>
    %40 = vector.shape_cast %39 : vector<16x64xbf16> to vector<1x16x64xbf16>
    "tpu.trace_start"() <{level = 10 : i32, message = "bqd,bkd->bqk"}> : () -> ()
    %cst_15 = arith.constant dense<0.000000e+00> : vector<1x16x16xf32>
    %41 = tpu.matmul %36, %38, %cst_15 {dimension_numbers = #tpu.dot_dimension_numbers<[2], [2], [1], [1], [0, 0, 0, 1, 1, 1], [0], [0]>} : vector<1x16x64xbf16>, vector<1x16x64xbf16>, vector<1x16x16xf32> -> vector<1x16x16xf32>
    "tpu.trace_stop"() : () -> ()
    %42 = vector.shape_cast %2 : vector<16x16xf32> to vector<1x16x16xf32>
    %43 = arith.addf %41, %42 : vector<1x16x16xf32>
    %cst_16 = arith.constant dense<0xFF800000> : vector<1x16xf32>
    %44 = vector.multi_reduction <maximumf>, %43, %cst_16 [2] : vector<1x16x16xf32> to vector<1x16xf32>
    %45 = vector.shape_cast %44 : vector<1x16xf32> to vector<1x16x1xf32>
    %46 = vector.broadcast %45 : vector<1x16x1xf32> to vector<1x16x16xf32>
    %47 = arith.subf %43, %46 : vector<1x16x16xf32>
    %48 = math.exp %47 : vector<1x16x16xf32>
    %cst_17 = arith.constant dense<0.000000e+00> : vector<1x16xf32>
    %49 = vector.multi_reduction <add>, %48, %cst_17 [2] : vector<1x16x16xf32> to vector<1x16xf32>
    %50 = vector.shape_cast %49 : vector<1x16xf32> to vector<1x16x1xf32>
    %51 = tpu.reciprocal %50 {approx = true} : vector<1x16x1xf32> -> vector<1x16x1xf32>
    %52 = vector.broadcast %51 : vector<1x16x1xf32> to vector<1x16x16xf32>
    %53 = arith.mulf %48, %52 : vector<1x16x16xf32>
    %54 = arith.truncf %53 : vector<1x16x16xf32> to vector<1x16x16xbf16>
    "tpu.trace_start"() <{level = 10 : i32, message = "bqk,bkd->bqd"}> : () -> ()
    %cst_18 = arith.constant dense<0.000000e+00> : vector<1x16x64xf32>
    %55 = tpu.matmul %54, %40, %cst_18 {dimension_numbers = #tpu.dot_dimension_numbers<[2], [1], [1], [2], [0, 0, 0, 1, 1, 2], [0], [0]>} : vector<1x16x16xbf16>, vector<1x16x64xbf16>, vector<1x16x64xf32> -> vector<1x16x64xf32>
    "tpu.trace_stop"() : () -> ()
    %56 = vector.shape_cast %55 : vector<1x16x64xf32> to vector<16x64xf32>
    %57 = arith.truncf %56 : vector<16x64xf32> to vector<16x64xbf16>
    %c0_19 = arith.constant 0 : index
    %c0_20 = arith.constant 0 : index
    %58 = vector.load %arg15[%c0_19, %c0_20] : memref<16x384xbf16, #tpu.memory_space<vmem>>, vector<16x64xbf16>
    tpu.vector_store %arg15[%c0_19, %c0_20], %57 {strides = array<i32>} : memref<16x384xbf16, #tpu.memory_space<vmem>>, vector<16x64xbf16>,
    %59 = vector.extract_strided_slice %34 {offsets = [0, 64], sizes = [16, 64], strides = [1, 1]} : vector<16x1152xbf16> to vector<16x64xbf16>
    %60 = vector.shape_cast %59 : vector<16x64xbf16> to vector<1x16x64xbf16>
    %61 = vector.extract_strided_slice %34 {offsets = [0, 448], sizes = [16, 64], strides = [1, 1]} : vector<16x1152xbf16> to vector<16x64xbf16>
    %62 = vector.shape_cast %61 : vector<16x64xbf16> to vector<1x16x64xbf16>
    %63 = vector.extract_strided_slice %34 {offsets = [0, 832], sizes = [16, 64], strides = [1, 1]} : vector<16x1152xbf16> to vector<16x64xbf16>
    %64 = vector.shape_cast %63 : vector<16x64xbf16> to vector<1x16x64xbf16>
    "tpu.trace_start"() <{level = 10 : i32, message = "bqd,bkd->bqk"}> : () -> ()
    %cst_21 = arith.constant dense<0.000000e+00> : vector<1x16x16xf32>
    %65 = tpu.matmul %60, %62, %cst_21 {dimension_numbers = #tpu.dot_dimension_numbers<[2], [2], [1], [1], [0, 0, 0, 1, 1, 1], [0], [0]>} : vector<1x16x64xbf16>, vector<1x16x64xbf16>, vector<1x16x16xf32> -> vector<1x16x16xf32>
    "tpu.trace_stop"() : () -> ()
    %66 = vector.shape_cast %2 : vector<16x16xf32> to vector<1x16x16xf32>
    %67 = arith.addf %65, %66 : vector<1x16x16xf32>
    %cst_22 = arith.constant dense<0xFF800000> : vector<1x16xf32>
    %68 = vector.multi_reduction <maximumf>, %67, %cst_22 [2] : vector<1x16x16xf32> to vector<1x16xf32>
    %69 = vector.shape_cast %68 : vector<1x16xf32> to vector<1x16x1xf32>
    %70 = vector.broadcast %69 : vector<1x16x1xf32> to vector<1x16x16xf32>
    %71 = arith.subf %67, %70 : vector<1x16x16xf32>
    %72 = math.exp %71 : vector<1x16x16xf32>
    %cst_23 = arith.constant dense<0.000000e+00> : vector<1x16xf32>
    %73 = vector.multi_reduction <add>, %72, %cst_23 [2] : vector<1x16x16xf32> to vector<1x16xf32>
    %74 = vector.shape_cast %73 : vector<1x16xf32> to vector<1x16x1xf32>
    %75 = tpu.reciprocal %74 {approx = true} : vector<1x16x1xf32> -> vector<1x16x1xf32>
    %76 = vector.broadcast %75 : vector<1x16x1xf32> to vector<1x16x16xf32>
    %77 = arith.mulf %72, %76 : vector<1x16x16xf32>
    %78 = arith.truncf %77 : vector<1x16x16xf32> to vector<1x16x16xbf16>
    "tpu.trace_start"() <{level = 10 : i32, message = "bqk,bkd->bqd"}> : () -> ()
    %cst_24 = arith.constant dense<0.000000e+00> : vector<1x16x64xf32>
    %79 = tpu.matmul %78, %64, %cst_24 {dimension_numbers = #tpu.dot_dimension_numbers<[2], [1], [1], [2], [0, 0, 0, 1, 1, 2], [0], [0]>} : vector<1x16x16xbf16>, vector<1x16x64xbf16>, vector<1x16x64xf32> -> vector<1x16x64xf32>
    "tpu.trace_stop"() : () -> ()
    %80 = vector.shape_cast %79 : vector<1x16x64xf32> to vector<16x64xf32>
    %81 = arith.truncf %80 : vector<16x64xf32> to vector<16x64xbf16>
    %c0_25 = arith.constant 0 : index
    %c64 = arith.constant 64 : index
    %82 = vector.load %arg15[%c0_25, %c64] : memref<16x384xbf16, #tpu.memory_space<vmem>>, vector<16x64xbf16>
    tpu.vector_store %arg15[%c0_25, %c64], %81 {strides = array<i32>} : memref<16x384xbf16, #tpu.memory_space<vmem>>, vector<16x64xbf16>,
    %83 = vector.extract_strided_slice %34 {offsets = [0, 128], sizes = [16, 64], strides = [1, 1]} : vector<16x1152xbf16> to vector<16x64xbf16>
    %84 = vector.shape_cast %83 : vector<16x64xbf16> to vector<1x16x64xbf16>
    %85 = vector.extract_strided_slice %34 {offsets = [0, 512], sizes = [16, 64], strides = [1, 1]} : vector<16x1152xbf16> to vector<16x64xbf16>
    %86 = vector.shape_cast %85 : vector<16x64xbf16> to vector<1x16x64xbf16>
    %87 = vector.extract_strided_slice %34 {offsets = [0, 896], sizes = [16, 64], strides = [1, 1]} : vector<16x1152xbf16> to vector<16x64xbf16>
    %88 = vector.shape_cast %87 : vector<16x64xbf16> to vector<1x16x64xbf16>
    "tpu.trace_start"() <{level = 10 : i32, message = "bqd,bkd->bqk"}> : () -> ()
    %cst_26 = arith.constant dense<0.000000e+00> : vector<1x16x16xf32>
    %89 = tpu.matmul %84, %86, %cst_26 {dimension_numbers = #tpu.dot_dimension_numbers<[2], [2], [1], [1], [0, 0, 0, 1, 1, 1], [0], [0]>} : vector<1x16x64xbf16>, vector<1x16x64xbf16>, vector<1x16x16xf32> -> vector<1x16x16xf32>
    "tpu.trace_stop"() : () -> ()
    %90 = vector.shape_cast %2 : vector<16x16xf32> to vector<1x16x16xf32>
    %91 = arith.addf %89, %90 : vector<1x16x16xf32>
    %cst_27 = arith.constant dense<0xFF800000> : vector<1x16xf32>
    %92 = vector.multi_reduction <maximumf>, %91, %cst_27 [2] : vector<1x16x16xf32> to vector<1x16xf32>
    %93 = vector.shape_cast %92 : vector<1x16xf32> to vector<1x16x1xf32>
    %94 = vector.broadcast %93 : vector<1x16x1xf32> to vector<1x16x16xf32>
    %95 = arith.subf %91, %94 : vector<1x16x16xf32>
    %96 = math.exp %95 : vector<1x16x16xf32>
    %cst_28 = arith.constant dense<0.000000e+00> : vector<1x16xf32>
    %97 = vector.multi_reduction <add>, %96, %cst_28 [2] : vector<1x16x16xf32> to vector<1x16xf32>
    %98 = vector.shape_cast %97 : vector<1x16xf32> to vector<1x16x1xf32>
    %99 = tpu.reciprocal %98 {approx = true} : vector<1x16x1xf32> -> vector<1x16x1xf32>
    %100 = vector.broadcast %99 : vector<1x16x1xf32> to vector<1x16x16xf32>
    %101 = arith.mulf %96, %100 : vector<1x16x16xf32>
    %102 = arith.truncf %101 : vector<1x16x16xf32> to vector<1x16x16xbf16>
    "tpu.trace_start"() <{level = 10 : i32, message = "bqk,bkd->bqd"}> : () -> ()
    %cst_29 = arith.constant dense<0.000000e+00> : vector<1x16x64xf32>
    %103 = tpu.matmul %102, %88, %cst_29 {dimension_numbers = #tpu.dot_dimension_numbers<[2], [1], [1], [2], [0, 0, 0, 1, 1, 2], [0], [0]>} : vector<1x16x16xbf16>, vector<1x16x64xbf16>, vector<1x16x64xf32> -> vector<1x16x64xf32>
    "tpu.trace_stop"() : () -> ()
    %104 = vector.shape_cast %103 : vector<1x16x64xf32> to vector<16x64xf32>
    %105 = arith.truncf %104 : vector<16x64xf32> to vector<16x64xbf16>
    %c0_30 = arith.constant 0 : index
    %c128 = arith.constant 128 : index
    %106 = vector.load %arg15[%c0_30, %c128] : memref<16x384xbf16, #tpu.memory_space<vmem>>, vector<16x64xbf16>
    tpu.vector_store %arg15[%c0_30, %c128], %105 {strides = array<i32>} : memref<16x384xbf16, #tpu.memory_space<vmem>>, vector<16x64xbf16>,
    %107 = vector.extract_strided_slice %34 {offsets = [0, 192], sizes = [16, 64], strides = [1, 1]} : vector<16x1152xbf16> to vector<16x64xbf16>
    %108 = vector.shape_cast %107 : vector<16x64xbf16> to vector<1x16x64xbf16>
    %109 = vector.extract_strided_slice %34 {offsets = [0, 576], sizes = [16, 64], strides = [1, 1]} : vector<16x1152xbf16> to vector<16x64xbf16>
    %110 = vector.shape_cast %109 : vector<16x64xbf16> to vector<1x16x64xbf16>
    %111 = vector.extract_strided_slice %34 {offsets = [0, 960], sizes = [16, 64], strides = [1, 1]} : vector<16x1152xbf16> to vector<16x64xbf16>
    %112 = vector.shape_cast %111 : vector<16x64xbf16> to vector<1x16x64xbf16>
    "tpu.trace_start"() <{level = 10 : i32, message = "bqd,bkd->bqk"}> : () -> ()
    %cst_31 = arith.constant dense<0.000000e+00> : vector<1x16x16xf32>
    %113 = tpu.matmul %108, %110, %cst_31 {dimension_numbers = #tpu.dot_dimension_numbers<[2], [2], [1], [1], [0, 0, 0, 1, 1, 1], [0], [0]>} : vector<1x16x64xbf16>, vector<1x16x64xbf16>, vector<1x16x16xf32> -> vector<1x16x16xf32>
    "tpu.trace_stop"() : () -> ()
    %114 = vector.shape_cast %2 : vector<16x16xf32> to vector<1x16x16xf32>
    %115 = arith.addf %113, %114 : vector<1x16x16xf32>
    %cst_32 = arith.constant dense<0xFF800000> : vector<1x16xf32>
    %116 = vector.multi_reduction <maximumf>, %115, %cst_32 [2] : vector<1x16x16xf32> to vector<1x16xf32>
    %117 = vector.shape_cast %116 : vector<1x16xf32> to vector<1x16x1xf32>
    %118 = vector.broadcast %117 : vector<1x16x1xf32> to vector<1x16x16xf32>
    %119 = arith.subf %115, %118 : vector<1x16x16xf32>
    %120 = math.exp %119 : vector<1x16x16xf32>
    %cst_33 = arith.constant dense<0.000000e+00> : vector<1x16xf32>
    %121 = vector.multi_reduction <add>, %120, %cst_33 [2] : vector<1x16x16xf32> to vector<1x16xf32>
    %122 = vector.shape_cast %121 : vector<1x16xf32> to vector<1x16x1xf32>
    %123 = tpu.reciprocal %122 {approx = true} : vector<1x16x1xf32> -> vector<1x16x1xf32>
    %124 = vector.broadcast %123 : vector<1x16x1xf32> to vector<1x16x16xf32>
    %125 = arith.mulf %120, %124 : vector<1x16x16xf32>
    %126 = arith.truncf %125 : vector<1x16x16xf32> to vector<1x16x16xbf16>
    "tpu.trace_start"() <{level = 10 : i32, message = "bqk,bkd->bqd"}> : () -> ()
    %cst_34 = arith.constant dense<0.000000e+00> : vector<1x16x64xf32>
    %127 = tpu.matmul %126, %112, %cst_34 {dimension_numbers = #tpu.dot_dimension_numbers<[2], [1], [1], [2], [0, 0, 0, 1, 1, 2], [0], [0]>} : vector<1x16x16xbf16>, vector<1x16x64xbf16>, vector<1x16x64xf32> -> vector<1x16x64xf32>
    "tpu.trace_stop"() : () -> ()
    %128 = vector.shape_cast %127 : vector<1x16x64xf32> to vector<16x64xf32>
    %129 = arith.truncf %128 : vector<16x64xf32> to vector<16x64xbf16>
    %c0_35 = arith.constant 0 : index
    %c192 = arith.constant 192 : index
    %130 = vector.load %arg15[%c0_35, %c192] : memref<16x384xbf16, #tpu.memory_space<vmem>>, vector<16x64xbf16>
    tpu.vector_store %arg15[%c0_35, %c192], %129 {strides = array<i32>} : memref<16x384xbf16, #tpu.memory_space<vmem>>, vector<16x64xbf16>,
    %131 = vector.extract_strided_slice %34 {offsets = [0, 256], sizes = [16, 64], strides = [1, 1]} : vector<16x1152xbf16> to vector<16x64xbf16>
    %132 = vector.shape_cast %131 : vector<16x64xbf16> to vector<1x16x64xbf16>
    %133 = vector.extract_strided_slice %34 {offsets = [0, 640], sizes = [16, 64], strides = [1, 1]} : vector<16x1152xbf16> to vector<16x64xbf16>
    %134 = vector.shape_cast %133 : vector<16x64xbf16> to vector<1x16x64xbf16>
    %135 = vector.extract_strided_slice %34 {offsets = [0, 1024], sizes = [16, 64], strides = [1, 1]} : vector<16x1152xbf16> to vector<16x64xbf16>
    %136 = vector.shape_cast %135 : vector<16x64xbf16> to vector<1x16x64xbf16>
    "tpu.trace_start"() <{level = 10 : i32, message = "bqd,bkd->bqk"}> : () -> ()
    %cst_36 = arith.constant dense<0.000000e+00> : vector<1x16x16xf32>
    %137 = tpu.matmul %132, %134, %cst_36 {dimension_numbers = #tpu.dot_dimension_numbers<[2], [2], [1], [1], [0, 0, 0, 1, 1, 1], [0], [0]>} : vector<1x16x64xbf16>, vector<1x16x64xbf16>, vector<1x16x16xf32> -> vector<1x16x16xf32>
    "tpu.trace_stop"() : () -> ()
    %138 = vector.shape_cast %2 : vector<16x16xf32> to vector<1x16x16xf32>
    %139 = arith.addf %137, %138 : vector<1x16x16xf32>
    %cst_37 = arith.constant dense<0xFF800000> : vector<1x16xf32>
    %140 = vector.multi_reduction <maximumf>, %139, %cst_37 [2] : vector<1x16x16xf32> to vector<1x16xf32>
    %141 = vector.shape_cast %140 : vector<1x16xf32> to vector<1x16x1xf32>
    %142 = vector.broadcast %141 : vector<1x16x1xf32> to vector<1x16x16xf32>
    %143 = arith.subf %139, %142 : vector<1x16x16xf32>
    %144 = math.exp %143 : vector<1x16x16xf32>
    %cst_38 = arith.constant dense<0.000000e+00> : vector<1x16xf32>
    %145 = vector.multi_reduction <add>, %144, %cst_38 [2] : vector<1x16x16xf32> to vector<1x16xf32>
    %146 = vector.shape_cast %145 : vector<1x16xf32> to vector<1x16x1xf32>
    %147 = tpu.reciprocal %146 {approx = true} : vector<1x16x1xf32> -> vector<1x16x1xf32>
    %148 = vector.broadcast %147 : vector<1x16x1xf32> to vector<1x16x16xf32>
    %149 = arith.mulf %144, %148 : vector<1x16x16xf32>
    %150 = arith.truncf %149 : vector<1x16x16xf32> to vector<1x16x16xbf16>
    "tpu.trace_start"() <{level = 10 : i32, message = "bqk,bkd->bqd"}> : () -> ()
    %cst_39 = arith.constant dense<0.000000e+00> : vector<1x16x64xf32>
    %151 = tpu.matmul %150, %136, %cst_39 {dimension_numbers = #tpu.dot_dimension_numbers<[2], [1], [1], [2], [0, 0, 0, 1, 1, 2], [0], [0]>} : vector<1x16x16xbf16>, vector<1x16x64xbf16>, vector<1x16x64xf32> -> vector<1x16x64xf32>
    "tpu.trace_stop"() : () -> ()
    %152 = vector.shape_cast %151 : vector<1x16x64xf32> to vector<16x64xf32>
    %153 = arith.truncf %152 : vector<16x64xf32> to vector<16x64xbf16>
    %c0_40 = arith.constant 0 : index
    %c256 = arith.constant 256 : index
    %154 = vector.load %arg15[%c0_40, %c256] : memref<16x384xbf16, #tpu.memory_space<vmem>>, vector<16x64xbf16>
    tpu.vector_store %arg15[%c0_40, %c256], %153 {strides = array<i32>} : memref<16x384xbf16, #tpu.memory_space<vmem>>, vector<16x64xbf16>,
    %155 = vector.extract_strided_slice %34 {offsets = [0, 320], sizes = [16, 64], strides = [1, 1]} : vector<16x1152xbf16> to vector<16x64xbf16>
    %156 = vector.shape_cast %155 : vector<16x64xbf16> to vector<1x16x64xbf16>
    %157 = vector.extract_strided_slice %34 {offsets = [0, 704], sizes = [16, 64], strides = [1, 1]} : vector<16x1152xbf16> to vector<16x64xbf16>
    %158 = vector.shape_cast %157 : vector<16x64xbf16> to vector<1x16x64xbf16>
    %159 = vector.extract_strided_slice %34 {offsets = [0, 1088], sizes = [16, 64], strides = [1, 1]} : vector<16x1152xbf16> to vector<16x64xbf16>
    %160 = vector.shape_cast %159 : vector<16x64xbf16> to vector<1x16x64xbf16>
    "tpu.trace_start"() <{level = 10 : i32, message = "bqd,bkd->bqk"}> : () -> ()
    %cst_41 = arith.constant dense<0.000000e+00> : vector<1x16x16xf32>
    %161 = tpu.matmul %156, %158, %cst_41 {dimension_numbers = #tpu.dot_dimension_numbers<[2], [2], [1], [1], [0, 0, 0, 1, 1, 1], [0], [0]>} : vector<1x16x64xbf16>, vector<1x16x64xbf16>, vector<1x16x16xf32> -> vector<1x16x16xf32>
    "tpu.trace_stop"() : () -> ()
    %162 = vector.shape_cast %2 : vector<16x16xf32> to vector<1x16x16xf32>
    %163 = arith.addf %161, %162 : vector<1x16x16xf32>
    %cst_42 = arith.constant dense<0xFF800000> : vector<1x16xf32>
    %164 = vector.multi_reduction <maximumf>, %163, %cst_42 [2] : vector<1x16x16xf32> to vector<1x16xf32>
    %165 = vector.shape_cast %164 : vector<1x16xf32> to vector<1x16x1xf32>
    %166 = vector.broadcast %165 : vector<1x16x1xf32> to vector<1x16x16xf32>
    %167 = arith.subf %163, %166 : vector<1x16x16xf32>
    %168 = math.exp %167 : vector<1x16x16xf32>
    %cst_43 = arith.constant dense<0.000000e+00> : vector<1x16xf32>
    %169 = vector.multi_reduction <add>, %168, %cst_43 [2] : vector<1x16x16xf32> to vector<1x16xf32>
    %170 = vector.shape_cast %169 : vector<1x16xf32> to vector<1x16x1xf32>
    %171 = tpu.reciprocal %170 {approx = true} : vector<1x16x1xf32> -> vector<1x16x1xf32>
    %172 = vector.broadcast %171 : vector<1x16x1xf32> to vector<1x16x16xf32>
    %173 = arith.mulf %168, %172 : vector<1x16x16xf32>
    %174 = arith.truncf %173 : vector<1x16x16xf32> to vector<1x16x16xbf16>
    "tpu.trace_start"() <{level = 10 : i32, message = "bqk,bkd->bqd"}> : () -> ()
    %cst_44 = arith.constant dense<0.000000e+00> : vector<1x16x64xf32>
    %175 = tpu.matmul %174, %160, %cst_44 {dimension_numbers = #tpu.dot_dimension_numbers<[2], [1], [1], [2], [0, 0, 0, 1, 1, 2], [0], [0]>} : vector<1x16x16xbf16>, vector<1x16x64xbf16>, vector<1x16x64xf32> -> vector<1x16x64xf32>
    "tpu.trace_stop"() : () -> ()
    %176 = vector.shape_cast %175 : vector<1x16x64xf32> to vector<16x64xf32>
    %177 = arith.truncf %176 : vector<16x64xf32> to vector<16x64xbf16>
    %c0_45 = arith.constant 0 : index
    %c320 = arith.constant 320 : index
    %178 = vector.load %arg15[%c0_45, %c320] : memref<16x384xbf16, #tpu.memory_space<vmem>>, vector<16x64xbf16>
    tpu.vector_store %arg15[%c0_45, %c320], %177 {strides = array<i32>} : memref<16x384xbf16, #tpu.memory_space<vmem>>, vector<16x64xbf16>,
    %c0_46 = arith.constant 0 : index
    %c0_47 = arith.constant 0 : index
    %179 = vector.load %arg15[%c0_46, %c0_47] : memref<16x384xbf16, #tpu.memory_space<vmem>>, vector<16x384xbf16>
    %c0_48 = arith.constant 0 : index
    %c0_49 = arith.constant 0 : index
    %180 = vector.load %arg6[%c0_48, %c0_49] : memref<384x384xbf16, #tpu.memory_space<vmem>>, vector<384x384xbf16>
    %cst_50 = arith.constant dense<0.000000e+00> : vector<16x384xf32>
    %181 = tpu.matmul %179, %180, %cst_50 {dimension_numbers = #tpu.dot_dimension_numbers<[1], [0], [0], [1], [0, 0, 1, 1], [], []>} : vector<16x384xbf16>, vector<384x384xbf16>, vector<16x384xf32> -> vector<16x384xf32>
    %c0_51 = arith.constant 0 : index
    %c0_52 = arith.constant 0 : index
    %182 = vector.load %arg7[%c0_51, %c0_52] : memref<1x384xf32, #tpu.memory_space<vmem>>, vector<1x384xf32>
    %183 = vector.shape_cast %182 : vector<1x384xf32> to vector<384xf32>
    %184 = vector.shape_cast %183 : vector<384xf32> to vector<1x384xf32>
    %185 = vector.broadcast %184 : vector<1x384xf32> to vector<16x384xf32>
    %186 = arith.addf %181, %185 : vector<16x384xf32>
    %187 = arith.addf %1, %186 : vector<16x384xf32>
    %c0_53 = arith.constant 0 : index
    %c0_54 = arith.constant 0 : index
    %188 = vector.load %arg8[%c0_53, %c0_54] : memref<1x384xf32, #tpu.memory_space<vmem>>, vector<1x384xf32>
    %189 = vector.shape_cast %188 : vector<1x384xf32> to vector<384xf32>
    %c0_55 = arith.constant 0 : index
    %c0_56 = arith.constant 0 : index
    %190 = vector.load %arg9[%c0_55, %c0_56] : memref<1x384xf32, #tpu.memory_space<vmem>>, vector<1x384xf32>
    %191 = vector.shape_cast %190 : vector<1x384xf32> to vector<384xf32>
    %cst_57 = arith.constant dense<0.000000e+00> : vector<16xf32>
    %192 = vector.multi_reduction <add>, %187, %cst_57 [1] : vector<16x384xf32> to vector<16xf32>
    %193 = vector.shape_cast %192 : vector<16xf32> to vector<16x1xf32>
    %cst_58 = arith.constant 3.840000e+02 : f32
    %194 = vector.broadcast %cst_58 : f32 to vector<16x1xf32>
    %195 = arith.divf %193, %194 : vector<16x1xf32>
    %196 = vector.broadcast %195 : vector<16x1xf32> to vector<16x384xf32>
    %197 = arith.subf %187, %196 : vector<16x384xf32>
    %198 = arith.mulf %197, %197 : vector<16x384xf32>
    %cst_59 = arith.constant dense<0.000000e+00> : vector<16xf32>
    %199 = vector.multi_reduction <add>, %198, %cst_59 [1] : vector<16x384xf32> to vector<16xf32>
    %200 = vector.shape_cast %199 : vector<16xf32> to vector<16x1xf32>
    %cst_60 = arith.constant 3.840000e+02 : f32
    %201 = vector.broadcast %cst_60 : f32 to vector<16x1xf32>
    %202 = arith.divf %200, %201 : vector<16x1xf32>
    %203 = vector.broadcast %195 : vector<16x1xf32> to vector<16x384xf32>
    %204 = arith.subf %187, %203 : vector<16x384xf32>
    %cst_61 = arith.constant 9.99999974E-6 : f32
    %205 = vector.broadcast %cst_61 : f32 to vector<16x1xf32>
    %206 = arith.addf %202, %205 : vector<16x1xf32>
    %207 = math.rsqrt %206 : vector<16x1xf32>
    %208 = vector.broadcast %207 : vector<16x1xf32> to vector<16x384xf32>
    %209 = arith.mulf %204, %208 : vector<16x384xf32>
    %210 = vector.shape_cast %189 : vector<384xf32> to vector<1x384xf32>
    %211 = vector.broadcast %210 : vector<1x384xf32> to vector<16x384xf32>
    %212 = arith.mulf %209, %211 : vector<16x384xf32>
    %213 = vector.shape_cast %191 : vector<384xf32> to vector<1x384xf32>
    %214 = vector.broadcast %213 : vector<1x384xf32> to vector<16x384xf32>
    %215 = arith.addf %212, %214 : vector<16x384xf32>
    %216 = arith.truncf %215 : vector<16x384xf32> to vector<16x384xbf16>
    %c0_62 = arith.constant 0 : index
    %c0_63 = arith.constant 0 : index
    %217 = vector.load %arg10[%c0_62, %c0_63] : memref<384x1536xbf16, #tpu.memory_space<vmem>>, vector<384x1536xbf16>
    %cst_64 = arith.constant dense<0.000000e+00> : vector<16x1536xf32>
    %218 = tpu.matmul %216, %217, %cst_64 {dimension_numbers = #tpu.dot_dimension_numbers<[1], [0], [0], [1], [0, 0, 1, 1], [], []>} : vector<16x384xbf16>, vector<384x1536xbf16>, vector<16x1536xf32> -> vector<16x1536xf32>
    %c0_65 = arith.constant 0 : index
    %c0_66 = arith.constant 0 : index
    %219 = vector.load %arg11[%c0_65, %c0_66] : memref<1x1536xf32, #tpu.memory_space<vmem>>, vector<1x1536xf32>
    %220 = vector.shape_cast %219 : vector<1x1536xf32> to vector<1536xf32>
    %221 = vector.shape_cast %220 : vector<1536xf32> to vector<1x1536xf32>
    %222 = vector.broadcast %221 : vector<1x1536xf32> to vector<16x1536xf32>
    %223 = arith.addf %218, %222 : vector<16x1536xf32>
    %cst_67 = arith.constant 0.000000e+00 : f32
    %224 = vector.broadcast %cst_67 : f32 to vector<16x1536xf32>
    %225 = arith.maximumf %223, %224 : vector<16x1536xf32>
    %226 = arith.truncf %225 : vector<16x1536xf32> to vector<16x1536xbf16>
    %c0_68 = arith.constant 0 : index
    %c0_69 = arith.constant 0 : index
    %227 = vector.load %arg12[%c0_68, %c0_69] : memref<1536x384xbf16, #tpu.memory_space<vmem>>, vector<1536x384xbf16>
    %cst_70 = arith.constant dense<0.000000e+00> : vector<16x384xf32>
    %228 = tpu.matmul %226, %227, %cst_70 {dimension_numbers = #tpu.dot_dimension_numbers<[1], [0], [0], [1], [0, 0, 1, 1], [], []>} : vector<16x1536xbf16>, vector<1536x384xbf16>, vector<16x384xf32> -> vector<16x384xf32>
    %c0_71 = arith.constant 0 : index
    %c0_72 = arith.constant 0 : index
    %229 = vector.load %arg13[%c0_71, %c0_72] : memref<1x384xf32, #tpu.memory_space<vmem>>, vector<1x384xf32>
    %230 = vector.shape_cast %229 : vector<1x384xf32> to vector<384xf32>
    %231 = vector.shape_cast %230 : vector<384xf32> to vector<1x384xf32>
    %232 = vector.broadcast %231 : vector<1x384xf32> to vector<16x384xf32>
    %233 = arith.addf %228, %232 : vector<16x384xf32>
    %234 = arith.addf %187, %233 : vector<16x384xf32>
    %235 = vector.shape_cast %234 : vector<16x384xf32> to vector<1x16x384xf32>
    %c0_73 = arith.constant 0 : index
    %c0_74 = arith.constant 0 : index
    %c0_75 = arith.constant 0 : index
    %236 = vector.load %arg14[%c0_73, %c0_74, %c0_75] : memref<1x16x384xf32, #tpu.memory_space<vmem>>, vector<1x16x384xf32>
    tpu.vector_store %arg14[%c0_73, %c0_74, %c0_75], %235 {strides = array<i32>} : memref<1x16x384xf32, #tpu.memory_space<vmem>>, vector<1x16x384xf32>,
    return
  }
  func.func @transform_0(%arg0: i32) -> (i32, i32) {
    %c0_i32 = arith.constant 0 : i32
    %c0_i32_0 = arith.constant 0 : i32
    %c0_i32_1 = arith.constant 0 : i32
    return %c0_i32, %c0_i32_0 : i32, i32
  }
  func.func @transform_1(%arg0: i32) -> (i32, i32, i32) {
    %c0_i32 = arith.constant 0 : i32
    %c0_i32_0 = arith.constant 0 : i32
    %c0_i32_1 = arith.constant 0 : i32
    return %arg0, %c0_i32, %c0_i32_0 : i32, i32, i32
  }
  func.func @transform_2(%arg0: i32) -> (i32, i32) {
    %c0_i32 = arith.constant 0 : i32
    %c0_i32_0 = arith.constant 0 : i32
    %c0_i32_1 = arith.constant 0 : i32
    return %c0_i32, %c0_i32_0 : i32, i32
  }
  func.func @transform_3(%arg0: i32) -> (i32, i32) {
    %c0_i32 = arith.constant 0 : i32
    %c0_i32_0 = arith.constant 0 : i32
    %c0_i32_1 = arith.constant 0 : i32
    return %c0_i32, %c0_i32_0 : i32, i32
  }
  func.func @transform_4(%arg0: i32) -> (i32, i32) {
    %c0_i32 = arith.constant 0 : i32
    %c0_i32_0 = arith.constant 0 : i32
    %c0_i32_1 = arith.constant 0 : i32
    return %c0_i32, %c0_i32_0 : i32, i32
  }
  func.func @transform_5(%arg0: i32) -> (i32, i32) {
    %c0_i32 = arith.constant 0 : i32
    %c0_i32_0 = arith.constant 0 : i32
    %c0_i32_1 = arith.constant 0 : i32
    return %c0_i32, %c0_i32_0 : i32, i32
  }
  func.func @transform_6(%arg0: i32) -> (i32, i32) {
    %c0_i32 = arith.constant 0 : i32
    %c0_i32_0 = arith.constant 0 : i32
    %c0_i32_1 = arith.constant 0 : i32
    return %c0_i32, %c0_i32_0 : i32, i32
  }
  func.func @transform_7(%arg0: i32) -> (i32, i32) {
    %c0_i32 = arith.constant 0 : i32
    %c0_i32_0 = arith.constant 0 : i32
    %c0_i32_1 = arith.constant 0 : i32
    return %c0_i32, %c0_i32_0 : i32, i32
  }
  func.func @transform_8(%arg0: i32) -> (i32, i32) {
    %c0_i32 = arith.constant 0 : i32
    %c0_i32_0 = arith.constant 0 : i32
    %c0_i32_1 = arith.constant 0 : i32
    return %c0_i32, %c0_i32_0 : i32, i32
  }
  func.func @transform_9(%arg0: i32) -> (i32, i32) {
    %c0_i32 = arith.constant 0 : i32
    %c0_i32_0 = arith.constant 0 : i32
    %c0_i32_1 = arith.constant 0 : i32
    return %c0_i32, %c0_i32_0 : i32, i32
  }
  func.func @transform_10(%arg0: i32) -> (i32, i32) {
    %c0_i32 = arith.constant 0 : i32
    %c0_i32_0 = arith.constant 0 : i32
    %c0_i32_1 = arith.constant 0 : i32
    return %c0_i32, %c0_i32_0 : i32, i32
  }
  func.func @transform_11(%arg0: i32) -> (i32, i32) {
    %c0_i32 = arith.constant 0 : i32
    %c0_i32_0 = arith.constant 0 : i32
    %c0_i32_1 = arith.constant 0 : i32
    return %c0_i32, %c0_i32_0 : i32, i32
  }
  func.func @transform_12(%arg0: i32) -> (i32, i32) {
    %c0_i32 = arith.constant 0 : i32
    %c0_i32_0 = arith.constant 0 : i32
    %c0_i32_1 = arith.constant 0 : i32
    return %c0_i32, %c0_i32_0 : i32, i32
  }
  func.func @transform_13(%arg0: i32) -> (i32, i32, i32) {
    %c0_i32 = arith.constant 0 : i32
    %c0_i32_0 = arith.constant 0 : i32
    %c0_i32_1 = arith.constant 0 : i32
    return %arg0, %c0_i32, %c0_i32_0 : i32, i32, i32
  }
}

</mosaic_0001>

<bundles_post_ra>
// kernel: tpu_custom_call.1
= control target key start
LH: loop header
LB: loop body
LE: loop exit
PB: predicated region body
PF: predicated region fallthrough
CT: control target
= control target key end

     0   :  { %s13317_s0 = inlined_call_operand.hbm [shape: f32[16,16], index: 0, kind: input, shape index: {}]   ;;  %s13318_s1 = inlined_call_operand.hbm [shape: f32[2,16,384], index: 1, kind: input, shape index: {}]   ;;  %s13319_s2 = inlined_call_operand.hbm [shape: f32[1,384], index: 2, kind: input, shape index: {}]   ;;  %s13320_s3 = inlined_call_operand.hbm [shape: f32[1,384], index: 3, kind: input, shape index: {}]   ;;  %s13321_s4 = inlined_call_operand.hbm [shape: bf16[384,1152], index: 4, kind: input, shape index: {}]   ;;  %s13322_s5 = inlined_call_operand.hbm [shape: bf16[384,384], index: 5, kind: input, shape index: {}]   ;;  %s13323_s6 = inlined_call_operand.hbm [shape: f32[1,384], index: 6, kind: input, shape index: {}]   ;;  %s13324_s7 = inlined_call_operand.hbm [shape: f32[1,384], index: 7, kind: input, shape index: {}]   ;;  %s13325_s8 = inlined_call_operand.hbm [shape: f32[1,384], index: 8, kind: input, shape index: {}]   ;;  %s13326_s9 = inlined_call_operand.hbm [shape: bf16[384,1536], index: 9, kind: input, shape index: {}]   ;;  %s13327_s10 = inlined_call_operand.hbm [shape: f32[1,1536], index: 10, kind: input, shape index: {}]   ;;  %s13328_s11 = inlined_call_operand.hbm [shape: bf16[1536,384], index: 11, kind: input, shape index: {}]   ;;  %s13329_s12 = inlined_call_operand.hbm [shape: f32[1,384], index: 12, kind: input, shape index: {}]   ;;  %s13330_s13 = inlined_call_operand.hbm [shape: f32[2,16,384], index: 13, kind: output, shape index: {}]  }
   0x1   :  { %13342 = sst [smem:[#allocation37_spill]] %s13317_s0 }
   0x2   :  { %13343 = sst [smem:[#allocation38_spill]] %s13318_s1 }
   0x3   :  { %13344 = sst [smem:[#allocation39_spill]] %s13319_s2 }
   0x4   :  { %13345 = sst [smem:[#allocation40_spill]] %s13320_s3 }
   0x5   :  { %13346 = sst [smem:[#allocation41_spill]] %s13330_s13 }
   0x6   :  { %18 = vsyncpa [#allocation4], 0 }
   0x7   :  { %19 = vsyncpa [#allocation7], 0 }
   0x8   :  { %21 = vsyncpa [#allocation7 + $0x1], 0 }
   0x9   :  { %22 = vsyncpa [#allocation10], 0 }
   0xa   :  { %23 = vsyncpa [#allocation13], 0 }
   0xb   :  { %24 = vsyncpa [#allocation16], 0 }
   0xc   :  { %25 = vsyncpa [#allocation19], 0 }
   0xd   :  { %26 = vsyncpa [#allocation22], 0 }
   0xe   :  { %27 = vsyncpa [#allocation5], 0 }
   0xf   :  { %29 = vsyncpa [#allocation5 + $0x1], 0  ;;  %s12374_s25 = smov 0   ;;  %s12376_s26 = smov 0  }
  0x10   :  { %s12378_s27 = smov 0   ;;  %s12380_s28 = smov 0  }
  0x11 LB: > { %13347 = sst [smem:[#allocation34_spill]] %s12260_s25  ;;  %s12274_s29 = smov [#allocation8]   ;;  %s12272_s28 = sphi %s12380_s28, %s13391_s28   ;;  %s12268_s27 = sphi %s12378_s27, %s13390_s27   ;;  %s12264_s26 = sphi %s12376_s26, %s13389_s26   ;;  %s12260_s25 = sphi %s12374_s25, %s13388_s25  }
  0x12   : > { %s370_s30 = sshll.u32 %s12274_s29, 4  ;;  %s12395_s14 = sadd.s32 4294967295, %s12272_s28   ;;  %s12400_s30 = int_to_ptr.vmem [resolvable:$true] %s370_s30 }
  0x13   : > { %13348 = sst [smem:[#allocation35_spill]] %s12395_s14  ;;  %p9006_p0 = scmp.ge.s32.totalorder %s12272_s28, 1 }
  0x14   : > { %p13337_p1 = scmp.eq.s32.totalorder %s12395_s14, 0  ;;  %p344_p2 = scmp.lt.s32.totalorder %s12272_s28, 3 }
  0x15   : > { %s12275_s16 = smov [#allocation9]   ;;  %s12276_s18 = smov [#allocation12]  }
  0x16   : > { %p12402_p3 = pnand %p9006_p0, %p344_p2  ;;  %s381_s17 = sshll.u32 %s12275_s16, 4  ;;  %s12409_s17 = int_to_ptr.vmem [resolvable:$true] %s381_s17 }
  0x17   : > { %s404_s19 = sshll.u32 %s12276_s18, 4  ;;  %s13352_s2 = sld [smem:[#allocation39_spill]]  ;;  %s12417_s19 = int_to_ptr.vmem [resolvable:$true] %s404_s19 }
  0x18   : > { %s13349_s15 = scalar_select %p12402_p3, 1, 0 }
  0x19   : > { %p10395_p5 = pneg %p12402_p3 }
  0x1a   : > { %13350 = sst [smem:[#allocation36_spill]] %s13349_s15 }
  0x1b   : > { %p12413_p6 = pnand %p10395_p5, %p13337_p1 }
  0x1d   : > { %s11812_s23 = scalar_lea.hbm %s13352_s2, 48  ;;  %p12427_p8 = pneg %p12413_p6 }
  0x1e   : > { %p11813_p7 = scmp.ne.s32.totalorder %s13352_s2, %s11812_s23  ;;  %p11819_p11 = scmp.lt.u32.totalorder %s11812_s23, %s13352_s2 }
  0x20   : > { %p11815_p9 = pnand %p12427_p8, %p11813_p7 }
  0x22   : > { %p11816_p10 = pneg %p11815_p9 }
  0x24   : > { %p11821_p12 = pnand %p11819_p11, %p11816_p10 }
  0x26   : > { %11824 = shalt.err (!%p11821_p12)
}
  0x27   : > { %s11825_s21 = scalar_lea.vmem %s12400_s30, 48  ;;  %s11832_s22 = scalar_lea.vmem %s12400_s30, 64 }
  0x28   : > { %p11826_p13 = scmp.ne.s32.totalorder %s12400_s30, %s11825_s21  ;;  %p11833_p5 = scmp.lt.s32.totalorder %s12400_s30, %s12400_s30 }
  0x29   : > { %p11834_p7 = scmp.lt.s32.totalorder %s11832_s22, %s11825_s21 }
  0x2a   : > { %p11828_p0 = pnand %p11826_p13, %p12427_p8 }
  0x2b   : > { %p11835_p9 = por %p11834_p7, %p11833_p5 }
  0x2c   : > { %p11829_p2 = pneg %p11828_p0 }
  0x2e   : > { %p11836_p4 = pnand %p11835_p9, %p11829_p2 }
  0x30   : > { %11839 = shalt.err (!%p11836_p4)
}
  0x31   : > { %10401 = dma.hbm_to_vmem [thread:$0]  (!%p12413_p6), %s13352_s2, 48, %s12400_s30, [#allocation7]  }
  0x32   : > { %s13354_s3 = sld [smem:[#allocation40_spill]] }
  0x38   : > { %s11840_s18 = scalar_lea.hbm %s13354_s3, 48 }
  0x39   : > { %p11841_p10 = scmp.ne.s32.totalorder %s13354_s3, %s11840_s18  ;;  %p11847_p4 = scmp.lt.u32.totalorder %s11840_s18, %s13354_s3 }
  0x3b   : > { %p11843_p11 = pnand %p11841_p10, %p12427_p8 }
  0x3d   : > { %p11844_p12 = pneg %p11843_p11 }
  0x3f   : > { %p11849_p13 = pnand %p11847_p4, %p11844_p12 }
  0x41   : > { %11852 = shalt.err (!%p11849_p13)
}
  0x42   : > { %s11853_s30 = scalar_lea.vmem %s12409_s17, 48  ;;  %s11860_s1 = scalar_lea.vmem %s12409_s17, 64 }
  0x43   : > { %p11854_p0 = scmp.ne.s32.totalorder %s12409_s17, %s11853_s30  ;;  %p11861_p7 = scmp.lt.s32.totalorder %s12409_s17, %s12409_s17 }
  0x44   : > { %p11862_p9 = scmp.lt.s32.totalorder %s11860_s1, %s11853_s30 }
  0x45   : > { %p11856_p2 = pnand %p11854_p0, %p12427_p8 }
  0x46   : > { %p11863_p10 = por %p11862_p9, %p11861_p7 }
  0x47   : > { %p11857_p5 = pneg %p11856_p2 }
  0x49   : > { %p11864_p11 = pnand %p11863_p10, %p11857_p5 }
  0x4b   : > { %11867 = shalt.err (!%p11864_p11)
}
  0x4c   : > { %10404 = dma.hbm_to_vmem [thread:$0]  (!%p12413_p6), %s13354_s3, 48, %s12409_s17, [#allocation10]  }
  0x4d   : > { %s11868_s29 = scalar_lea.hbm %s13322_s5, 9216 }
  0x4e   : > { %p11869_p12 = scmp.ne.s32.totalorder %s13322_s5, %s11868_s29  ;;  %p11875_p0 = scmp.lt.u32.totalorder %s11868_s29, %s13322_s5 }
  0x50   : > { %p11871_p4 = pnand %p11869_p12, %p12427_p8 }
  0x52   : > { %p11872_p13 = pneg %p11871_p4 }
  0x54   : > { %p11877_p2 = pnand %p11875_p0, %p11872_p13 }
  0x56   : > { %11880 = shalt.err (!%p11877_p2)
}
  0x57   : > { %s11881_s17 = scalar_lea.vmem %s12417_s19, 9216  ;;  %p11889_p10 = scmp.lt.s32.totalorder %s12417_s19, %s12417_s19 }
  0x58   : > { %p11882_p5 = scmp.ne.s32.totalorder %s12417_s19, %s11881_s17  ;;  %p11890_p11 = scmp.lt.s32.totalorder %s11881_s17, %s11881_s17 }
  0x5a   : > { %p11884_p7 = pnand %p11882_p5, %p12427_p8  ;;  %p11891_p12 = por %p11890_p11, %p11889_p10 }
  0x5c   : > { %p11885_p9 = pneg %p11884_p7 }
  0x5e   : > { %p11892_p4 = pnand %p11891_p12, %p11885_p9 }
  0x60   : > { %11895 = shalt.err (!%p11892_p4)
}
  0x61   : > { %s13339_s1 = smov 192   ;;  %s13340_s15 = smov 12  }
  0x62   : > { %10410 = dma.hbm_to_vmem [thread:$0]  (!%p12413_p6), %s13322_s5, 9216, %s12417_s19, [#allocation13], %s13339_s1, %s13339_s1, %s13340_s15  }
  0x63   : > { %s12279_s24 = smov [#allocation15]   ;;  %s12280_s18 = smov [#allocation18]  }
  0x64   : > { %s429_s29 = sshll.u32 %s12279_s24, 4  ;;  %s450_s21 = sshll.u32 %s12280_s18, 4  ;;  %s430_s29 = int_to_ptr.vmem [resolvable:$true] %s429_s29  ;;  %s451_s21 = int_to_ptr.vmem [resolvable:$true] %s450_s21 }
  0x65   : > { %s11896_s17 = scalar_lea.hbm %s13324_s7, 48 }
  0x66   : > { %p11897_p13 = scmp.ne.s32.totalorder %s13324_s7, %s11896_s17  ;;  %p11903_p5 = scmp.lt.u32.totalorder %s11896_s17, %s13324_s7 }
  0x68   : > { %p11899_p0 = pnand %p11897_p13, %p12427_p8 }
  0x6a   : > { %p11900_p2 = pneg %p11899_p0 }
  0x6c   : > { %p11905_p7 = pnand %p11903_p5, %p11900_p2 }
  0x6e   : > { %11908 = shalt.err (!%p11905_p7)
}
  0x6f   : > { %s11909_s19 = scalar_lea.vmem %s430_s29, 48  ;;  %s11916_s13 = scalar_lea.vmem %s430_s29, 64 }
  0x70   : > { %p11910_p9 = scmp.ne.s32.totalorder %s430_s29, %s11909_s19  ;;  %p11917_p12 = scmp.lt.s32.totalorder %s430_s29, %s430_s29 }
  0x71   : > { %p11918_p4 = scmp.lt.s32.totalorder %s11916_s13, %s11909_s19 }
  0x72   : > { %p11912_p10 = pnand %p11910_p9, %p12427_p8 }
  0x73   : > { %p11919_p1 = por %p11918_p4, %p11917_p12 }
  0x74   : > { %p11913_p11 = pneg %p11912_p10 }
  0x76   : > { %p11920_p3 = pnand %p11919_p1, %p11913_p11 }
  0x78   : > { %11923 = shalt.err (!%p11920_p3)
}
  0x79   : > { %10416 = dma.hbm_to_vmem [thread:$0]  (!%p12413_p6), %s13324_s7, 48, %s430_s29, [#allocation16]  }
  0x7a   : > { %s11924_s23 = scalar_lea.hbm %s13326_s9, 36864 }
  0x7b   : > { %p11925_p13 = scmp.ne.s32.totalorder %s13326_s9, %s11924_s23  ;;  %p11931_p3 = scmp.lt.u32.totalorder %s11924_s23, %s13326_s9 }
  0x7d   : > { %p11927_p0 = pnand %p11925_p13, %p12427_p8 }
  0x7f   : > { %p11928_p1 = pneg %p11927_p0 }
  0x81   : > { %p11933_p2 = pnand %p11931_p3, %p11928_p1 }
  0x83   : > { %11936 = shalt.err (!%p11933_p2)
}
  0x84   : > { %s11937_s17 = scalar_lea.vmem %s451_s21, 36864  ;;  %p11945_p10 = scmp.lt.s32.totalorder %s451_s21, %s451_s21 }
  0x85   : > { %p11938_p5 = scmp.ne.s32.totalorder %s451_s21, %s11937_s17  ;;  %p11946_p11 = scmp.lt.s32.totalorder %s11937_s17, %s11937_s17 }
  0x87   : > { %p11940_p7 = pnand %p11938_p5, %p12427_p8  ;;  %p11947_p12 = por %p11946_p11, %p11945_p10 }
  0x89   : > { %p11941_p9 = pneg %p11940_p7 }
  0x8b   : > { %p11948_p4 = pnand %p11947_p12, %p11941_p9 }
  0x8d   : > { %11951 = shalt.err (!%p11948_p4)
}
  0x8e   : > { %s12281_s29 = smov 768   ;;  %s12282_s19 = smov 48  }
  0x8f   : > { %10422 = dma.hbm_to_vmem [thread:$0]  (!%p12413_p6), %s13326_s9, 36864, %s451_s21, [#allocation19], %s12281_s29, %s12281_s29, %s12282_s19  }
  0x90   : > { %s12283_s3 = smov [#allocation21]   ;;  %s12284_s14 = smov [#allocation3]  }
  0x91   : > { %s474_s25 = sshll.u32 %s12283_s3, 4  ;;  %s356_s23 = sshll.u32 %s12284_s14, 4  ;;  %s475_s25 = int_to_ptr.vmem [resolvable:$true] %s474_s25  ;;  %s357_s23 = int_to_ptr.vmem [resolvable:$true] %s356_s23 }
  0x92   : > { %s11952_s22 = scalar_lea.hbm %s13328_s11, 36864 }
  0x93   : > { %p11953_p13 = scmp.ne.s32.totalorder %s13328_s11, %s11952_s22  ;;  %p11959_p3 = scmp.lt.u32.totalorder %s11952_s22, %s13328_s11 }
  0x95   : > { %p11955_p0 = pnand %p11953_p13, %p12427_p8 }
  0x97   : > { %p11956_p1 = pneg %p11955_p0 }
  0x99   : > { %p11961_p2 = pnand %p11959_p3, %p11956_p1 }
  0x9b   : > { %11964 = shalt.err (!%p11961_p2)
}
  0x9c   : > { %s11965_s21 = scalar_lea.vmem %s475_s25, 36864  ;;  %p11973_p10 = scmp.lt.s32.totalorder %s475_s25, %s475_s25 }
  0x9d   : > { %p11966_p5 = scmp.ne.s32.totalorder %s475_s25, %s11965_s21  ;;  %p11974_p11 = scmp.lt.s32.totalorder %s11965_s21, %s11965_s21 }
  0x9f   : > { %p11968_p7 = pnand %p11966_p5, %p12427_p8  ;;  %p11975_p12 = por %p11974_p11, %p11973_p10 }
  0xa1   : > { %p11969_p9 = pneg %p11968_p7 }
  0xa3   : > { %p11976_p4 = pnand %p11975_p12, %p11969_p9 }
  0xa5   : > { %11979 = shalt.err (!%p11976_p4)
}
  0xa6   : > { %s13355_s29 = smov 12   ;;  %s13356_s19 = smov 192  }
  0xa7   : > { %10428 = dma.hbm_to_vmem [thread:$0]  (!%p12413_p6), %s13328_s11, 36864, %s475_s25, [#allocation22], %s13356_s19, %s13356_s19, %s13355_s29  }
  0xa8   : > { %s13357_s0 = sld [smem:[#allocation37_spill]] }
  0xae   : > { %s11980_s3 = scalar_lea.hbm %s13357_s0, 256 }
  0xaf   : > { %p11981_p13 = scmp.ne.s32.totalorder %s13357_s0, %s11980_s3  ;;  %p11987_p3 = scmp.lt.u32.totalorder %s11980_s3, %s13357_s0 }
  0xb1   : > { %p11983_p0 = pnand %p11981_p13, %p12427_p8 }
  0xb3   : > { %p11984_p1 = pneg %p11983_p0 }
  0xb5   : > { %p11989_p2 = pnand %p11987_p3, %p11984_p1 }
  0xb7   : > { %11992 = shalt.err (!%p11989_p2)
}
  0xb8   : > { %s11993_s30 = scalar_lea.vmem %s357_s23, 256  ;;  %p12001_p10 = scmp.lt.s32.totalorder %s357_s23, %s357_s23 }
  0xb9   : > { %p11994_p5 = scmp.ne.s32.totalorder %s357_s23, %s11993_s30  ;;  %p12002_p11 = scmp.lt.s32.totalorder %s11993_s30, %s11993_s30 }
  0xbb   : > { %p11996_p7 = pnand %p11994_p5, %p12427_p8  ;;  %p12003_p12 = por %p12002_p11, %p12001_p10 }
  0xbd   : > { %p11997_p9 = pneg %p11996_p7 }
  0xbf   : > { %p12004_p4 = pnand %p12003_p12, %p11997_p9 }
  0xc1   : > { %12007 = shalt.err (!%p12004_p4)
}
  0xc2   : > { %s12285_s25 = smov 128   ;;  %s12286_s17 = smov 8  }
  0xc3   : > { %10398 = dma.hbm_to_vmem [thread:$0]  (!%p12413_p6), %s13357_s0, 256, %s357_s23, [#allocation4], %s12285_s25, %s12285_s25, %s12286_s17  }
  0xc4   : > { %s12287_s19 = smov [#allocation11]   ;;  %s12008_s2 = scalar_lea.hbm %s13321_s4, 27648 }
  0xc5   : > { %s391_s1 = sshll.u32 %s12287_s19, 4  ;;  %p12009_p13 = scmp.ne.s32.totalorder %s13321_s4, %s12008_s2  ;;  %s392_s1 = int_to_ptr.vmem [resolvable:$true] %s391_s1 }
  0xc6   : > { %p12015_p3 = scmp.lt.u32.totalorder %s12008_s2, %s13321_s4 }
  0xc7   : > { %p12011_p0 = pnand %p12009_p13, %p12427_p8 }
  0xc9   : > { %p12012_p1 = pneg %p12011_p0 }
  0xcb   : > { %p12017_p2 = pnand %p12015_p3, %p12012_p1 }
  0xcd   : > { %12020 = shalt.err (!%p12017_p2)
}
  0xce   : > { %s12021_s23 = scalar_lea.vmem %s392_s1, 27648  ;;  %p12029_p10 = scmp.lt.s32.totalorder %s392_s1, %s392_s1 }
  0xcf   : > { %p12022_p5 = scmp.ne.s32.totalorder %s392_s1, %s12021_s23  ;;  %p12030_p11 = scmp.lt.s32.totalorder %s12021_s23, %s12021_s23 }
  0xd1   : > { %p12024_p7 = pnand %p12022_p5, %p12427_p8  ;;  %p12031_p12 = por %p12030_p11, %p12029_p10 }
  0xd3   : > { %p12025_p9 = pneg %p12024_p7 }
  0xd5   : > { %p12032_p4 = pnand %p12031_p12, %p12025_p9 }
  0xd7   : > { %12035 = shalt.err (!%p12032_p4)
}
  0xd8   : > { %s12288_s22 = smov 576   ;;  %s12289_s30 = smov 36  }
  0xd9   : > { %10407 = dma.hbm_to_vmem [thread:$0]  (!%p12413_p6), %s13321_s4, 27648, %s392_s1, [#allocation10], %s12288_s22, %s12288_s22, %s12289_s30  }
  0xda   : > { %s12290_s21 = smov [#allocation14]   ;;  %s12291_s19 = smov [#allocation17]  }
  0xdb   : > { %s418_s29 = sshll.u32 %s12290_s21, 4  ;;  %s440_s15 = sshll.u32 %s12291_s19, 4  ;;  %s419_s29 = int_to_ptr.vmem [resolvable:$true] %s418_s29  ;;  %s12592_s15 = int_to_ptr.vmem [resolvable:$true] %s440_s15 }
  0xdc   : > { %s12036_s3 = scalar_lea.hbm %s13323_s6, 48 }
  0xdd   : > { %p12037_p13 = scmp.ne.s32.totalorder %s13323_s6, %s12036_s3  ;;  %p12043_p3 = scmp.lt.u32.totalorder %s12036_s3, %s13323_s6 }
  0xdf   : > { %p12039_p0 = pnand %p12037_p13, %p12427_p8 }
  0xe1   : > { %p12040_p1 = pneg %p12039_p0 }
  0xe3   : > { %p12045_p2 = pnand %p12043_p3, %p12040_p1 }
  0xe5   : > { %12048 = shalt.err (!%p12045_p2)
}
  0xe6   : > { %s12049_s23 = scalar_lea.vmem %s419_s29, 48  ;;  %s12056_s22 = scalar_lea.vmem %s419_s29, 64 }
  0xe7   : > { %p12050_p5 = scmp.ne.s32.totalorder %s419_s29, %s12049_s23  ;;  %p12057_p10 = scmp.lt.s32.totalorder %s419_s29, %s419_s29 }
  0xe8   : > { %p12058_p11 = scmp.lt.s32.totalorder %s12056_s22, %s12049_s23 }
  0xe9   : > { %p12052_p7 = pnand %p12050_p5, %p12427_p8 }
  0xea   : > { %p12059_p12 = por %p12058_p11, %p12057_p10 }
  0xeb   : > { %p12053_p9 = pneg %p12052_p7 }
  0xed   : > { %p12060_p4 = pnand %p12059_p12, %p12053_p9 }
  0xef   : > { %12063 = shalt.err (!%p12060_p4)
}
  0xf0   : > { %10413 = dma.hbm_to_vmem [thread:$0]  (!%p12413_p6), %s13323_s6, 48, %s419_s29, [#allocation13]  }
  0xf1   : > { %s12064_s19 = scalar_lea.hbm %s13325_s8, 48 }
  0xf2   : > { %p12065_p13 = scmp.ne.s32.totalorder %s13325_s8, %s12064_s19  ;;  %p12071_p3 = scmp.lt.u32.totalorder %s12064_s19, %s13325_s8 }
  0xf4   : > { %p12067_p0 = pnand %p12065_p13, %p12427_p8 }
  0xf6   : > { %p12068_p1 = pneg %p12067_p0 }
  0xf8   : > { %p12073_p2 = pnand %p12071_p3, %p12068_p1 }
  0xfa   : > { %12076 = shalt.err (!%p12073_p2)
}
  0xfb   : > { %s12077_s29 = scalar_lea.vmem %s12592_s15, 48  ;;  %s12084_s24 = scalar_lea.vmem %s12592_s15, 64 }
  0xfc   : > { %p12078_p5 = scmp.ne.s32.totalorder %s12592_s15, %s12077_s29  ;;  %p12085_p10 = scmp.lt.s32.totalorder %s12592_s15, %s12592_s15 }
  0xfd   : > { %p12086_p11 = scmp.lt.s32.totalorder %s12084_s24, %s12077_s29 }
  0xfe   : > { %p12080_p7 = pnand %p12078_p5, %p12427_p8 }
  0xff   : > { %p12087_p12 = por %p12086_p11, %p12085_p10 }
 0x100   : > { %p12081_p9 = pneg %p12080_p7 }
 0x102   : > { %p12088_p4 = pnand %p12087_p12, %p12081_p9 }
 0x104   : > { %12091 = shalt.err (!%p12088_p4)
}
 0x105   : > { %10419 = dma.hbm_to_vmem [thread:$0]  (!%p12413_p6), %s13325_s8, 48, %s12592_s15, [#allocation16]  }
 0x106   : > { %s12292_s23 = smov [#allocation20]   ;;  %s12293_s30 = smov [#allocation23]  }
 0x107   : > { %s464_s22 = sshll.u32 %s12292_s23, 4  ;;  %s488_s25 = sshll.u32 %s12293_s30, 4  ;;  %s465_s22 = int_to_ptr.vmem [resolvable:$true] %s464_s22  ;;  %s12636_s25 = int_to_ptr.vmem [resolvable:$true] %s488_s25 }
 0x108   : > { %s12092_s19 = scalar_lea.hbm %s13327_s10, 192 }
 0x109   : > { %p12093_p13 = scmp.ne.s32.totalorder %s13327_s10, %s12092_s19  ;;  %p12099_p3 = scmp.lt.u32.totalorder %s12092_s19, %s13327_s10 }
 0x10b   : > { %p12095_p0 = pnand %p12093_p13, %p12427_p8 }
 0x10d   : > { %p12096_p1 = pneg %p12095_p0 }
 0x10f   : > { %p12101_p2 = pnand %p12099_p3, %p12096_p1 }
 0x111   : > { %12104 = shalt.err (!%p12101_p2)
}
 0x112   : > { %s12105_s14 = scalar_lea.vmem %s465_s22, 192  ;;  %p12113_p10 = scmp.lt.s32.totalorder %s465_s22, %s465_s22 }
 0x113   : > { %p12106_p5 = scmp.ne.s32.totalorder %s465_s22, %s12105_s14  ;;  %p12114_p11 = scmp.lt.s32.totalorder %s12105_s14, %s12105_s14 }
 0x115   : > { %p12108_p7 = pnand %p12106_p5, %p12427_p8  ;;  %p12115_p12 = por %p12114_p11, %p12113_p10 }
 0x117   : > { %p12109_p9 = pneg %p12108_p7 }
 0x119   : > { %p12116_p4 = pnand %p12115_p12, %p12109_p9 }
 0x11b   : > { %12119 = shalt.err (!%p12116_p4)
}
 0x11c   : > { %10425 = dma.hbm_to_vmem [thread:$0]  (!%p12413_p6), %s13327_s10, 192, %s465_s22, [#allocation19]  }
 0x11d   : > { %s12120_s23 = scalar_lea.hbm %s13329_s12, 48 }
 0x11e   : > { %p12121_p13 = scmp.ne.s32.totalorder %s13329_s12, %s12120_s23  ;;  %p12127_p3 = scmp.lt.u32.totalorder %s12120_s23, %s13329_s12 }
 0x120   : > { %p12123_p0 = pnand %p12121_p13, %p12427_p8 }
 0x122   : > { %p12124_p1 = pneg %p12123_p0 }
 0x124   : > { %p12129_p2 = pnand %p12127_p3, %p12124_p1 }
 0x126   : > { %12132 = shalt.err (!%p12129_p2)
}
 0x127   : > { %s12133_s22 = scalar_lea.vmem %s12636_s25, 48  ;;  %s12140_s13 = scalar_lea.vmem %s12636_s25, 64 }
 0x128   : > { %p12134_p5 = scmp.ne.s32.totalorder %s12636_s25, %s12133_s22  ;;  %p12141_p10 = scmp.lt.s32.totalorder %s12636_s25, %s12636_s25 }
 0x129   : > { %p12142_p11 = scmp.lt.s32.totalorder %s12140_s13, %s12133_s22 }
 0x12a   : > { %p12136_p7 = pnand %p12134_p5, %p12427_p8 }
 0x12b   : > { %p12143_p12 = por %p12142_p11, %p12141_p10 }
 0x12c   : > { %p12137_p9 = pneg %p12136_p7 }
 0x12e   : > { %p12144_p4 = pnand %p12143_p12, %p12137_p9 }
 0x130   : > { %12147 = shalt.err (!%p12144_p4)
}
 0x131   : > { %s13358_s16 = sld [smem:[#allocation34_spill]]  ;;  %s13359_s15 = sld [smem:[#allocation35_spill]] }
 0x132   : > { %10431 = dma.hbm_to_vmem [thread:$0]  (!%p12413_p6), %s13329_s12, 48, %s12636_s25, [#allocation22]  }
 0x133   : > { %s9005_s20 = sadd.s32 4294967294, %s12272_s28   ;;  %s12682_s14 = sadd.s32 1, %s12272_s28  }
 0x134   : > { %s60_s29 = ssub.s32 %s12272_s28, %s12682_s14  ;;  %s63_s24 = sadd.s32 1, %s12268_s27 }
 0x135   : > { %p61_p8 = scmp.eq.s32.totalorder %s60_s29, 0  ;;  %p70_p13 = scmp.ne.s32.totalorder %s12268_s27, %s12264_s26 }
 0x136   : > { %p71_p0 = scmp.eq.s32.totalorder %s12272_s28, 0  ;;  %p337_p7 = scmp.eq.s32.totalorder %s9005_s20, 1 }
 0x137   : > { %p76_p1 = scmp.ne.s32.totalorder %s12264_s26, %s13358_s16  ;;  %p13360_p2 = scmp.eq.s32.totalorder %s13359_s15, 0 }
 0x138   : > { %s12693_s18 = scalar_select %p61_p8, %s12268_s27, %s63_s24  }
 0x139   : > { %p72_p3 = por %p71_p0, %p70_p13  ;;  %p12697_p5 = por %p13360_p2, %p76_p1 }
 0x13a   : > { %p331_p6 = scmp.eq.s32.totalorder %s13359_s15, 1  ;;  %p10452_p9 = scmp.lt.s32.totalorder %s12272_s28, 2 }
 0x13b   : > { %s499_s25 = sand.u32 1, %s12272_s28   ;;  %p12708_p11 = por %p337_p7, %p76_p1 }
 0x13c   : > { %p12704_p10 = por %p331_p6, %p70_p13  ;;  %s501_s17 = sand.u32 1, %s12268_s27  }
 0x13d   : > { %s13363_s30 = scalar_select %p12708_p11, 1, 0 }
 0x13e   : > { %s13362_s23 = scalar_select %p12704_p10, 1, 0 }
 0x13f   : > { %s10339_s21 = smul.u32 48, %s501_s17  ;;  %p12713_p12 = pnand %p10452_p9, %p72_p3 }
 0x140   : > { %s10340_s22 = smul.u32 768, %s12272_s28  ;;  %s13365_s3 = sld [smem:[#allocation38_spill]] }
 0x141   : > { %s503_s15 = scalar_lea.vmem [#allocation6], %s10339_s21  ;;  %s12725_s29 = scalar_lea.sflag [#allocation7], %s499_s25 }
 0x142   : > { %s510_s20 = sshll.u32 %s503_s15, 4  ;;  %p12150_p8 = pneg %p12713_p12  ;;  %s12723_s20 = int_to_ptr.vmem [resolvable:$true] %s510_s20 }
 0x146   : > { %s12721_s16 = scalar_lea.hbm %s13365_s3, %s10340_s22  ;;  %s12153_s13 = scalar_lea.hbm %s13365_s3, 1536 }
 0x147   : > { %s12148_s24 = scalar_lea.hbm %s12721_s16, 768  ;;  %p12154_p1 = scmp.lt.u32.totalorder %s12721_s16, %s13365_s3 }
 0x148   : > { %p12149_p4 = scmp.ne.s32.totalorder %s12721_s16, %s12148_s24  ;;  %p12155_p3 = scmp.lt.u32.totalorder %s12153_s13, %s12148_s24 }
 0x149   : > { %p12157_p6 = scmp.lt.u32.totalorder %s12148_s24, %s12721_s16 }
 0x14a   : > { %p12151_p13 = pnand %p12150_p8, %p12149_p4  ;;  %p12156_p2 = por %p12155_p3, %p12154_p1 }
 0x14c   : > { %p12152_p0 = pneg %p12151_p13  ;;  %p12158_p7 = por %p12157_p6, %p12156_p2 }
 0x14e   : > { %p12159_p9 = pnand %p12158_p7, %p12152_p0 }
 0x150   : > { %12162 = shalt.err (!%p12159_p9)
}
 0x151   : > { %s12163_s25 = scalar_lea.vmem %s12723_s20, 768  ;;  %s12294_s21 = smov [#allocation6]  }
 0x152   : > { %p12164_p4 = scmp.ne.s32.totalorder %s12723_s20, %s12163_s25  ;;  %s12168_s15 = sshll.u32 %s12294_s21, 4  ;;  %s12169_s15 = int_to_ptr.vmem [resolvable:$false] %s12168_s15 }
 0x153   : > { %s12170_s0 = scalar_lea.vmem %s12169_s15, 1536  ;;  %p12171_p10 = scmp.lt.s32.totalorder %s12723_s20, %s12169_s15 }
 0x154   : > { %p12166_p13 = pnand %p12164_p4, %p12150_p8  ;;  %p12172_p1 = scmp.lt.s32.totalorder %s12170_s0, %s12163_s25 }
 0x156   : > { %p12167_p11 = pneg %p12166_p13  ;;  %p12173_p3 = por %p12172_p1, %p12171_p10 }
 0x158   : > { %p12174_p2 = pnand %p12173_p3, %p12167_p11 }
 0x15a   : > { %12177 = shalt.err (!%p12174_p2)
}
 0x15b   : > { %s12295_s24 = smov 384   ;;  %s12296_s17 = smov 24  }
 0x15c   : > { %10435 = dma.hbm_to_vmem [thread:$0]  (!%p12713_p12), %s12721_s16, 768, %s12723_s20, %s12725_s29, %s12295_s24, %s12295_s24, %s12296_s17  }
 0x15d   : > { %s13366_s22 = sld [smem:[#allocation36_spill]] }
 0x163   : > { %p13367_p8 = scmp.ne.s32.totalorder %s13366_s22, 0 }
 0x164   : > { %s13368_s13 = sld [smem:[#allocation35_spill]] (!%p13367_p8) }
 0x165   : > { %522 = sbr.rel (%p13367_p8) target bundleno = 4418 (0x1142), region = 72 }
 0x16a   : > { %p13369_p0 = scmp.eq.s32.totalorder (!%p13367_p8), %s13368_s13, 0 }
 0x16c   : > { %12223 = dma.done.wait (%p13369_p0), [#allocation4], 256   ;;  %p13370_p6 = pmov %p13369_p0 }
 0x16d   : > { %s528_s2 = sand.u32 1, %s13368_s13   ;;  %s530_s25 = sand.u32 1, %s12264_s26  }
 0x16e   : > { %12225 = vsyncadd (%p13370_p6), [#allocation4], 4294967040  ;;  %s12763_s21 = smul.u32 48, %s530_s25  ;;  %s529_s19 = scalar_lea.sflag [#allocation7], %s528_s2 }
 0x170   : > { %s12766_s16 = scalar_lea.vmem [#allocation6], %s12763_s21 }
 0x171   : > { %12227 = dma.done.wait (%p12697_p5), %s529_s19, 768  }
 0x172   : > { %12229 = vsyncadd (%p12697_p5), %s529_s19, 4294966528  ;;  %p13371_p10 = pmov %p13369_p0 }
 0x173   : > { %p13372_p11 = pmov %p13369_p0 }
 0x174   : > { %12231 = dma.done.wait (%p13371_p10), [#allocation7], 48  }
 0x175   : > { %12233 = vsyncadd (%p13372_p11), [#allocation7], 4294967248  ;;  %p13373_p12 = pmov %p13369_p0 }
 0x176   : > { %p13374_p7 = pmov %p13369_p0 }
 0x177   : > { %12235 = dma.done.wait (%p13373_p12), [#allocation10], 27696  }
 0x178   : > { %12237 = vsyncadd (%p13374_p7), [#allocation10], 4294939600  ;;  %p13375_p9 = pmov %p13369_p0 }
 0x179   : > { %p13376_p4 = pmov %p13369_p0 }
 0x17a   : > { %12239 = dma.done.wait (%p13375_p9), [#allocation13], 9264  }
 0x17b   : > { %12241 = vsyncadd (%p13376_p4), [#allocation13], 4294958032  ;;  %p13377_p5 = pmov %p13369_p0 }
 0x17c   : > { %p13378_p13 = pmov %p13369_p0 }
 0x17d   : > { %12243 = dma.done.wait (%p13377_p5), [#allocation16], 96  }
 0x17e   : > { %12245 = vsyncadd (%p13378_p13), [#allocation16], 4294967200  ;;  %p13379_p1 = pmov %p13369_p0 }
 0x17f   : > { %p13380_p3 = pmov %p13369_p0 }
 0x180   : > { %12247 = dma.done.wait (%p13379_p1), [#allocation19], 37056  }
 0x181   : > { %12249 = vsyncadd (%p13380_p3), [#allocation19], 4294930240  ;;  %p13381_p2 = pmov %p13369_p0 }
 0x182   : > { %p13382_p8 = pmov %p13369_p0 }
 0x183   : > { %12251 = dma.done.wait (%p13381_p2), [#allocation22], 36912  }
 0x184   : > { %12253 = vsyncadd (%p13382_p8), [#allocation22], 4294930384  ;;  %v620_v0 = vld [vmem:[%s12766_s16] sm:$0xff]  ;;  %v621_v1 = vld [vmem:[%s12766_s16 + $0x8] sm:$0xff]  ;;  %vm12299_vm0 = vmmov 0   ;;  %vm2499_vm1 = vcmask 523264  }
 0x185   : > { %v622_v2 = vld [vmem:[%s12766_s16 + $0x10] sm:$0xff]  ;;  %v630_v3 = vadd.f32 %v621_v1, %v620_v0  ;;  %v12800_v4 = vld [vmem:[%s12766_s16 + $0x18] sm:$0xff]  ;;  %v12803_v5 = vld [vmem:[%s12766_s16 + $0x20] sm:$0xff]  ;;  %vm2547_vm2 = vcmask 130048   ;;  %s12300_s1 = smov 64   ;;  %vm2746_vm3 = vcmask 1048064  }
 0x186   : > { %v12806_v6 = vld [vmem:[%s12766_s16 + $0x28] sm:$0xff]  ;;  %v634_v7 = vadd.f32 %v12803_v5, %v12800_v4  ;;  %v10531_v13 = vld [vmem:[#allocation11 + $0x48] ss:$36 sps:$4 sm:$0xff]   ;;  %v10537_v21 = vld [vmem:[#allocation11 + $0xd8] ss:$36 sps:$4 sm:$0xff]   ;;  %s618_s20 = scalar_lea.vmem [#allocation24], %s12763_s21 }
 0x187   : > { %v631_v8 = vadd.f32 %v630_v3, %v622_v2  ;;  %v10526_v10 = vld [vmem:[#allocation11 + $0x4] ss:$36 sps:$4 sm:$0xff]   ;;  %v10529_v12 = vld [vmem:[#allocation11 + $0x4c] ss:$36 sps:$4 sm:$0xff]   ;;  %v10532_v14 = vld [vmem:[#allocation11 + $0x94] ss:$36 sps:$4 sm:$0xff]  }
 0x188   : > { %v635_v9 = vadd.f32 %v634_v7, %v12806_v6  ;;  %v10528_v11 = vld [vmem:[#allocation11] ss:$36 sps:$4 sm:$0xff]   ;;  %2064 = vmatprep.subr.bf16.mxu0 %v10526_v10  ;;  %v10550_v15 = vld [vmem:[#allocation11 + $0x48c] ss:$36 sps:$4 sm:$0xff]   ;;  %v10556_v18 = vld [vmem:[#allocation11 + $0x4d4] ss:$36 sps:$4 sm:$0xff]  }
 0x189   : > { %632 = vadd.xlane.f32.xlu0 %v631_v8  ;;  %2065 = vmatpush1.bf16.msra.mxu0 %v10528_v11  ;;  %v10534_v16 = vld [vmem:[#allocation11 + $0x90] ss:$36 sps:$4 sm:$0xff]   ;;  %v10554_v17 = vld [vmem:[#allocation11 + $0x488] ss:$36 sps:$4 sm:$0xff]   ;;  %v10535_v19 = vld [vmem:[#allocation11 + $0xdc] ss:$36 sps:$4 sm:$0xff]  }
 0x18a   : > { %2066 = vmatprep.subr.bf16.mxu0 %v10529_v12  ;;  %2193 = vmatprep.subr.bf16.mxu1 %v10550_v15  ;;  %v10560_v20 = vld [vmem:[#allocation11 + $0x4d0] ss:$36 sps:$4 sm:$0xff]   ;;  %v10538_v22 = vld [vmem:[#allocation11 + $0x124] ss:$36 sps:$4 sm:$0xff]   ;;  %v10547_v28 = vld [vmem:[#allocation11 + $0x1fc] ss:$36 sps:$4 sm:$0xff]  }
 0x18b   : > { %2194 = vmatpush1.bf16.msra.mxu1 %v10554_v17  ;;  %v10540_v23 = vld [vmem:[#allocation11 + $0x120] ss:$36 sps:$4 sm:$0xff]   ;;  %v10541_v24 = vld [vmem:[#allocation11 + $0x16c] ss:$36 sps:$4 sm:$0xff]   ;;  %v10544_v26 = vld [vmem:[#allocation11 + $0x1b4] ss:$36 sps:$4 sm:$0xff]  }
 0x18c   : > { %2195 = vmatprep.subr.bf16.mxu1 %v10556_v18  ;;  %v10543_v25 = vld [vmem:[#allocation11 + $0x168] ss:$36 sps:$4 sm:$0xff]   ;;  %v10546_v27 = vld [vmem:[#allocation11 + $0x1b0] ss:$36 sps:$4 sm:$0xff]   ;;  %v10549_v29 = vld [vmem:[#allocation11 + $0x1f8] ss:$36 sps:$4 sm:$0xff]  }
 0x18d   : > { %636 = vadd.xlane.f32.xlu0 %v635_v9  ;;  %2067 = vmatpush1.bf16.msra.mxu0 %v10531_v13  ;;  %v10552_v30 = vld [vmem:[#allocation11 + $0x244] ss:$36 sps:$4 sm:$0xff]   ;;  %v10558_v32 = vld [vmem:[#allocation11 + $0x28c] ss:$36 sps:$4 sm:$0xff]   ;;  %v10562_v54 = vld [vmem:[#allocation11 + $0x51c] ss:$36 sps:$4 sm:$0xff]  }
 0x18e   : > { %2068 = vmatprep.subr.bf16.mxu0 %v10532_v14  ;;  %v10555_v31 = vld [vmem:[#allocation11 + $0x240] ss:$36 sps:$4 sm:$0xff]   ;;  %v10561_v53 = vld [vmem:[#allocation11 + $0x288] ss:$36 sps:$4 sm:$0xff]   ;;  %v10564_v55 = vld [vmem:[#allocation11 + $0x2d4] ss:$36 sps:$4 sm:$0xff]  }
 0x18f   : > { %2196 = vmatpush1.bf16.msra.mxu1 %v10560_v20  ;;  %v10566_v56 = vld [vmem:[#allocation11 + $0x518] ss:$36 sps:$4 sm:$0xff]   ;;  %v10567_v57 = vld [vmem:[#allocation11 + $0x2d0] ss:$36 sps:$4 sm:$0xff]   ;;  %v10568_v58 = vld [vmem:[#allocation11 + $0x564] ss:$36 sps:$4 sm:$0xff]   ;;  %v674_v20 = vlaneseq }
 0x190   : > { %2197 = vmatprep.subr.bf16.mxu1 %v10562_v54  ;;  %v10570_v59 = vld [vmem:[#allocation11 + $0x31c] ss:$36 sps:$4 sm:$0xff]   ;;  %v10574_v62 = vld [vmem:[#allocation11 + $0x5ac] ss:$36 sps:$4 sm:$0xff]   ;;  %v10576_v63 = vld [vmem:[#allocation11 + $0x364] ss:$36 sps:$4 sm:$0xff]  }
 0x191   : > { %2069 = vmatpush1.bf16.msra.mxu0 %v10534_v16  ;;  %v10572_v60 = vld [vmem:[#allocation11 + $0x560] ss:$36 sps:$4 sm:$0xff]   ;;  %v10573_v61 = vld [vmem:[#allocation11 + $0x318] ss:$36 sps:$4 sm:$0xff]   ;;  %v10582_v3 = vld [vmem:[#allocation11 + $0x3ac] ss:$36 sps:$4 sm:$0xff]  }
 0x192   : > { %2070 = vmatprep.subr.bf16.mxu0 %v10535_v19  ;;  %v10588_v7 = vld [vmem:[#allocation11 + $0x3f4] ss:$36 sps:$4 sm:$0xff]   ;;  %v10592_v10 = vld [vmem:[#allocation11 + $0x684] ss:$36 sps:$4 sm:$0xff]   ;;  %v12297_v11 = vmov 0   ;;  %s8816_s29 = sshll.u32 %s618_s20, 4  ;;  %s13263_s29 = int_to_ptr.vmem [resolvable:$true] %s8816_s29 }
 0x193   : > { %2198 = vmatpush1.bf16.msra.mxu1 %v10566_v56  ;;  %v10590_v8 = vld [vmem:[#allocation11 + $0x638] ss:$36 sps:$4 sm:$0xff]   ;;  %v10591_v9 = vld [vmem:[#allocation11 + $0x3f0] ss:$36 sps:$4 sm:$0xff]   ;;  %2225 = vmatprep.mubr.bf16.mxu1 %v12297_v11  ;;  %v10596_v13 = vld [vmem:[#allocation11 + $0x680] ss:$36 sps:$4 sm:$0xff]  }
 0x194   : > { %2199 = vmatprep.subr.bf16.mxu1 %v10568_v58  ;;  %v10594_v12 = vld [vmem:[#allocation11 + $0x43c] ss:$36 sps:$4 sm:$0xff]   ;;  %v10603_v16 = vld [vmem:[#allocation11 + $0x484] ss:$36 sps:$4 sm:$0xff]   ;;  %s10342_s15 = smul.u32 768, %s13368_s13  ;;  %s13383_s17 = sld [smem:[#allocation41_spill]] }
 0x195   : > { %2071 = vmatpush1.bf16.msra.mxu0 %v10537_v21  ;;  %v10597_v14 = vld [vmem:[#allocation11 + $0x438] ss:$36 sps:$4 sm:$0xff]   ;;  %v10601_v56 = vld [vmem:[#allocation11 + $0x480] ss:$36 sps:$4 sm:$0xff]   ;;  %s13275_s13 = scalar_lea.sflag [#allocation5], %s530_s25  ;;  %s12178_s2 = scalar_lea.vmem %s13263_s29, 768 }
 0x196   : > { %2072 = vmatprep.subr.bf16.mxu0 %v10538_v22  ;;  %v10600_v15 = vld [vmem:[#allocation11 + $0x1c] ss:$36 sps:$4 sm:$0xff]   ;;  %p12179_p0 = scmp.ne.s32.totalorder %s13263_s29, %s12178_s2  ;;  %p13384_p6 = scmp.ne.s32.totalorder %s13362_s23, 0 }
 0x197   : > { %2200 = vmatpush1.bf16.msra.mxu1 %v10572_v60  ;;  %v10606_v60 = vld [vmem:[#allocation11 + $0x64] ss:$36 sps:$4 sm:$0xff]   ;;  %s12301_s21 = smov [#allocation24]  }
 0x198   : > { %2201 = vmatprep.subr.bf16.mxu1 %v10574_v62  ;;  %v10604_v62 = vld [vmem:[#allocation11 + $0x60] ss:$36 sps:$4 sm:$0xff]   ;;  %p12180_p10 = pnand %p12179_p0, %p13384_p6  ;;  %s12182_s19 = sshll.u32 %s12301_s21, 4  ;;  %s12183_s19 = int_to_ptr.vmem [resolvable:$false] %s12182_s19 }
 0x199   : > { %2073 = vmatpush1.bf16.msra.mxu0 %v10540_v23  ;;  %p12185_p12 = scmp.lt.s32.totalorder %s13263_s29, %s12183_s19 }
 0x19a   : > { %2074 = vmatprep.subr.bf16.mxu0 %v10541_v24  ;;  %v12839_v24 = vshrl.u32 %v674_v20, 7  ;;  %v10634_v20 = vld [vmem:[#allocation11 + $0x1c8] ss:$36 sps:$4 sm:$0xff]   ;;  %s13271_s22 = scalar_lea.hbm %s13383_s17, %s10342_s15  ;;  %p12181_p11 = pneg %p12180_p10 }
 0x19d   : > { %2075 = vmatpush1.bf16.msra.mxu0 %v10543_v25  ;;  %v628_v25 = vld [vmem:[#allocation8] sm:$0x7] }
 0x19e   : > { %2076 = vmatprep.subr.bf16.mxu0 %v10544_v26  ;;  %v12842_v26 = vsub.s32 1, %v12839_v24 }
 0x1a1   : > { %2077 = vmatpush1.bf16.msra.mxu0 %v10546_v27  ;;  %v12845_v27 = vsub.s32 2, %v12839_v24 }
 0x1a2   : > { %2078 = vmatprep.subr.bf16.mxu0 %v10547_v28  ;;  %v12848_v28 = vsub.s32 0, %v12839_v24 }
 0x1a5   : > { %2079 = vmatpush1.bf16.msra.mxu0 %v10549_v29 }
 0x1a6   : > { %2080 = vmatprep.subr.bf16.mxu0 %v10552_v30  ;;  %v629_v30 = vld [vmem:[#allocation9] sm:$0x7] }
 0x1a9   : > { %2081 = vmatpush1.bf16.msra.mxu0 %v10555_v31 }
 0x1aa   : > { %2082 = vmatprep.subr.bf16.mxu0 %v10558_v32  ;;  %v681_v32 = vrot.slane %v628_v25, %v12842_v26 }
 0x1ad   : > { %2083 = vmatpush1.bf16.msra.mxu0 %v10561_v53 }
 0x1ae   : > { %2084 = vmatprep.subr.bf16.mxu0 %v10564_v55 }
 0x1b1   : > { %2085 = vmatpush1.bf16.msra.mxu0 %v10567_v57 }
 0x1b2   : > { %2086 = vmatprep.subr.bf16.mxu0 %v10570_v59 }
 0x1b5   : > { %2087 = vmatpush1.bf16.msra.mxu0 %v10573_v61 }
 0x1b6   : > { %2088 = vmatprep.subr.bf16.mxu0 %v10576_v63  ;;  %v10609_v63 = vld [vmem:[#allocation11 + $0x4cc] ss:$36 sps:$4 sm:$0xff]  }
 0x216   : > { %v633_v33 = vpop.xlane.xlu0 %632 }
 0x217   : > { %v639_v34 = vmul.f32 0.0026041667, %v633_v33 }
 0x219   : > { %v12811_v35 = vsub.f32 %v620_v0, %v639_v34  ;;  %v12813_v36 = vsub.f32 %v621_v1, %v639_v34  ;;  %v12815_v37 = vsub.f32 %v622_v2, %v639_v34  ;;  %v10578_v0 = vld [vmem:[#allocation11 + $0x5a8] ss:$36 sps:$4 sm:$0xff]   ;;  %v10579_v1 = vld [vmem:[#allocation11 + $0x360] ss:$36 sps:$4 sm:$0xff]   ;;  %v10580_v2 = vld [vmem:[#allocation11 + $0x5f4] ss:$36 sps:$4 sm:$0xff]   ;;  %v685_v34 = vrot.slane %v628_v25, %v12845_v27 }
 0x21a   : > { %v637_v38 = vpop.xlane.xlu0 %636  ;;  %2202 = vmatpush1.bf16.msra.mxu1 %v10578_v0  ;;  %2089 = vmatpush1.bf16.msra.mxu0 %v10579_v1  ;;  %v10607_v0 = vld [vmem:[#allocation11 + $0x4c8] ss:$36 sps:$4 sm:$0xff]  }
 0x21b   : > { %v640_v39 = vmul.f32 0.0026041667, %v637_v38  ;;  %v647_v40 = vmul.f32 %v12811_v35, %v12811_v35  ;;  %v648_v41 = vmul.f32 %v12813_v36, %v12813_v36  ;;  %v649_v42 = vmul.f32 %v12815_v37, %v12815_v37  ;;  %2203 = vmatprep.subr.bf16.mxu1 %v10580_v2  ;;  %2090 = vmatprep.subr.bf16.mxu0 %v10582_v3  ;;  %v10612_v1 = vld [vmem:[#allocation11 + $0xac] ss:$36 sps:$4 sm:$0xff]   ;;  %v10615_v2 = vld [vmem:[#allocation11 + $0x514] ss:$36 sps:$4 sm:$0xff]  }
 0x21c   : > { %v10610_v3 = vld [vmem:[#allocation11 + $0xa8] ss:$36 sps:$4 sm:$0xff]  }
 0x21d   : > { %v12824_v43 = vsub.f32 %v12800_v4, %v640_v39  ;;  %v12827_v44 = vsub.f32 %v12803_v5, %v640_v39  ;;  %v12830_v45 = vsub.f32 %v12806_v6, %v640_v39  ;;  %v653_v46 = vadd.f32 %v648_v41, %v647_v40  ;;  %v10584_v4 = vld [vmem:[#allocation11 + $0x5f0] ss:$36 sps:$4 sm:$0xff]   ;;  %v10585_v5 = vld [vmem:[#allocation11 + $0x3a8] ss:$36 sps:$4 sm:$0xff]   ;;  %v10586_v6 = vld [vmem:[#allocation11 + $0x63c] ss:$36 sps:$4 sm:$0xff]  }
 0x21e   : > { %2204 = vmatpush1.bf16.msra.mxu1 %v10584_v4  ;;  %2091 = vmatpush1.bf16.msra.mxu0 %v10585_v5  ;;  %v677_v39 = vrot.slane %v628_v25, %v12848_v28  ;;  %v703_v41 = vrot.slane %v629_v30, %v12842_v26  ;;  %v10613_v4 = vld [vmem:[#allocation11 + $0x510] ss:$36 sps:$4 sm:$0xff]  }
 0x21f   : > { %v654_v47 = vadd.f32 %v653_v46, %v649_v42  ;;  %v650_v48 = vmul.f32 %v12824_v43, %v12824_v43  ;;  %v651_v49 = vmul.f32 %v12827_v44, %v12827_v44  ;;  %v652_v50 = vmul.f32 %v12830_v45, %v12830_v45  ;;  %2205 = vmatprep.subr.bf16.mxu1 %v10586_v6  ;;  %v10618_v5 = vld [vmem:[#allocation11 + $0xf4] ss:$36 sps:$4 sm:$0xff]   ;;  %v10621_v6 = vld [vmem:[#allocation11 + $0x55c] ss:$36 sps:$4 sm:$0xff]  }
 0x220   : > { %2092 = vmatprep.subr.bf16.mxu0 %v10588_v7  ;;  %v707_v42 = vrot.slane %v629_v30, %v12845_v27  ;;  %v10616_v7 = vld [vmem:[#allocation11 + $0xf0] ss:$36 sps:$4 sm:$0xff]  }
 0x221   : > { %655 = vadd.xlane.f32.xlu1 %v654_v47  ;;  %v657_v51 = vadd.f32 %v651_v49, %v650_v48  ;;  %v10640_v25 = vld [vmem:[#allocation11 + $0x210] ss:$36 sps:$4 sm:$0xff]  }
 0x222   : > { %2206 = vmatpush1.bf16.msra.mxu1 %v10590_v8  ;;  %2093 = vmatpush1.bf16.msra.mxu0 %v10591_v9  ;;  %v10619_v8 = vld [vmem:[#allocation11 + $0x558] ss:$36 sps:$4 sm:$0xff]  }
 0x223   : > { %v658_v52 = vadd.f32 %v657_v51, %v652_v50  ;;  %2207 = vmatprep.subr.bf16.mxu1 %v10592_v10  ;;  %2094 = vmatprep.subr.bf16.mxu0 %v10594_v12  ;;  %v699_v50 = vrot.slane %v629_v30, %v12848_v28  ;;  %v10624_v9 = vld [vmem:[#allocation11 + $0x13c] ss:$36 sps:$4 sm:$0xff]   ;;  %v10627_v10 = vld [vmem:[#allocation11 + $0x5a4] ss:$36 sps:$4 sm:$0xff]  }
 0x224   : > { %v10622_v12 = vld [vmem:[#allocation11 + $0x138] ss:$36 sps:$4 sm:$0xff]  }
 0x225   : > { %659 = vadd.xlane.f32.xlu1 %v658_v52  ;;  %v10598_v52 = vld [vmem:[#allocation11 + $0x18] ss:$36 sps:$4 sm:$0xff]  }
 0x226   : > { %2208 = vmatpush1.bf16.msra.mxu1 %v10596_v13  ;;  %2095 = vmatpush1.bf16.msra.mxu0 %v10597_v14  ;;  %v10625_v13 = vld [vmem:[#allocation11 + $0x5a0] ss:$36 sps:$4 sm:$0xff]  }
 0x227   : > { %2322 = vmatprep.subr.bf16.mxu1 %v10600_v15  ;;  %2107 = vmatprep.subr.bf16.mxu0 %v10603_v16  ;;  %v10630_v14 = vld [vmem:[#allocation11 + $0x184] ss:$36 sps:$4 sm:$0xff]   ;;  %v10633_v15 = vld [vmem:[#allocation11 + $0x5ec] ss:$36 sps:$4 sm:$0xff]   ;;  %v10648_v30 = vld [vmem:[#allocation11 + $0x25c] ss:$36 sps:$4 sm:$0xff]  }
 0x228   : > { %v10628_v16 = vld [vmem:[#allocation11 + $0x180] ss:$36 sps:$4 sm:$0xff]  }
 0x2ae   : > { %v656_v17 = vpop.xlane.xlu1 %655 }
 0x2af   : > { %v661_v18 = vmul.f32 0.0026041667, %v656_v17  ;;  %v10631_v17 = vld [vmem:[#allocation11 + $0x5e8] ss:$36 sps:$4 sm:$0xff]  }
 0x2b1   : > { %v663_v19 = vadd.f32 1e-05, %v661_v18  ;;  %v10636_v18 = vld [vmem:[#allocation11 + $0x1cc] ss:$36 sps:$4 sm:$0xff]  }
 0x2b2   : > { %v660_v21 = vpop.xlane.xlu1 %659 }
 0x2b3   : > { %11750 = vrsqrt.f32 %v663_v19  ;;  %v662_v22 = vmul.f32 0.0026041667, %v660_v21  ;;  %v10639_v19 = vld [vmem:[#allocation11 + $0x634] ss:$36 sps:$4 sm:$0xff]  }
 0x2b4   : > { %v10637_v21 = vld [vmem:[#allocation11 + $0x630] ss:$36 sps:$4 sm:$0xff]  }
 0x2b5   : > { %v664_v23 = vadd.f32 1e-05, %v662_v22  ;;  %v10642_v22 = vld [vmem:[#allocation11 + $0x214] ss:$36 sps:$4 sm:$0xff]  }
 0x2b7   : > { %11752 = vrsqrt.f32 %v664_v23  ;;  %v10645_v23 = vld [vmem:[#allocation11 + $0x67c] ss:$36 sps:$4 sm:$0xff]  }
 0x2bd   : > { %v11751_v29 = vpop.eup %11750 }
 0x2be   : > { %v668_v31 = vmul.f32 %v11751_v29, %v12813_v36  ;;  %v669_v33 = vmul.f32 %v11751_v29, %v12815_v37  ;;  %v667_v38 = vmul.f32 %v11751_v29, %v12811_v35  ;;  %v10643_v29 = vld [vmem:[#allocation11 + $0x678] ss:$36 sps:$4 sm:$0xff]  }
 0x2c0   : > { %v690_v47 = vmul.f32 %v681_v32, %v668_v31  ;;  %v691_v48 = vmul.f32 %v685_v34, %v669_v33  ;;  %v689_v37 = vmul.f32 %v677_v39, %v667_v38  ;;  %v10651_v31 = vld [vmem:[#allocation11 + $0xc] ss:$36 sps:$4 sm:$0xff]   ;;  %v10652_v38 = vld [vmem:[#allocation11 + $0x2a0] ss:$36 sps:$4 sm:$0xff]  }
 0x2c1   : > { %v11753_v40 = vpop.eup %11752  ;;  %v10649_v33 = vld [vmem:[#allocation11 + $0x8] ss:$36 sps:$4 sm:$0xff]  }
 0x2c2   : > { %v671_v46 = vmul.f32 %v11753_v40, %v12827_v44  ;;  %v672_v36 = vmul.f32 %v11753_v40, %v12830_v45  ;;  %v670_v49 = vmul.f32 %v11753_v40, %v12824_v43  ;;  %v712_v54 = vadd.f32 %v703_v41, %v690_v47  ;;  %v10655_v40 = vld [vmem:[#allocation11 + $0x50] ss:$36 sps:$4 sm:$0xff]   ;;  %v10661_v47 = vld [vmem:[#allocation11 + $0x98] ss:$36 sps:$4 sm:$0xff]  }
 0x2c3   : > { %v713_v57 = vadd.f32 %v707_v42, %v691_v48  ;;  %v711_v59 = vadd.f32 %v699_v50, %v689_v37  ;;  %v10669_v48 = vld [vmem:[#allocation11 + $0xe4] ss:$36 sps:$4 sm:$0xff]  }
 0x2c4   : > { %v693_v51 = vmul.f32 %v681_v32, %v671_v46  ;;  %v694_v35 = vmul.f32 %v685_v34, %v672_v36  ;;  %v692_v53 = vmul.f32 %v677_v39, %v670_v49  ;;  %v10646_v32 = vld [vmem:[#allocation11 + $0x258] ss:$36 sps:$4 sm:$0xff]   ;;  %v10654_v34 = vld [vmem:[#allocation11 + $0x2a4] ss:$36 sps:$4 sm:$0xff]   ;;  %v10664_v49 = vld [vmem:[#allocation11 + $0x330] ss:$36 sps:$4 sm:$0xff]  }
 0x2c5   : > { %v10657_v39 = vld [vmem:[#allocation11 + $0x54] ss:$36 sps:$4 sm:$0xff]   ;;  %v10658_v46 = vld [vmem:[#allocation11 + $0x2e8] ss:$36 sps:$4 sm:$0xff]   ;;  %v10667_v37 = vld [vmem:[#allocation11 + $0xe0] ss:$36 sps:$4 sm:$0xff]  }
 0x2c6   : > { %v715_v55 = vadd.f32 %v703_v41, %v693_v51  ;;  %v716_v58 = vadd.f32 %v707_v42, %v694_v35  ;;  %v714_v44 = vadd.f32 %v699_v50, %v692_v53  ;;  %v10660_v41 = vld [vmem:[#allocation11 + $0x2ec] ss:$36 sps:$4 sm:$0xff]   ;;  %v10663_v42 = vld [vmem:[#allocation11 + $0x9c] ss:$36 sps:$4 sm:$0xff]   ;;  %v10666_v36 = vld [vmem:[#allocation11 + $0x334] ss:$36 sps:$4 sm:$0xff]  }
 0x2c7   : > { %v10672_v50 = vld [vmem:[#allocation11 + $0x37c] ss:$36 sps:$4 sm:$0xff]   ;;  %v10675_v51 = vld [vmem:[#allocation11 + $0x12c] ss:$36 sps:$4 sm:$0xff]   ;;  %v10678_v53 = vld [vmem:[#allocation11 + $0x3c4] ss:$36 sps:$4 sm:$0xff]  }
 0x2c8   : > { %v12862_v61 = vpack.c.bf16 %v715_v55, %v712_v54  ;;  %v12864_v45 = vpack.c.bf16 %v716_v58, %v713_v57  ;;  %v12866_v43 = vpack.c.bf16 %v714_v44, %v711_v59  ;;  %v10670_v35 = vld [vmem:[#allocation11 + $0x378] ss:$36 sps:$4 sm:$0xff]   ;;  %v10676_v55 = vld [vmem:[#allocation11 + $0x3c0] ss:$36 sps:$4 sm:$0xff]   ;;  %v10684_v57 = vld [vmem:[#allocation11 + $0x40c] ss:$36 sps:$4 sm:$0xff]  }
 0x2c9   : > { %v10681_v54 = vld [vmem:[#allocation11 + $0x174] ss:$36 sps:$4 sm:$0xff]   ;;  %v10687_v58 = vld [vmem:[#allocation11 + $0x1bc] ss:$36 sps:$4 sm:$0xff]   ;;  %v10682_v59 = vld [vmem:[#allocation11 + $0x408] ss:$36 sps:$4 sm:$0xff]  }
 0x2ca   : > { %2096 = vmatprep.mubr.bf16.mxu0 %v12862_v61  ;;  %2226 = vmatmul.mubr.bf16.vlgmr.msra.gmra.mrb[0].mxu1 %v12864_v45  ;;  %v10685_v44 = vld [vmem:[#allocation11 + $0x1b8] ss:$36 sps:$4 sm:$0xff]  }
 0x2cb   : > { %2323 = vmatpush1.bf16.msra.mxu1 %v10598_v52  ;;  %2097 = vmatmul.mubr.bf16.vlgmr.msra.gmra.mrb[0].mxu0 %v12866_v43  ;;  %v10673_v52 = vld [vmem:[#allocation11 + $0x128] ss:$36 sps:$4 sm:$0xff]  }
 0x2cc   : > { %2108 = vmatpush1.bf16.msra.mxu0 %v10601_v56  ;;  %2354 = vmatprep.mubr.bf16.mxu1 %v12862_v61  ;;  %v10679_v56 = vld [vmem:[#allocation11 + $0x170] ss:$36 sps:$4 sm:$0xff]  }
 0x2cd   : > { %2324 = vmatprep.subr.bf16.mxu1 %v10606_v60  ;;  %2109 = vmatprep.subr.bf16.mxu0 %v10609_v63  ;;  %v10690_v60 = vld [vmem:[#allocation11 + $0x454] ss:$36 sps:$4 sm:$0xff]  }
 0x2ce   : > { %2139 = vmatprep.mubr.bf16.mxu0 %v12297_v11  ;;  %v10688_v63 = vld [vmem:[#allocation11 + $0x450] ss:$36 sps:$4 sm:$0xff]  }
 0x2cf   : > { %2325 = vmatpush1.bf16.msra.mxu1 %v10604_v62  ;;  %v10693_v62 = vld [vmem:[#allocation11 + $0x204] ss:$36 sps:$4 sm:$0xff]  }
 0x2d0   : > { %2110 = vmatpush1.bf16.msra.mxu0 %v10607_v0  ;;  %2326 = vmatprep.subr.bf16.mxu1 %v10612_v1  ;;  %v10691_v0 = vld [vmem:[#allocation11 + $0x200] ss:$36 sps:$4 sm:$0xff]  }
 0x2d1   : > { %2111 = vmatprep.subr.bf16.mxu0 %v10615_v2  ;;  %v10696_v1 = vld [vmem:[#allocation11 + $0x49c] ss:$36 sps:$4 sm:$0xff]   ;;  %v10699_v2 = vld [vmem:[#allocation11 + $0x24c] ss:$36 sps:$4 sm:$0xff]  }
 0x2d3   : > { %2327 = vmatpush1.bf16.msra.mxu1 %v10610_v3  ;;  %v10694_v3 = vld [vmem:[#allocation11 + $0x498] ss:$36 sps:$4 sm:$0xff]  }
 0x2d4   : > { %2112 = vmatpush1.bf16.msra.mxu0 %v10613_v4  ;;  %2328 = vmatprep.subr.bf16.mxu1 %v10618_v5  ;;  %v10697_v4 = vld [vmem:[#allocation11 + $0x248] ss:$36 sps:$4 sm:$0xff]  }
 0x2d5   : > { %2113 = vmatprep.subr.bf16.mxu0 %v10621_v6  ;;  %v10702_v5 = vld [vmem:[#allocation11 + $0x4e4] ss:$36 sps:$4 sm:$0xff]  }
 0x2d6   : > { %v10700_v6 = vld [vmem:[#allocation11 + $0x4e0] ss:$36 sps:$4 sm:$0xff]  }
 0x2d7   : > { %2329 = vmatpush1.bf16.msra.mxu1 %v10616_v7  ;;  %v10705_v7 = vld [vmem:[#allocation11 + $0x294] ss:$36 sps:$4 sm:$0xff]  }
 0x2d8   : > { %2114 = vmatpush1.bf16.msra.mxu0 %v10619_v8  ;;  %2330 = vmatprep.subr.bf16.mxu1 %v10624_v9  ;;  %v10703_v8 = vld [vmem:[#allocation11 + $0x290] ss:$36 sps:$4 sm:$0xff]  }
 0x2d9   : > { %2115 = vmatprep.subr.bf16.mxu0 %v10627_v10  ;;  %v10708_v9 = vld [vmem:[#allocation11 + $0x52c] ss:$36 sps:$4 sm:$0xff]  }
 0x2da   : > { %v10706_v10 = vld [vmem:[#allocation11 + $0x528] ss:$36 sps:$4 sm:$0xff]  }
 0x2db   : > { %2331 = vmatpush1.bf16.msra.mxu1 %v10622_v12  ;;  %v10711_v12 = vld [vmem:[#allocation11 + $0x2dc] ss:$36 sps:$4 sm:$0xff]  }
 0x2dc   : > { %2116 = vmatpush1.bf16.msra.mxu0 %v10625_v13  ;;  %2332 = vmatprep.subr.bf16.mxu1 %v10630_v14  ;;  %v10709_v13 = vld [vmem:[#allocation11 + $0x2d8] ss:$36 sps:$4 sm:$0xff]  }
 0x2dd   : > { %2117 = vmatprep.subr.bf16.mxu0 %v10633_v15  ;;  %v10714_v14 = vld [vmem:[#allocation11 + $0x574] ss:$36 sps:$4 sm:$0xff]  }
 0x2de   : > { %v10712_v15 = vld [vmem:[#allocation11 + $0x570] ss:$36 sps:$4 sm:$0xff]  }
 0x2df   : > { %2333 = vmatpush1.bf16.msra.mxu1 %v10628_v16  ;;  %v10717_v16 = vld [vmem:[#allocation11 + $0x324] ss:$36 sps:$4 sm:$0xff]  }
 0x2e0   : > { %2118 = vmatpush1.bf16.msra.mxu0 %v10631_v17  ;;  %2334 = vmatprep.subr.bf16.mxu1 %v10636_v18  ;;  %v10715_v17 = vld [vmem:[#allocation11 + $0x320] ss:$36 sps:$4 sm:$0xff]  }
 0x2e1   : > { %2119 = vmatprep.subr.bf16.mxu0 %v10639_v19  ;;  %v10720_v18 = vld [vmem:[#allocation11 + $0x5bc] ss:$36 sps:$4 sm:$0xff]  }
 0x2e2   : > { %v10718_v19 = vld [vmem:[#allocation11 + $0x5b8] ss:$36 sps:$4 sm:$0xff]  }
 0x2e3   : > { %2335 = vmatpush1.bf16.msra.mxu1 %v10634_v20  ;;  %v10723_v20 = vld [vmem:[#allocation11 + $0x36c] ss:$36 sps:$4 sm:$0xff]  }
 0x2e4   : > { %2120 = vmatpush1.bf16.msra.mxu0 %v10637_v21  ;;  %2336 = vmatprep.subr.bf16.mxu1 %v10642_v22  ;;  %v10721_v21 = vld [vmem:[#allocation11 + $0x368] ss:$36 sps:$4 sm:$0xff]  }
 0x2e5   : > { %2121 = vmatprep.subr.bf16.mxu0 %v10645_v23  ;;  %v10726_v22 = vld [vmem:[#allocation11 + $0x604] ss:$36 sps:$4 sm:$0xff]  }
 0x2e6   : > { %v10724_v23 = vld [vmem:[#allocation11 + $0x600] ss:$36 sps:$4 sm:$0xff]  }
 0x2e7   : > { %2337 = vmatpush1.bf16.msra.mxu1 %v10640_v25  ;;  %v10729_v25 = vld [vmem:[#allocation11 + $0x3b4] ss:$36 sps:$4 sm:$0xff]  }
 0x2e8   : > { %2122 = vmatpush1.bf16.msra.mxu0 %v10643_v29  ;;  %2338 = vmatprep.subr.bf16.mxu1 %v10648_v30  ;;  %v10727_v29 = vld [vmem:[#allocation11 + $0x3b0] ss:$36 sps:$4 sm:$0xff]  }
 0x2e9   : > { %2150 = vmatprep.subr.bf16.mxu0 %v10651_v31  ;;  %v10732_v30 = vld [vmem:[#allocation11 + $0x64c] ss:$36 sps:$4 sm:$0xff]   ;;  %v10735_v31 = vld [vmem:[#allocation11 + $0x3fc] ss:$36 sps:$4 sm:$0xff]  }
 0x2eb   : > { %2140 = vmatmul.mubr.bf16.vlgmr.msra.gmra.mrb[0].mxu0 %v12864_v45  ;;  %2339 = vmatpush1.bf16.msra.mxu1 %v10646_v32  ;;  %v10730_v32 = vld [vmem:[#allocation11 + $0x648] ss:$36 sps:$4 sm:$0xff]  }
 0x2ec   : > { %2151 = vmatpush1.bf16.msra.mxu0 %v10649_v33  ;;  %2182 = vmatprep.mubr.bf16.mxu0 %v12862_v61  ;;  %v10733_v33 = vld [vmem:[#allocation11 + $0x3f8] ss:$36 sps:$4 sm:$0xff]  }
 0x2ed   : > { %2340 = vmatprep.subr.bf16.mxu1 %v10654_v34  ;;  %2152 = vmatprep.subr.bf16.mxu0 %v10657_v39  ;;  %v10738_v34 = vld [vmem:[#allocation11 + $0x694] ss:$36 sps:$4 sm:$0xff]  }
 0x2ee   : > { %v10736_v39 = vld [vmem:[#allocation11 + $0x690] ss:$36 sps:$4 sm:$0xff]  }
 0x2ef   : > { %2341 = vmatpush1.bf16.msra.mxu1 %v10652_v38  ;;  %v10741_v38 = vld [vmem:[#allocation11 + $0x444] ss:$36 sps:$4 sm:$0xff]  }
 0x2f0   : > { %2153 = vmatpush1.bf16.msra.mxu0 %v10655_v40  ;;  %2342 = vmatprep.subr.bf16.mxu1 %v10660_v41  ;;  %v10739_v40 = vld [vmem:[#allocation11 + $0x440] ss:$36 sps:$4 sm:$0xff]   ;;  %v10744_v41 = vld [vmem:[#allocation11 + $0x14] ss:$36 sps:$4 sm:$0xff]  }
 0x2f1   : > { %2154 = vmatprep.subr.bf16.mxu0 %v10663_v42  ;;  %v10745_v42 = vld [vmem:[#allocation11 + $0x4a0] ss:$36 sps:$4 sm:$0xff]  }
 0x2f3   : > { %2343 = vmatpush1.bf16.msra.mxu1 %v10658_v46  ;;  %v12298_v46 = vmov 0.0  }
 0x2f4   : > { %2155 = vmatpush1.bf16.msra.mxu0 %v10661_v47  ;;  %2344 = vmatprep.subr.bf16.mxu1 %v10666_v36  ;;  %v10742_v47 = vld [vmem:[#allocation11 + $0x10] ss:$36 sps:$4 sm:$0xff]   ;;  %v10748_v36 = vld [vmem:[#allocation11 + $0x5c] ss:$36 sps:$4 sm:$0xff]  }
 0x2f5   : > { %2156 = vmatprep.subr.bf16.mxu0 %v10669_v48  ;;  %v10749_v48 = vld [vmem:[#allocation11 + $0x4e8] ss:$36 sps:$4 sm:$0xff]  }
 0x2f7   : > { %2345 = vmatpush1.bf16.msra.mxu1 %v10664_v49  ;;  %v10746_v49 = vld [vmem:[#allocation11 + $0x58] ss:$36 sps:$4 sm:$0xff]  }
 0x2f8   : > { %2157 = vmatpush1.bf16.msra.mxu0 %v10667_v37  ;;  %2346 = vmatprep.subr.bf16.mxu1 %v10672_v50  ;;  %v10752_v37 = vld [vmem:[#allocation11 + $0xa4] ss:$36 sps:$4 sm:$0xff]   ;;  %v10753_v50 = vld [vmem:[#allocation11 + $0x530] ss:$36 sps:$4 sm:$0xff]  }
 0x2f9   : > { %2158 = vmatprep.subr.bf16.mxu0 %v10675_v51  ;;  %v10750_v51 = vld [vmem:[#allocation11 + $0xa0] ss:$36 sps:$4 sm:$0xff]  }
 0x2fb   : > { %2347 = vmatpush1.bf16.msra.mxu1 %v10670_v35  ;;  %v10756_v35 = vld [vmem:[#allocation11 + $0xec] ss:$36 sps:$4 sm:$0xff]  }
 0x2fc   : > { %2159 = vmatpush1.bf16.msra.mxu0 %v10673_v52  ;;  %2348 = vmatprep.subr.bf16.mxu1 %v10678_v53  ;;  %v10757_v52 = vld [vmem:[#allocation11 + $0x578] ss:$36 sps:$4 sm:$0xff]   ;;  %v10754_v53 = vld [vmem:[#allocation11 + $0xe8] ss:$36 sps:$4 sm:$0xff]  }
 0x2fd   : > { %2160 = vmatprep.subr.bf16.mxu0 %v10681_v54  ;;  %v10760_v54 = vld [vmem:[#allocation11 + $0x134] ss:$36 sps:$4 sm:$0xff]  }
 0x2ff   : > { %2349 = vmatpush1.bf16.msra.mxu1 %v10676_v55  ;;  %v10761_v55 = vld [vmem:[#allocation11 + $0x5c0] ss:$36 sps:$4 sm:$0xff]  }
 0x300   : > { %2161 = vmatpush1.bf16.msra.mxu0 %v10679_v56  ;;  %2350 = vmatprep.subr.bf16.mxu1 %v10684_v57  ;;  %v10758_v56 = vld [vmem:[#allocation11 + $0x130] ss:$36 sps:$4 sm:$0xff]   ;;  %v10764_v57 = vld [vmem:[#allocation11 + $0x17c] ss:$36 sps:$4 sm:$0xff]  }
 0x301   : > { %2162 = vmatprep.subr.bf16.mxu0 %v10687_v58  ;;  %v10765_v58 = vld [vmem:[#allocation11 + $0x608] ss:$36 sps:$4 sm:$0xff]  }
 0x303   : > { %2351 = vmatpush1.bf16.msra.mxu1 %v10682_v59  ;;  %v10762_v59 = vld [vmem:[#allocation11 + $0x178] ss:$36 sps:$4 sm:$0xff]  }
 0x304   : > { %2163 = vmatpush1.bf16.msra.mxu0 %v10685_v44  ;;  %2352 = vmatprep.subr.bf16.mxu1 %v10690_v60  ;;  %v10768_v44 = vld [vmem:[#allocation11 + $0x1c4] ss:$36 sps:$4 sm:$0xff]   ;;  %v10769_v60 = vld [vmem:[#allocation11 + $0x650] ss:$36 sps:$4 sm:$0xff]  }
 0x305   : > { %2164 = vmatprep.subr.bf16.mxu0 %v10693_v62  ;;  %v10766_v62 = vld [vmem:[#allocation11 + $0x1c0] ss:$36 sps:$4 sm:$0xff]  }
 0x307   : > { %2353 = vmatpush1.bf16.msra.mxu1 %v10688_v63  ;;  %v10772_v63 = vld [vmem:[#allocation11 + $0x20c] ss:$36 sps:$4 sm:$0xff]  }
 0x308   : > { %2165 = vmatpush1.bf16.msra.mxu0 %v10691_v0  ;;  %2365 = vmatprep.subr.bf16.mxu1 %v10696_v1  ;;  %v10773_v0 = vld [vmem:[#allocation11 + $0x698] ss:$36 sps:$4 sm:$0xff]   ;;  %v10770_v1 = vld [vmem:[#allocation11 + $0x208] ss:$36 sps:$4 sm:$0xff]  }
 0x309   : > { %2166 = vmatprep.subr.bf16.mxu0 %v10699_v2  ;;  %v10776_v2 = vld [vmem:[#allocation11 + $0x254] ss:$36 sps:$4 sm:$0xff]  }
 0x30a   : > { %2355 = vmatmul.mubr.bf16.vlgmr.msra.gmra.mrb[4].mxu1 %v12866_v43 }
 0x30b   : > { %2366 = vmatpush1.bf16.msra.mxu1 %v10694_v3  ;;  %2397 = vmatprep.mubr.bf16.mxu1 %v12297_v11  ;;  %v10774_v3 = vld [vmem:[#allocation11 + $0x250] ss:$36 sps:$4 sm:$0xff]  }
 0x30c   : > { %2167 = vmatpush1.bf16.msra.mxu0 %v10697_v4  ;;  %2367 = vmatprep.subr.bf16.mxu1 %v10702_v5  ;;  %v10779_v4 = vld [vmem:[#allocation11 + $0x29c] ss:$36 sps:$4 sm:$0xff]  }
 0x30d   : > { %2168 = vmatprep.subr.bf16.mxu0 %v10705_v7  ;;  %v10777_v5 = vld [vmem:[#allocation11 + $0x298] ss:$36 sps:$4 sm:$0xff]   ;;  %v10780_v7 = vld [vmem:[#allocation11 + $0x2e0] ss:$36 sps:$4 sm:$0xff]  }
 0x30f   : > { %2368 = vmatpush1.bf16.msra.mxu1 %v10700_v6  ;;  %v10782_v6 = vld [vmem:[#allocation11 + $0x2e4] ss:$36 sps:$4 sm:$0xff]  }
 0x310   : > { %2169 = vmatpush1.bf16.msra.mxu0 %v10703_v8  ;;  %2369 = vmatprep.subr.bf16.mxu1 %v10708_v9  ;;  %v10785_v8 = vld [vmem:[#allocation11 + $0x32c] ss:$36 sps:$4 sm:$0xff]  }
 0x311   : > { %2170 = vmatprep.subr.bf16.mxu0 %v10711_v12  ;;  %v10783_v9 = vld [vmem:[#allocation11 + $0x328] ss:$36 sps:$4 sm:$0xff]   ;;  %v10786_v12 = vld [vmem:[#allocation11 + $0x370] ss:$36 sps:$4 sm:$0xff]  }
 0x313   : > { %2370 = vmatpush1.bf16.msra.mxu1 %v10706_v10  ;;  %v10788_v10 = vld [vmem:[#allocation11 + $0x374] ss:$36 sps:$4 sm:$0xff]  }
 0x314   : > { %2171 = vmatpush1.bf16.msra.mxu0 %v10709_v13  ;;  %2371 = vmatprep.subr.bf16.mxu1 %v10714_v14  ;;  %v10791_v13 = vld [vmem:[#allocation11 + $0x3bc] ss:$36 sps:$4 sm:$0xff]  }
 0x315   : > { %2172 = vmatprep.subr.bf16.mxu0 %v10717_v16  ;;  %v10789_v14 = vld [vmem:[#allocation11 + $0x3b8] ss:$36 sps:$4 sm:$0xff]   ;;  %v10792_v16 = vld [vmem:[#allocation11 + $0x400] ss:$36 sps:$4 sm:$0xff]  }
 0x317   : > { %2372 = vmatpush1.bf16.msra.mxu1 %v10712_v15  ;;  %v10794_v15 = vld [vmem:[#allocation11 + $0x404] ss:$36 sps:$4 sm:$0xff]  }
 0x318   : > { %2173 = vmatpush1.bf16.msra.mxu0 %v10715_v17  ;;  %2373 = vmatprep.subr.bf16.mxu1 %v10720_v18  ;;  %v10797_v17 = vld [vmem:[#allocation11 + $0x44c] ss:$36 sps:$4 sm:$0xff]  }
 0x319   : > { %2174 = vmatprep.subr.bf16.mxu0 %v10723_v20  ;;  %v10795_v18 = vld [vmem:[#allocation11 + $0x448] ss:$36 sps:$4 sm:$0xff]   ;;  %v10798_v20 = vld [vmem:[#allocation11 + $0x490] ss:$36 sps:$4 sm:$0xff]  }
 0x31b   : > { %2374 = vmatpush1.bf16.msra.mxu1 %v10718_v19  ;;  %v10800_v19 = vld [vmem:[#allocation11 + $0x494] ss:$36 sps:$4 sm:$0xff]  }
 0x31c   : > { %2175 = vmatpush1.bf16.msra.mxu0 %v10721_v21  ;;  %2375 = vmatprep.subr.bf16.mxu1 %v10726_v22  ;;  %v10803_v21 = vld [vmem:[#allocation11 + $0x4dc] ss:$36 sps:$4 sm:$0xff]  }
 0x31d   : > { %2176 = vmatprep.subr.bf16.mxu0 %v10729_v25  ;;  %v10801_v22 = vld [vmem:[#allocation11 + $0x4d8] ss:$36 sps:$4 sm:$0xff]   ;;  %v10804_v25 = vld [vmem:[#allocation11 + $0x520] ss:$36 sps:$4 sm:$0xff]  }
 0x31f   : > { %2376 = vmatpush1.bf16.msra.mxu1 %v10724_v23  ;;  %v10806_v23 = vld [vmem:[#allocation11 + $0x524] ss:$36 sps:$4 sm:$0xff]  }
 0x320   : > { %2177 = vmatpush1.bf16.msra.mxu0 %v10727_v29  ;;  %2377 = vmatprep.subr.bf16.mxu1 %v10732_v30  ;;  %v10809_v29 = vld [vmem:[#allocation11 + $0x56c] ss:$36 sps:$4 sm:$0xff]  }
 0x321   : > { %2178 = vmatprep.subr.bf16.mxu0 %v10735_v31  ;;  %v10807_v30 = vld [vmem:[#allocation11 + $0x568] ss:$36 sps:$4 sm:$0xff]   ;;  %v10812_v31 = vld [vmem:[#allocation11 + $0x5b4] ss:$36 sps:$4 sm:$0xff]  }
 0x323   : > { %2378 = vmatpush1.bf16.msra.mxu1 %v10730_v32  ;;  %v10810_v32 = vld [vmem:[#allocation11 + $0x5b0] ss:$36 sps:$4 sm:$0xff]  }
 0x324   : > { %2179 = vmatpush1.bf16.msra.mxu0 %v10733_v33  ;;  %2379 = vmatprep.subr.bf16.mxu1 %v10738_v34  ;;  %v10815_v33 = vld [vmem:[#allocation11 + $0x5fc] ss:$36 sps:$4 sm:$0xff]  }
 0x325   : > { %2180 = vmatprep.subr.bf16.mxu0 %v10741_v38  ;;  %v10813_v34 = vld [vmem:[#allocation11 + $0x5f8] ss:$36 sps:$4 sm:$0xff]   ;;  %v10818_v38 = vld [vmem:[#allocation11 + $0x644] ss:$36 sps:$4 sm:$0xff]  }
 0x327   : > { %2380 = vmatpush1.bf16.msra.mxu1 %v10736_v39  ;;  %v10816_v39 = vld [vmem:[#allocation11 + $0x640] ss:$36 sps:$4 sm:$0xff]  }
 0x328   : > { %2181 = vmatpush1.bf16.msra.mxu0 %v10739_v40  ;;  %10131 = vmatprep.subr.bf16.mxu1 %v12298_v46  ;;  %v10821_v40 = vld [vmem:[#allocation11 + $0x68c] ss:$36 sps:$4 sm:$0xff]  }
 0x329   : > { %2236 = vmatprep.subr.bf16.mxu0 %v10744_v41  ;;  %v10819_v41 = vld [vmem:[#allocation11 + $0x688] ss:$36 sps:$4 sm:$0xff]  }
 0x32a   : > { %2398 = vmatmul.mubr.bf16.vlgmr.msra.gmra.mrb[4].mxu1 %v12864_v45 }
 0x32b   : > { %2183 = vmatmul.mubr.bf16.vlgmr.msra.gmra.mrb[4].mxu0 %v12866_v43  ;;  %10132 = vmatpush3.bf16.msra.mxu1 %v10745_v42  ;;  %v10822_v42 = vld [vmem:[#allocation11 + $0x260] ss:$36 sps:$4 sm:$0xff]  }
 0x32c   : > { %2237 = vmatpush1.bf16.msra.mxu0 %v10742_v47  ;;  %2268 = vmatprep.mubr.bf16.mxu0 %v12862_v61  ;;  %v10823_v47 = vld [vmem:[#allocation11 + $0x20] ss:$36 sps:$4 sm:$0xff]  }
 0x32d   : > { %10133 = vmatprep.subr.bf16.mxu1 %v12298_v46  ;;  %2238 = vmatprep.subr.bf16.mxu0 %v10748_v36  ;;  %v10824_v36 = vld [vmem:[#allocation11 + $0x2a8] ss:$36 sps:$4 sm:$0xff]  }
 0x32e   : > { %10147 = vmatprep.mubr.msk.bf16.mxu1 %vm12299_vm0, %v12298_v46 }
 0x32f   : > { %10134 = vmatpush3.bf16.msra.mxu1 %v10749_v48  ;;  %v10825_v48 = vld [vmem:[#allocation11 + $0x68] ss:$36 sps:$4 sm:$0xff]  }
 0x330   : > { %2239 = vmatpush1.bf16.msra.mxu0 %v10746_v49  ;;  %10135 = vmatprep.subr.bf16.mxu1 %v12298_v46  ;;  %v10826_v49 = vld [vmem:[#allocation11 + $0x2f0] ss:$36 sps:$4 sm:$0xff]  }
 0x331   : > { %2240 = vmatprep.subr.bf16.mxu0 %v10752_v37  ;;  %v10827_v37 = vld [vmem:[#allocation11 + $0xb0] ss:$36 sps:$4 sm:$0xff]  }
 0x333   : > { %10136 = vmatpush3.bf16.msra.mxu1 %v10753_v50  ;;  %v10828_v50 = vld [vmem:[#allocation11 + $0x338] ss:$36 sps:$4 sm:$0xff]  }
 0x334   : > { %2241 = vmatpush1.bf16.msra.mxu0 %v10750_v51  ;;  %10137 = vmatprep.subr.bf16.mxu1 %v12298_v46  ;;  %v10829_v51 = vld [vmem:[#allocation11 + $0xf8] ss:$36 sps:$4 sm:$0xff]  }
 0x335   : > { %2242 = vmatprep.subr.bf16.mxu0 %v10756_v35  ;;  %v10830_v35 = vld [vmem:[#allocation11 + $0x380] ss:$36 sps:$4 sm:$0xff]  }
 0x337   : > { %10138 = vmatpush3.bf16.msra.mxu1 %v10757_v52  ;;  %v10831_v52 = vld [vmem:[#allocation11 + $0x140] ss:$36 sps:$4 sm:$0xff]  }
 0x338   : > { %2243 = vmatpush1.bf16.msra.mxu0 %v10754_v53  ;;  %10139 = vmatprep.subr.bf16.mxu1 %v12298_v46  ;;  %v10832_v53 = vld [vmem:[#allocation11 + $0x3c8] ss:$36 sps:$4 sm:$0xff]  }
 0x339   : > { %2244 = vmatprep.subr.bf16.mxu0 %v10760_v54 }
 0x33b   : > { %10140 = vmatpush3.bf16.msra.mxu1 %v10761_v55 }
 0x33c   : > { %2245 = vmatpush1.bf16.msra.mxu0 %v10758_v56  ;;  %10141 = vmatprep.subr.bf16.mxu1 %v12298_v46 }
 0x33d   : > { %2246 = vmatprep.subr.bf16.mxu0 %v10764_v57 }
 0x33f   : > { %10142 = vmatpush3.bf16.msra.mxu1 %v10765_v58  ;;  %v10835_v58 = vld [vmem:[#allocation11 + $0x1d0] ss:$36 sps:$4 sm:$0xff]  }
 0x340   : > { %2247 = vmatpush1.bf16.msra.mxu0 %v10762_v59  ;;  %10143 = vmatprep.subr.bf16.mxu1 %v12298_v46  ;;  %v10836_v59 = vld [vmem:[#allocation11 + $0x458] ss:$36 sps:$4 sm:$0xff]  }
 0x341   : > { %2248 = vmatprep.subr.bf16.mxu0 %v10768_v44  ;;  %v10837_v44 = vld [vmem:[#allocation11 + $0x218] ss:$36 sps:$4 sm:$0xff]  }
 0x343   : > { %10144 = vmatpush3.bf16.msra.mxu1 %v10769_v60 }
 0x344   : > { %2249 = vmatpush1.bf16.msra.mxu0 %v10766_v62  ;;  %10145 = vmatprep.subr.bf16.mxu1 %v12298_v46 }
 0x345   : > { %2250 = vmatprep.subr.bf16.mxu0 %v10772_v63 }
 0x347   : > { %10146 = vmatpush3.bf16.msra.mxu1 %v10773_v0 }
 0x348   : > { %2251 = vmatpush1.bf16.msra.mxu0 %v10770_v1  ;;  %10181 = vmatprep.subr.bf16.mxu1 %v12298_v46 }
 0x349   : > { %2252 = vmatprep.subr.bf16.mxu0 %v10776_v2 }
 0x34a   : > { %10148 = vmatmul.mubr.bf16.vlgmr.msra.gmra.mrb[8].mxu1 %v12864_v45 }
 0x34b   : > { %10183 = vmatprep.mubr.msk.bf16.mxu1 %vm12299_vm0, %v12298_v46 }
 0x34c   : > { %2253 = vmatpush1.bf16.msra.mxu0 %v10774_v3 }
 0x34d   : > { %2254 = vmatprep.subr.bf16.mxu0 %v10779_v4 }
 0x350   : > { %2255 = vmatpush1.bf16.msra.mxu0 %v10777_v5 }
 0x351   : > { %2256 = vmatprep.subr.bf16.mxu0 %v10782_v6 }
 0x354   : > { %2257 = vmatpush1.bf16.msra.mxu0 %v10780_v7 }
 0x355   : > { %2258 = vmatprep.subr.bf16.mxu0 %v10785_v8 }
 0x358   : > { %2259 = vmatpush1.bf16.msra.mxu0 %v10783_v9 }
 0x359   : > { %2260 = vmatprep.subr.bf16.mxu0 %v10788_v10 }
 0x35c   : > { %2261 = vmatpush1.bf16.msra.mxu0 %v10786_v12 }
 0x35d   : > { %2262 = vmatprep.subr.bf16.mxu0 %v10791_v13 }
 0x360   : > { %2263 = vmatpush1.bf16.msra.mxu0 %v10789_v14 }
 0x361   : > { %2264 = vmatprep.subr.bf16.mxu0 %v10794_v15 }
 0x364   : > { %2265 = vmatpush1.bf16.msra.mxu0 %v10792_v16 }
 0x365   : > { %2266 = vmatprep.subr.bf16.mxu0 %v10797_v17 }
 0x368   : > { %2267 = vmatpush1.bf16.msra.mxu0 %v10795_v18 }
 0x369   : > { %2279 = vmatprep.subr.bf16.mxu0 %v10800_v19 }
 0x36b   : > { %2269 = vmatmul.mubr.bf16.vlgmr.msra.gmra.mrb[8].mxu0 %v12866_v43 }
 0x36c   : > { %2280 = vmatpush1.bf16.msra.mxu0 %v10798_v20  ;;  %2311 = vmatprep.mubr.bf16.mxu0 %v12297_v11 }
 0x36d   : > { %2281 = vmatprep.subr.bf16.mxu0 %v10803_v21 }
 0x370   : > { %2282 = vmatpush1.bf16.msra.mxu0 %v10801_v22 }
 0x371   : > { %2283 = vmatprep.subr.bf16.mxu0 %v10806_v23 }
 0x374   : > { %2284 = vmatpush1.bf16.msra.mxu0 %v10804_v25 }
 0x375   : > { %2285 = vmatprep.subr.bf16.mxu0 %v10809_v29 }
 0x378   : > { %2286 = vmatpush1.bf16.msra.mxu0 %v10807_v30 }
 0x379   : > { %2287 = vmatprep.subr.bf16.mxu0 %v10812_v31 }
 0x37c   : > { %2288 = vmatpush1.bf16.msra.mxu0 %v10810_v32 }
 0x37d   : > { %2289 = vmatprep.subr.bf16.mxu0 %v10815_v33 }
 0x380   : > { %2290 = vmatpush1.bf16.msra.mxu0 %v10813_v34 }
 0x381   : > { %2291 = vmatprep.subr.bf16.mxu0 %v10818_v38 }
 0x384   : > { %2292 = vmatpush1.bf16.msra.mxu0 %v10816_v39 }
 0x385   : > { %2293 = vmatprep.subr.bf16.mxu0 %v10821_v40 }
 0x388   : > { %2294 = vmatpush1.bf16.msra.mxu0 %v10819_v41 }
 0x389   : > { %9913 = vmatprep.subr.bf16.mxu0 %v10822_v42 }
 0x38b   : > { %2312 = vmatmul.mubr.bf16.vlgmr.msra.gmra.mrb[8].mxu0 %v12864_v45  ;;  %v10833_v45 = vld [vmem:[#allocation11 + $0x188] ss:$36 sps:$4 sm:$0xff]  }
 0x38c   : > { %9914 = vmatpush3.bf16.msra.mxu0 %v10823_v47  ;;  %2440 = vmatprep.mubr.bf16.mxu0 %v12862_v61  ;;  %v10834_v61 = vld [vmem:[#allocation11 + $0x410] ss:$36 sps:$4 sm:$0xff]  }
 0x38d   : > { %9915 = vmatprep.subr.bf16.mxu0 %v10824_v36 }
 0x390   : > { %9916 = vmatpush3.bf16.msra.mxu0 %v10825_v48 }
 0x391   : > { %9917 = vmatprep.subr.bf16.mxu0 %v10826_v49  ;;  %v12928_v49 = vld [vmem:[#allocation3] sm:$0xff] }
 0x394   : > { %9918 = vmatpush3.bf16.msra.mxu0 %v10827_v37 }
 0x395   : > { %9919 = vmatprep.subr.bf16.mxu0 %v10828_v50  ;;  %v12930_v50 = vld [vmem:[#allocation3 + $0x8] sm:$0xff] }
 0x398   : > { %9920 = vmatpush3.bf16.msra.mxu0 %v10829_v51 }
 0x399   : > { %9921 = vmatprep.subr.bf16.mxu0 %v10830_v35 }
 0x39c   : > { %9922 = vmatpush3.bf16.msra.mxu0 %v10831_v52 }
 0x39d   : > { %v2227_v54 = vpop.f32.mrb[0].mxu1  ;;  %9923 = vmatprep.subr.bf16.mxu0 %v10832_v53 }
 0x39e   : > { %v2229_v55 = vpop.f32.mrb[1].mxu1 }
 0x39f   : > { %v2231_v56 = vpop.f32.mrb[2].mxu1 }
 0x3a0   : > { %9924 = vmatpush3.bf16.msra.mxu0 %v10833_v45  ;;  %v2233_v57 = vpop.f32.mrb[3].mxu1 }
 0x3a1   : > { %9925 = vmatprep.subr.bf16.mxu0 %v10834_v61 }
 0x3a4   : > { %9926 = vmatpush3.bf16.msra.mxu0 %v10835_v58 }
 0x3a5   : > { %9927 = vmatprep.subr.bf16.mxu0 %v10836_v59 }
 0x3a8   : > { %9928 = vmatpush3.bf16.msra.mxu0 %v10837_v44 }
 0x3a9   : > { %10151 = vmatprep.subr.bf16.mxu0 %v12298_v46 }
 0x3ab   : > { %2441 = vmatmul.mubr.bf16.vlgmr.msra.gmra.mrb[12].mxu0 %v12866_v43 }
 0x3ac   : > { %10153 = vmatprep.mubr.msk.bf16.mxu0 %vm12299_vm0, %v12298_v46 }
 0x3be   : > { %v2141_v60 = vpop.f32.mrb[0].mxu0 }
 0x3bf   : > { %v2143_v62 = vpop.f32.mrb[1].mxu0 }
 0x3c0   : > { %v2145_v63 = vpop.f32.mrb[2].mxu0 }
 0x3c1   : > { %v12902_v0 = vpack.c.bf16 %v2145_v63, %v2141_v60  ;;  %v2147_v1 = vpop.f32.mrb[3].mxu0 }
 0x3c2   : > { %v12904_v2 = vpack.c.bf16 %v2147_v1, %v2143_v62 }
 0x3fd   : > { %v2399_v3 = vpop.f32.mrb[4].mxu1 }
 0x3fe   : > { %v2184_v4 = vpop.f32.mrb[4].mxu0  ;;  %v2401_v5 = vpop.f32.mrb[5].mxu1 }
 0x3ff   : > { %v2228_v6 = vadd.f32 %v2227_v54, %v2184_v4  ;;  %v2186_v7 = vpop.f32.mrb[5].mxu0  ;;  %v2403_v8 = vpop.f32.mrb[6].mxu1 }
 0x400   : > { %v2230_v9 = vadd.f32 %v2229_v55, %v2186_v7  ;;  %v12906_v10 = vpack.c.bf16 %v2403_v8, %v2399_v3  ;;  %v2188_v43 = vpop.f32.mrb[6].mxu0  ;;  %v2405_v12 = vpop.f32.mrb[7].mxu1 }
 0x401   : > { %v2232_v13 = vadd.f32 %v2231_v56, %v2188_v43  ;;  %v12908_v14 = vpack.c.bf16 %v2405_v12, %v2401_v5  ;;  %v2190_v15 = vpop.f32.mrb[7].mxu0 }
 0x402   : > { %v2234_v16 = vadd.f32 %v2233_v57, %v2190_v15 }
 0x403   : > { %v12910_v17 = vpack.c.bf16 %v2232_v13, %v2228_v6  ;;  %10182 = vmatpush3.bf16.msra.mxu1 %v12908_v14 }
 0x404   : > { %v2493_v18 = vpack.c.bf16 %v2234_v16, %v2230_v9  ;;  %10193 = vmatprep.subr.bf16.mxu1 %v12298_v46 }
 0x406   : > { %v2504_v19 = vsel %vm2499_vm1, %v2493_v18, 0 }
 0x407   : > { %10152 = vmatpush3.bf16.xpose.msra.mxu0 %v2504_v19 }
 0x408   : > { %10157 = vmatprep.subr.bf16.mxu0 %v12298_v46 }
 0x40e   : > { %10154 = vmatmul.mubr.msk.bf16.vlgmr.msra.gmra.mrb[16].mxu0 %vm2499_vm1, %v12902_v0 }
 0x40f   : > { %10158 = vmatpush3.bf16.msra.mxu0 %v12906_v10  ;;  %10159 = vmatprep.mubr.msk.bf16.mxu0 %vm12299_vm0, %v12298_v46 }
 0x410   : > { %10163 = vmatprep.subr.bf16.mxu0 %v12298_v46 }
 0x41d   : > { %v2483_v20 = vpop.f32.mrb[8].mxu1 }
 0x41e   : > { %v10149_v21 = vpop.f32.mrb[9].mxu1 }
 0x41f   : > { %v2486_v22 = vpop.f32.mrb[10].mxu1 }
 0x420   : > { %v10150_v23 = vpop.f32.mrb[11].mxu1 }
 0x45e   : > { %v2313_v25 = vpop.f32.mrb[8].mxu0 }
 0x45f   : > { %v2315_v29 = vpop.f32.mrb[9].mxu0 }
 0x460   : > { %v2317_v30 = vpop.f32.mrb[10].mxu0 }
 0x461   : > { %v12922_v31 = vpack.c.bf16 %v2317_v30, %v2313_v25  ;;  %v2319_v32 = vpop.f32.mrb[11].mxu0 }
 0x462   : > { %v12924_v33 = vpack.c.bf16 %v2319_v32, %v2315_v29 }
 0x47e   : > { %v9929_v34 = vpop.f32.mrb[12].mxu0 }
 0x47f   : > { %v9930_v38 = vpop.f32.mrb[13].mxu0 }
 0x480   : > { %v9931_v39 = vadd.f32 %v9930_v38, %v9929_v34  ;;  %v9932_v40 = vpop.f32.mrb[14].mxu0 }
 0x481   : > { %v9933_v41 = vpop.f32.mrb[15].mxu0 }
 0x482   : > { %v2484_v42 = vadd.f32 %v9931_v39, %v2483_v20  ;;  %v9934_v47 = vadd.f32 %v9933_v41, %v9932_v40 }
 0x484   : > { %v2487_v36 = vadd.f32 %v9934_v47, %v2486_v22 }
 0x486   : > { %v12926_v48 = vpack.c.bf16 %v2487_v36, %v2484_v42 }
 0x4e1   : > { %v2540_v37 = vpop.f32.mrb[16].mxu0 }
 0x4e2   : > { %v2541_v51 = vadd.f32 %v2540_v37, %v12928_v49  ;;  %v10155_v35 = vpop.f32.mrb[17].mxu0 }
 0x4e3   : > { %v2543_v52 = vpop.f32.mrb[18].mxu0 }
 0x4e4   : > { %v2544_v53 = vadd.f32 %v2543_v52, %v12930_v50  ;;  %v10156_v45 = vpop.f32.mrb[19].mxu0  ;;  %v2548_v54 = vsel %vm2547_vm2, %v2541_v51, -inf }
 0x4e5   : > { %2549 = vmax.xlane.f32.xlu0 %v2548_v54 }
 0x4e6   : > { %v2551_v61 = vsel %vm2547_vm2, %v2544_v53, -inf }
 0x4e7   : > { %2552 = vmax.xlane.f32.xlu1 %v2551_v61 }
 0x572   : > { %v2550_v55 = vpop.xlane.xlu0 %2549 }
 0x573   : > { %v2554_v56 = vsub.f32 %v2541_v51, %v2550_v55 }
 0x574   : > { %v2553_v57 = vpop.xlane.xlu1 %2552 }
 0x575   : > { %v2556_v58 = vmul.f32 1.442695, %v2554_v56  ;;  %v2555_v59 = vsub.f32 %v2544_v53, %v2553_v57  ;;  %v2752_v56 = vsel %vm2499_vm1, %v12922_v31, 0 }
 0x577   : > { %11754 = vpow2.f32 %v2556_v58  ;;  %v2558_v44 = vmul.f32 1.442695, %v2555_v59  ;;  %v2998_v59 = vsel %vm2499_vm1, %v12924_v33, 0 }
 0x579   : > { %11756 = vpow2.f32 %v2558_v44 }
 0x581   : > { %v11755_v60 = vpop.eup %11754 }
 0x582   : > { %v2560_v62 = vsel %vm2547_vm2, %v11755_v60, 0.0 }
 0x583   : > { %v11757_v63 = vpop.eup %11756  ;;  %2561 = vadd.xlane.f32.xlu0 %v2560_v62 }
 0x584   : > { %v2563_v1 = vsel %vm2547_vm2, %v11757_v63, 0.0 }
 0x585   : > { %2564 = vadd.xlane.f32.xlu1 %v2563_v1 }
 0x596   : > { %2618 = vrot.lane.b32.xlu1 %v12902_v0, %s12300_s1 }
 0x599   : > { %2621 = vrot.lane.b32.xlu0 %v2493_v18, %s12300_s1 }
 0x610   : > { %v2562_v3 = vpop.xlane.xlu0 %2561 }
 0x611   : > { %11758 = vrcp.f32 %v2562_v3 }
 0x612   : > { %v2565_v4 = vpop.xlane.xlu1 %2564 }
 0x613   : > { %11760 = vrcp.f32 %v2565_v4 }
 0x614   : > { %v2622_v9 = vpop.permute.xlu0 %2621 }
 0x615   : > { %v2627_v12 = vsel %vm2499_vm1, %v2622_v9, 0 }
 0x616   : > { %v2619_v0 = vpop.permute.xlu1 %2618 }
 0x61b   : > { %v11759_v5 = vpop.eup %11758 }
 0x61c   : > { %v2568_v7 = vmul.f32 %v11759_v5, %v11755_v60 }
 0x61d   : > { %v11761_v6 = vpop.eup %11760 }
 0x61e   : > { %v2569_v8 = vmul.f32 %v11761_v6, %v11757_v63 }
 0x620   : > { %v2570_v43 = vpack.c.bf16 %v2569_v8, %v2568_v7 }
 0x622   : > { %10160 = vmatmul.mubr.msk.bf16.vlgmr.msra.gmra.mrb[20].mxu0 %vm2547_vm2, %v2570_v43 }
 0x623   : > { %10164 = vmatpush3.bf16.xpose.msra.mxu0 %v2627_v12  ;;  %10165 = vmatprep.mubr.msk.bf16.mxu0 %vm12299_vm0, %v12298_v46 }
 0x624   : > { %10169 = vmatprep.subr.bf16.mxu0 %v12298_v46 }
 0x62a   : > { %10166 = vmatmul.mubr.msk.bf16.vlgmr.msra.gmra.mrb[24].mxu0 %vm2499_vm1, %v2619_v0 }
 0x62b   : > { %10171 = vmatprep.mubr.msk.bf16.mxu0 %vm12299_vm0, %v12298_v46 }
 0x6f5   : > { %v2608_v13 = vpop.f32.mrb[20].mxu0 }
 0x6f6   : > { %v10161_v15 = vpop.f32.mrb[21].mxu0 }
 0x6f7   : > { %v2611_v16 = vpop.f32.mrb[22].mxu0 }
 0x6f8   : > { %v2615_v18 = vpack.c.bf16 %v2611_v16, %v2608_v13  ;;  %v10162_v19 = vpop.f32.mrb[23].mxu0 }
 0x6fa   : > { %2616 = vst.msk [vmem:[#allocation2] sm:$0xff] %vm2499_vm1, %v2615_v18 }
 0x6fd   : > { %v2663_v20 = vpop.f32.mrb[24].mxu0 }
 0x6fe   : > { %v2664_v21 = vadd.f32 %v2663_v20, %v12928_v49  ;;  %v10167_v22 = vpop.f32.mrb[25].mxu0 }
 0x6ff   : > { %v2666_v23 = vpop.f32.mrb[26].mxu0 }
 0x700   : > { %v2667_v25 = vadd.f32 %v2666_v23, %v12930_v50  ;;  %v10168_v29 = vpop.f32.mrb[27].mxu0  ;;  %v2670_v30 = vsel %vm2547_vm2, %v2664_v21, -inf }
 0x701   : > { %2671 = vmax.xlane.f32.xlu1 %v2670_v30 }
 0x702   : > { %v2673_v32 = vsel %vm2547_vm2, %v2667_v25, -inf }
 0x703   : > { %2674 = vmax.xlane.f32.xlu0 %v2673_v32 }
 0x78e   : > { %v2672_v34 = vpop.xlane.xlu1 %2671 }
 0x78f   : > { %v2676_v38 = vsub.f32 %v2664_v21, %v2672_v34 }
 0x790   : > { %v2675_v39 = vpop.xlane.xlu0 %2674 }
 0x791   : > { %v2678_v40 = vmul.f32 1.442695, %v2676_v38  ;;  %v2677_v41 = vsub.f32 %v2667_v25, %v2675_v39 }
 0x793   : > { %11762 = vpow2.f32 %v2678_v40  ;;  %v2680_v42 = vmul.f32 1.442695, %v2677_v41 }
 0x795   : > { %11764 = vpow2.f32 %v2680_v42 }
 0x79d   : > { %v11763_v47 = vpop.eup %11762 }
 0x79e   : > { %v2682_v36 = vsel %vm2547_vm2, %v11763_v47, 0.0 }
 0x79f   : > { %v11765_v37 = vpop.eup %11764  ;;  %2683 = vadd.xlane.f32.xlu0 %v2682_v36 }
 0x7a0   : > { %v2685_v51 = vsel %vm2547_vm2, %v11765_v37, 0.0 }
 0x7a1   : > { %2686 = vadd.xlane.f32.xlu1 %v2685_v51 }
 0x7b2   : > { %2868 = vrot.lane.b32.xlu1 %v12922_v31, %s12300_s1 }
 0x7b5   : > { %2694 = vrot.lane.b32.xlu0 %v12906_v10, %s12300_s1 }
 0x7b6   : > { %2865 = vrot.lane.b32.xlu1 %v12904_v2, %s12300_s1 }
 0x7b9   : > { %3111 = vrot.lane.b32.xlu0 %v12910_v17, %s12300_s1 }
 0x7ba   : > { %3114 = vrot.lane.b32.xlu1 %v12924_v33, %s12300_s1 }
 0x82c   : > { %v2684_v35 = vpop.xlane.xlu0 %2683 }
 0x82d   : > { %11766 = vrcp.f32 %v2684_v35 }
 0x82e   : > { %v2687_v52 = vpop.xlane.xlu1 %2686 }
 0x82f   : > { %11768 = vrcp.f32 %v2687_v52 }
 0x830   : > { %v2695_v53 = vpop.permute.xlu0 %2694 }
 0x831   : > { %10170 = vmatpush3.bf16.msra.mxu0 %v2695_v53 }
 0x832   : > { %10175 = vmatprep.subr.bf16.mxu0 %v12298_v46  ;;  %v2869_v57 = vpop.permute.xlu1 %2868 }
 0x833   : > { %v2874_v58 = vsel %vm2499_vm1, %v2869_v57, 0 }
 0x834   : > { %v3112_v60 = vpop.permute.xlu0 %3111 }
 0x836   : > { %v2866_v31 = vpop.permute.xlu1 %2865 }
 0x837   : > { %v11767_v45 = vpop.eup %11766 }
 0x838   : > { %v2690_v10 = vmul.f32 %v11767_v45, %v11763_v47 }
 0x839   : > { %v11769_v54 = vpop.eup %11768 }
 0x83a   : > { %v2691_v61 = vmul.f32 %v11769_v54, %v11765_v37  ;;  %v3115_v44 = vpop.permute.xlu1 %3114 }
 0x83c   : > { %v2692_v55 = vpack.c.bf16 %v2691_v61, %v2690_v10 }
 0x83e   : > { %10172 = vmatmul.mubr.msk.bf16.vlgmr.msra.gmra.mrb[28].mxu0 %vm2547_vm2, %v2692_v55 }
 0x83f   : > { %10176 = vmatpush3.bf16.xpose.msra.mxu0 %v2752_v56  ;;  %10177 = vmatprep.mubr.msk.bf16.mxu0 %vm12299_vm0, %v12298_v46 }
 0x840   : > { %10187 = vmatprep.subr.bf16.mxu0 %v12298_v46 }
 0x846   : > { %10178 = vmatmul.mubr.msk.bf16.vlgmr.msra.gmra.mrb[32].mxu0 %vm2499_vm1, %v12904_v2  ;;  %v3120_v2 = vsel %vm2499_vm1, %v3115_v44, 0 }
 0x847   : > { %10188 = vmatpush3.bf16.xpose.msra.mxu0 %v2874_v58  ;;  %10189 = vmatprep.mubr.msk.bf16.mxu0 %vm12299_vm0, %v12298_v46 }
 0x848   : > { %10199 = vmatprep.subr.bf16.mxu0 %v12298_v46 }
 0x84e   : > { %10190 = vmatmul.mubr.msk.bf16.vlgmr.msra.gmra.mrb[36].mxu0 %vm2499_vm1, %v2866_v31 }
 0x84f   : > { %10200 = vmatpush3.bf16.xpose.msra.mxu0 %v2998_v59  ;;  %10201 = vmatprep.mubr.msk.bf16.mxu0 %vm12299_vm0, %v12298_v46 }
 0x850   : > { %10211 = vmatprep.subr.bf16.mxu0 %v12298_v46 }
 0x856   : > { %10202 = vmatmul.mubr.msk.bf16.vlgmr.msra.gmra.mrb[40].mxu0 %vm2499_vm1, %v12910_v17 }
 0x857   : > { %10212 = vmatpush3.bf16.xpose.msra.mxu0 %v3120_v2  ;;  %10213 = vmatprep.mubr.msk.bf16.mxu0 %vm12299_vm0, %v12298_v46 }
 0x85e   : > { %10214 = vmatmul.mubr.msk.bf16.vlgmr.msra.gmra.mrb[44].mxu0 %vm2499_vm1, %v3112_v60 }
 0x911   : > { %v12991_v33 = vpop.f32.mrb[28].mxu0 }
 0x912   : > { %v10173_v62 = vpop.f32.mrb[29].mxu0 }
 0x913   : > { %v12993_v63 = vpop.f32.mrb[30].mxu0 }
 0x914   : > { %v2741_v1 = vpack.c.bf16 %v12993_v63, %v12991_v33  ;;  %v10174_v3 = vpop.f32.mrb[31].mxu0  ;;  %v10902_v63 = vld [vmem:[#allocation12 + $0x180] ss:$12 sps:$4 sm:$0xff]  }
 0x919   : > { %v2788_v4 = vpop.f32.mrb[32].mxu0 }
 0x91a   : > { %v2789_v5 = vadd.f32 %v2788_v4, %v12928_v49  ;;  %v10179_v17 = vpop.f32.mrb[33].mxu0 }
 0x91b   : > { %v2791_v6 = vpop.f32.mrb[34].mxu0 }
 0x91c   : > { %v2792_v7 = vadd.f32 %v2791_v6, %v12930_v50  ;;  %v10180_v8 = vpop.f32.mrb[35].mxu0  ;;  %v2795_v9 = vsel %vm2547_vm2, %v2789_v5, -inf }
 0x91d   : > { %2796 = vmax.xlane.f32.xlu1 %v2795_v9 }
 0x91e   : > { %v2798_v43 = vsel %vm2547_vm2, %v2792_v7, -inf }
 0x91f   : > { %2799 = vmax.xlane.f32.xlu0 %v2798_v43 }
 0x921   : > { %v2910_v12 = vpop.f32.mrb[36].mxu0 }
 0x922   : > { %v2911_v0 = vadd.f32 %v2910_v12, %v12928_v49  ;;  %v10191_v13 = vpop.f32.mrb[37].mxu0 }
 0x923   : > { %v2913_v15 = vpop.f32.mrb[38].mxu0 }
 0x924   : > { %v2914_v16 = vadd.f32 %v2913_v15, %v12930_v50  ;;  %v10192_v18 = vpop.f32.mrb[39].mxu0  ;;  %v2917_v19 = vsel %vm2547_vm2, %v2911_v0, -inf }
 0x925   : > { %2918 = vmax.xlane.f32.xlu0 %v2917_v19 }
 0x926   : > { %v2920_v20 = vsel %vm2547_vm2, %v2914_v16, -inf }
 0x929   : > { %2921 = vmax.xlane.f32.xlu0 %v2920_v20  ;;  %v3034_v21 = vpop.f32.mrb[40].mxu0 }
 0x92a   : > { %v3035_v22 = vadd.f32 %v3034_v21, %v12928_v49  ;;  %v10203_v23 = vpop.f32.mrb[41].mxu0 }
 0x92b   : > { %v3037_v25 = vpop.f32.mrb[42].mxu0 }
 0x92c   : > { %v3038_v29 = vadd.f32 %v3037_v25, %v12930_v50  ;;  %v10204_v30 = vpop.f32.mrb[43].mxu0  ;;  %v3041_v32 = vsel %vm2547_vm2, %v3035_v22, -inf }
 0x92d   : > { %3042 = vmax.xlane.f32.xlu1 %v3041_v32 }
 0x92e   : > { %v3044_v34 = vsel %vm2547_vm2, %v3038_v29, -inf }
 0x92f   : > { %3045 = vmax.xlane.f32.xlu0 %v3044_v34 }
 0x931   : > { %v3156_v38 = vpop.f32.mrb[44].mxu0 }
 0x932   : > { %v3157_v39 = vadd.f32 %v3156_v38, %v12928_v49  ;;  %v10215_v40 = vpop.f32.mrb[45].mxu0 }
 0x933   : > { %v3159_v41 = vpop.f32.mrb[46].mxu0 }
 0x934   : > { %v3160_v42 = vadd.f32 %v3159_v41, %v12930_v50  ;;  %v10216_v47 = vpop.f32.mrb[47].mxu0  ;;  %v3163_v36 = vsel %vm2547_vm2, %v3157_v39, -inf }
 0x935   : > { %3164 = vmax.xlane.f32.xlu1 %v3163_v36 }
 0x936   : > { %v3166_v37 = vsel %vm2547_vm2, %v3160_v42, -inf }
 0x937   : > { %3167 = vmax.xlane.f32.xlu0 %v3166_v37 }
 0x9aa   : > { %v2797_v51 = vpop.xlane.xlu1 %2796 }
 0x9ab   : > { %v2801_v35 = vsub.f32 %v2789_v5, %v2797_v51 }
 0x9ac   : > { %v2800_v52 = vpop.xlane.xlu0 %2799 }
 0x9ad   : > { %v2803_v53 = vmul.f32 1.442695, %v2801_v35  ;;  %v2802_v45 = vsub.f32 %v2792_v7, %v2800_v52 }
 0x9af   : > { %11770 = vpow2.f32 %v2803_v53  ;;  %v2805_v54 = vmul.f32 1.442695, %v2802_v45 }
 0x9b1   : > { %11772 = vpow2.f32 %v2805_v54 }
 0x9b2   : > { %v2919_v49 = vpop.xlane.xlu0 %2918 }
 0x9b3   : > { %v2923_v10 = vsub.f32 %v2911_v0, %v2919_v49 }
 0x9b5   : > { %v2925_v61 = vmul.f32 1.442695, %v2923_v10 }
 0x9b6   : > { %v2922_v55 = vpop.xlane.xlu0 %2921 }
 0x9b7   : > { %11774 = vpow2.f32 %v2925_v61  ;;  %v2924_v50 = vsub.f32 %v2914_v16, %v2922_v55 }
 0x9b9   : > { %v11771_v56 = vpop.eup %11770  ;;  %v2927_v57 = vmul.f32 1.442695, %v2924_v50 }
 0x9ba   : > { %v3043_v58 = vpop.xlane.xlu1 %3042  ;;  %v2807_v31 = vsel %vm2547_vm2, %v11771_v56, 0.0 }
 0x9bb   : > { %v11773_v59 = vpop.eup %11772  ;;  %11776 = vpow2.f32 %v2927_v57  ;;  %v3047_v44 = vsub.f32 %v3035_v22, %v3043_v58  ;;  %2808 = vadd.xlane.f32.xlu1 %v2807_v31 }
 0x9bc   : > { %v3046_v2 = vpop.xlane.xlu0 %3045  ;;  %v2810_v60 = vsel %vm2547_vm2, %v11773_v59, 0.0 }
 0x9bd   : > { %v3049_v62 = vmul.f32 1.442695, %v3047_v44  ;;  %v3048_v3 = vsub.f32 %v3038_v29, %v3046_v2  ;;  %2811 = vadd.xlane.f32.xlu0 %v2810_v60  ;;  %v10840_v44 = vld [vmem:[#allocation12 + $0x4] ss:$12 sps:$4 sm:$0xff]   ;;  %v10843_v2 = vld [vmem:[#allocation12 + $0x1c] ss:$12 sps:$4 sm:$0xff]  }
 0x9be   : > { %3740 = vmatprep.subr.bf16.mxu0 %v10840_v44  ;;  %v10841_v60 = vld [vmem:[#allocation12 + $0x18] ss:$12 sps:$4 sm:$0xff]  }
 0x9bf   : > { %11778 = vpow2.f32 %v3049_v62  ;;  %v3051_v4 = vmul.f32 1.442695, %v3048_v3  ;;  %v10846_v62 = vld [vmem:[#allocation12 + $0x34] ss:$12 sps:$4 sm:$0xff]  }
 0x9c0   : > { %v10865_v3 = vld [vmem:[#allocation12 + $0xc8] ss:$12 sps:$4 sm:$0xff]  }
 0x9c1   : > { %v11775_v5 = vpop.eup %11774  ;;  %11780 = vpow2.f32 %v3051_v4  ;;  %v10866_v4 = vld [vmem:[#allocation12 + $0x8] ss:$12 sps:$4 sm:$0xff]  }
 0x9c2   : > { %v3165_v17 = vpop.xlane.xlu1 %3164  ;;  %v2929_v6 = vsel %vm2547_vm2, %v11775_v5, 0.0 }
 0x9c3   : > { %v3169_v7 = vsub.f32 %v3157_v39, %v3165_v17  ;;  %2930 = vadd.xlane.f32.xlu1 %v2929_v6  ;;  %v10870_v17 = vld [vmem:[#allocation12 + $0xe0] ss:$12 sps:$4 sm:$0xff]  }
 0x9c4   : > { %v3168_v8 = vpop.xlane.xlu0 %3167  ;;  %v10849_v6 = vld [vmem:[#allocation12 + $0x4c] ss:$12 sps:$4 sm:$0xff]  }
 0x9c5   : > { %v11777_v9 = vpop.eup %11776  ;;  %v3171_v43 = vmul.f32 1.442695, %v3169_v7  ;;  %v3170_v12 = vsub.f32 %v3160_v42, %v3168_v8  ;;  %v10871_v7 = vld [vmem:[#allocation12 + $0x20] ss:$12 sps:$4 sm:$0xff]   ;;  %v10875_v8 = vld [vmem:[#allocation12 + $0xf8] ss:$12 sps:$4 sm:$0xff]  }
 0x9c6   : > { %v2932_v0 = vsel %vm2547_vm2, %v11777_v9, 0.0 }
 0x9c7   : > { %11782 = vpow2.f32 %v3171_v43  ;;  %v3173_v13 = vmul.f32 1.442695, %v3170_v12  ;;  %2933 = vadd.xlane.f32.xlu0 %v2932_v0  ;;  %v10852_v43 = vld [vmem:[#allocation12 + $0x64] ss:$12 sps:$4 sm:$0xff]  }
 0x9c8   : > { %v10876_v12 = vld [vmem:[#allocation12 + $0x38] ss:$12 sps:$4 sm:$0xff]   ;;  %v10880_v0 = vld [vmem:[#allocation12 + $0x110] ss:$12 sps:$4 sm:$0xff]  }
 0x9c9   : > { %v11779_v15 = vpop.eup %11778  ;;  %11784 = vpow2.f32 %v3173_v13  ;;  %v10850_v13 = vld [vmem:[#allocation12 + $0x60] ss:$12 sps:$4 sm:$0xff]  }
 0x9ca   : > { %v3053_v16 = vsel %vm2547_vm2, %v11779_v15, 0.0 }
 0x9cb   : > { %v11781_v18 = vpop.eup %11780  ;;  %3054 = vadd.xlane.f32.xlu1 %v3053_v16  ;;  %v10881_v16 = vld [vmem:[#allocation12 + $0x50] ss:$12 sps:$4 sm:$0xff]  }
 0x9cc   : > { %v3056_v19 = vsel %vm2547_vm2, %v11781_v18, 0.0 }
 0x9cd   : > { %3057 = vadd.xlane.f32.xlu0 %v3056_v19  ;;  %v10853_v19 = vld [vmem:[#allocation12 + $0x78] ss:$12 sps:$4 sm:$0xff]  }
 0x9d1   : > { %v11783_v20 = vpop.eup %11782 }
 0x9d2   : > { %v3175_v21 = vsel %vm2547_vm2, %v11783_v20, 0.0 }
 0x9d3   : > { %v11785_v22 = vpop.eup %11784  ;;  %3176 = vadd.xlane.f32.xlu0 %v3175_v21  ;;  %v10886_v21 = vld [vmem:[#allocation12 + $0x68] ss:$12 sps:$4 sm:$0xff]  }
 0x9d4   : > { %v3178_v23 = vsel %vm2547_vm2, %v11785_v22, 0.0 }
 0x9d7   : > { %3179 = vadd.xlane.f32.xlu0 %v3178_v23  ;;  %v10861_v23 = vld [vmem:[#allocation12 + $0xac] ss:$12 sps:$4 sm:$0xff]  }
 0x9dc   : > { %2941 = vrot.lane.b32.xlu1 %v12908_v14, %s12300_s1 }
 0x9ed   : > { %3187 = vrot.lane.b32.xlu0 %v12926_v48, %s12300_s1 }
 0xa48   : > { %v2809_v25 = vpop.xlane.xlu1 %2808 }
 0xa49   : > { %11786 = vrcp.f32 %v2809_v25  ;;  %v10859_v25 = vld [vmem:[#allocation12 + $0xa8] ss:$12 sps:$4 sm:$0xff]  }
 0xa4a   : > { %v2812_v29 = vpop.xlane.xlu0 %2811 }
 0xa4b   : > { %11788 = vrcp.f32 %v2812_v29  ;;  %v10864_v29 = vld [vmem:[#allocation12 + $0xc4] ss:$12 sps:$4 sm:$0xff]  }
 0xa50   : > { %v2931_v30 = vpop.xlane.xlu1 %2930 }
 0xa51   : > { %11790 = vrcp.f32 %v2931_v30  ;;  %v10862_v30 = vld [vmem:[#allocation12 + $0xc0] ss:$12 sps:$4 sm:$0xff]  }
 0xa53   : > { %v11787_v32 = vpop.eup %11786 }
 0xa54   : > { %v2934_v34 = vpop.xlane.xlu0 %2933  ;;  %v2815_v39 = vmul.f32 %v11787_v32, %v11771_v56  ;;  %v10869_v32 = vld [vmem:[#allocation12 + $0xdc] ss:$12 sps:$4 sm:$0xff]  }
 0xa55   : > { %v11789_v38 = vpop.eup %11788  ;;  %11792 = vrcp.f32 %v2934_v34  ;;  %v10867_v34 = vld [vmem:[#allocation12 + $0xd8] ss:$12 sps:$4 sm:$0xff]  }
 0xa56   : > { %v2816_v40 = vmul.f32 %v11789_v38, %v11773_v59  ;;  %v10838_v59 = vld [vmem:[#allocation12] ss:$12 sps:$4 sm:$0xff]  }
 0xa57   : > { %3741 = vmatpush1.bf16.msra.mxu0 %v10838_v59  ;;  %v10874_v38 = vld [vmem:[#allocation12 + $0xf4] ss:$12 sps:$4 sm:$0xff]  }
 0xa58   : > { %v3055_v41 = vpop.xlane.xlu1 %3054  ;;  %v2817_v42 = vpack.c.bf16 %v2816_v40, %v2815_v39  ;;  %3742 = vmatprep.subr.bf16.mxu0 %v10843_v2  ;;  %v10872_v39 = vld [vmem:[#allocation12 + $0xf0] ss:$12 sps:$4 sm:$0xff]   ;;  %v10879_v40 = vld [vmem:[#allocation12 + $0x10c] ss:$12 sps:$4 sm:$0xff]  }
 0xa59   : > { %11794 = vrcp.f32 %v3055_v41  ;;  %v10877_v41 = vld [vmem:[#allocation12 + $0x108] ss:$12 sps:$4 sm:$0xff]  }
 0xa5a   : > { %10184 = vmatmul.mubr.msk.bf16.vlgmr.msra.gmra.mrb[12].mxu1 %vm2547_vm2, %v2817_v42  ;;  %v3058_v14 = vpop.xlane.xlu0 %3057  ;;  %v10884_v42 = vld [vmem:[#allocation12 + $0x124] ss:$12 sps:$4 sm:$0xff]  }
 0xa5b   : > { %11796 = vrcp.f32 %v3058_v14  ;;  %10195 = vmatprep.mubr.msk.bf16.mxu1 %vm12299_vm0, %v12298_v46  ;;  %v11791_v36 = vpop.eup %11790  ;;  %3743 = vmatpush1.bf16.msra.mxu0 %v10841_v60  ;;  %v10882_v14 = vld [vmem:[#allocation12 + $0x120] ss:$12 sps:$4 sm:$0xff]  }
 0xa5c   : > { %v2942_v47 = vpop.permute.xlu1 %2941  ;;  %v2937_v51 = vmul.f32 %v11791_v36, %v11775_v5  ;;  %v10844_v5 = vld [vmem:[#allocation12 + $0x30] ss:$12 sps:$4 sm:$0xff]   ;;  %3744 = vmatprep.subr.bf16.mxu0 %v10846_v62  ;;  %v10887_v36 = vld [vmem:[#allocation12 + $0x138] ss:$12 sps:$4 sm:$0xff]  }
 0xa5d   : > { %10194 = vmatpush3.bf16.msra.mxu1 %v2942_v47  ;;  %v10889_v47 = vld [vmem:[#allocation12 + $0x13c] ss:$12 sps:$4 sm:$0xff]  }
 0xa5e   : > { %10205 = vmatprep.subr.bf16.mxu1 %v12298_v46 }
 0xa5f   : > { %v11793_v37 = vpop.eup %11792  ;;  %3745 = vmatpush1.bf16.msra.mxu0 %v10844_v5 }
 0xa60   : > { %v2938_v35 = vmul.f32 %v11793_v37, %v11777_v9  ;;  %v3177_v52 = vpop.xlane.xlu0 %3176  ;;  %v10847_v9 = vld [vmem:[#allocation12 + $0x48] ss:$12 sps:$4 sm:$0xff]   ;;  %3746 = vmatprep.subr.bf16.mxu0 %v10849_v6 }
 0xa61   : > { %11798 = vrcp.f32 %v3177_v52  ;;  %v10891_v52 = vld [vmem:[#allocation12 + $0x80] ss:$12 sps:$4 sm:$0xff]  }
 0xa62   : > { %v2939_v53 = vpack.c.bf16 %v2938_v35, %v2937_v51  ;;  %v10890_v51 = vld [vmem:[#allocation12 + $0x140] ss:$12 sps:$4 sm:$0xff]  }
 0xa63   : > { %v11795_v45 = vpop.eup %11794  ;;  %3747 = vmatpush1.bf16.msra.mxu0 %v10847_v9 }
 0xa64   : > { %10196 = vmatmul.mubr.msk.bf16.vlgmr.msra.gmra.mrb[16].mxu1 %vm2547_vm2, %v2939_v53  ;;  %v3180_v54 = vpop.xlane.xlu0 %3179  ;;  %v3061_v61 = vmul.f32 %v11795_v45, %v11779_v15  ;;  %3748 = vmatprep.subr.bf16.mxu0 %v10852_v43  ;;  %v10855_v15 = vld [vmem:[#allocation12 + $0x7c] ss:$12 sps:$4 sm:$0xff]  }
 0xa65   : > { %v11797_v49 = vpop.eup %11796  ;;  %10206 = vmatpush3.bf16.msra.mxu1 %v12926_v48  ;;  %11800 = vrcp.f32 %v3180_v54  ;;  %10207 = vmatprep.mubr.msk.bf16.mxu1 %vm12299_vm0, %v12298_v46  ;;  %v10892_v45 = vld [vmem:[#allocation12 + $0x150] ss:$12 sps:$4 sm:$0xff]   ;;  %v10894_v54 = vld [vmem:[#allocation12 + $0x154] ss:$12 sps:$4 sm:$0xff]  }
 0xa66   : > { %v3062_v10 = vmul.f32 %v11797_v49, %v11781_v18  ;;  %10217 = vmatprep.subr.bf16.mxu1 %v12298_v46  ;;  %v10885_v18 = vld [vmem:[#allocation12 + $0x128] ss:$12 sps:$4 sm:$0xff]  }
 0xa67   : > { %3749 = vmatpush1.bf16.msra.mxu0 %v10850_v13  ;;  %v10908_v13 = vld [vmem:[#allocation12 + $0x19c] ss:$12 sps:$4 sm:$0xff]  }
 0xa68   : > { %v3063_v55 = vpack.c.bf16 %v3062_v10, %v3061_v61  ;;  %v3188_v50 = vpop.permute.xlu0 %3187  ;;  %3750 = vmatprep.subr.bf16.mxu0 %v10855_v15  ;;  %v10895_v61 = vld [vmem:[#allocation12 + $0x158] ss:$12 sps:$4 sm:$0xff]  }
 0xa6b   : > { %v11799_v56 = vpop.eup %11798  ;;  %3751 = vmatpush1.bf16.msra.mxu0 %v10853_v19  ;;  %v10912_v19 = vld [vmem:[#allocation12 + $0x1b4] ss:$12 sps:$4 sm:$0xff]  }
 0xa6c   : > { %10208 = vmatmul.mubr.msk.bf16.vlgmr.msra.gmra.mrb[20].mxu1 %vm2547_vm2, %v3063_v55  ;;  %v3183_v58 = vmul.f32 %v11799_v56, %v11783_v20  ;;  %v10858_v20 = vld [vmem:[#allocation12 + $0x94] ss:$12 sps:$4 sm:$0xff]   ;;  %v10896_v55 = vld [vmem:[#allocation12 + $0x98] ss:$12 sps:$4 sm:$0xff]  }
 0xa6d   : > { %10218 = vmatpush3.bf16.msra.mxu1 %v3188_v50  ;;  %10219 = vmatprep.mubr.msk.bf16.mxu1 %vm12299_vm0, %v12298_v46  ;;  %v10897_v50 = vld [vmem:[#allocation12 + $0x168] ss:$12 sps:$4 sm:$0xff]   ;;  %v10899_v56 = vld [vmem:[#allocation12 + $0x16c] ss:$12 sps:$4 sm:$0xff]  }
 0xa6e   : > { %9968 = vmatprep.subr.bf16.mxu1 %v10865_v3  ;;  %3752 = vmatprep.subr.bf16.mxu0 %v10858_v20 }
 0xa6f   : > { %v11801_v57 = vpop.eup %11800 }
 0xa70   : > { %v3184_v48 = vmul.f32 %v11801_v57, %v11785_v22  ;;  %v10856_v22 = vld [vmem:[#allocation12 + $0x90] ss:$12 sps:$4 sm:$0xff]  }
 0xa71   : > { %3753 = vmatpush1.bf16.msra.mxu0 %v10856_v22  ;;  %v10900_v57 = vld [vmem:[#allocation12 + $0x170] ss:$12 sps:$4 sm:$0xff]   ;;  %v10913_v22 = vld [vmem:[#allocation12 + $0x1b8] ss:$12 sps:$4 sm:$0xff]  }
 0xa72   : > { %v3185_v31 = vpack.c.bf16 %v3184_v48, %v3183_v58  ;;  %3754 = vmatprep.subr.bf16.mxu0 %v10861_v23  ;;  %v10901_v58 = vld [vmem:[#allocation12 + $0xb0] ss:$12 sps:$4 sm:$0xff]   ;;  %v10916_v23 = vld [vmem:[#allocation12 + $0x1cc] ss:$12 sps:$4 sm:$0xff]  }
 0xa74   : > { %10220 = vmatmul.mubr.msk.bf16.vlgmr.msra.gmra.mrb[24].mxu1 %vm2547_vm2, %v3185_v31  ;;  %v10904_v31 = vld [vmem:[#allocation12 + $0x184] ss:$12 sps:$4 sm:$0xff]  }
 0xa75   : > { %9969 = vmatpush3.bf16.msra.mxu1 %v10866_v4  ;;  %3755 = vmatpush1.bf16.msra.mxu0 %v10859_v25  ;;  %v10914_v25 = vld [vmem:[#allocation12 + $0x1c8] ss:$12 sps:$4 sm:$0xff]  }
 0xa76   : > { %9970 = vmatprep.subr.bf16.mxu1 %v10870_v17  ;;  %3756 = vmatprep.subr.bf16.mxu0 %v10864_v29  ;;  %v10917_v29 = vld [vmem:[#allocation12 + $0x1d0] ss:$12 sps:$4 sm:$0xff]  }
 0xa79   : > { %9971 = vmatpush3.bf16.msra.mxu1 %v10871_v7  ;;  %3757 = vmatpush1.bf16.msra.mxu0 %v10862_v30  ;;  %v10920_v30 = vld [vmem:[#allocation12 + $0x1e4] ss:$12 sps:$4 sm:$0xff]  }
 0xa7a   : > { %9972 = vmatprep.subr.bf16.mxu1 %v10875_v8  ;;  %3758 = vmatprep.subr.bf16.mxu0 %v10869_v32  ;;  %v10918_v32 = vld [vmem:[#allocation12 + $0x1e0] ss:$12 sps:$4 sm:$0xff]  }
 0xa7d   : > { %9973 = vmatpush3.bf16.msra.mxu1 %v10876_v12  ;;  %3759 = vmatpush1.bf16.msra.mxu0 %v10867_v34  ;;  %v10921_v34 = vld [vmem:[#allocation12 + $0x1e8] ss:$12 sps:$4 sm:$0xff]  }
 0xa7e   : > { %9974 = vmatprep.subr.bf16.mxu1 %v10880_v0  ;;  %3760 = vmatprep.subr.bf16.mxu0 %v10874_v38  ;;  %v10924_v38 = vld [vmem:[#allocation12 + $0x1fc] ss:$12 sps:$4 sm:$0xff]  }
 0xa81   : > { %9975 = vmatpush3.bf16.msra.mxu1 %v10881_v16  ;;  %3761 = vmatpush1.bf16.msra.mxu0 %v10872_v39  ;;  %v10906_v16 = vld [vmem:[#allocation12 + $0x198] ss:$12 sps:$4 sm:$0xff]  }
 0xa82   : > { %9976 = vmatprep.subr.bf16.mxu1 %v10885_v18  ;;  %3762 = vmatprep.subr.bf16.mxu0 %v10879_v40  ;;  %v10909_v18 = vld [vmem:[#allocation12 + $0x1a0] ss:$12 sps:$4 sm:$0xff]   ;;  %v10922_v39 = vld [vmem:[#allocation12 + $0x1f8] ss:$12 sps:$4 sm:$0xff]  }
 0xa83   : > { %v10925_v40 = vld [vmem:[#allocation12 + $0x200] ss:$12 sps:$4 sm:$0xff]  }
 0xa85   : > { %9977 = vmatpush3.bf16.msra.mxu1 %v10886_v21  ;;  %3763 = vmatpush1.bf16.msra.mxu0 %v10877_v41  ;;  %v10910_v21 = vld [vmem:[#allocation12 + $0x1b0] ss:$12 sps:$4 sm:$0xff]   ;;  %v10928_v41 = vld [vmem:[#allocation12 + $0x214] ss:$12 sps:$4 sm:$0xff]  }
 0xa86   : > { %3764 = vmatprep.subr.bf16.mxu0 %v10884_v42  ;;  %9978 = vmatprep.subr.bf16.mxu1 %v10890_v51  ;;  %v10926_v42 = vld [vmem:[#allocation12 + $0x210] ss:$12 sps:$4 sm:$0xff]  }
 0xa89   : > { %3765 = vmatpush1.bf16.msra.mxu0 %v10882_v14  ;;  %9979 = vmatpush3.bf16.msra.mxu1 %v10891_v52  ;;  %v10929_v14 = vld [vmem:[#allocation12 + $0x218] ss:$12 sps:$4 sm:$0xff]  }
 0xa8a   : > { %3766 = vmatprep.subr.bf16.mxu0 %v10889_v47  ;;  %9980 = vmatprep.subr.bf16.mxu1 %v10895_v61  ;;  %v10932_v47 = vld [vmem:[#allocation12 + $0x22c] ss:$12 sps:$4 sm:$0xff]  }
 0xa8d   : > { %3767 = vmatpush1.bf16.msra.mxu0 %v10887_v36  ;;  %9981 = vmatpush3.bf16.msra.mxu1 %v10896_v55  ;;  %v10930_v36 = vld [vmem:[#allocation12 + $0x228] ss:$12 sps:$4 sm:$0xff]  }
 0xa8e   : > { %3768 = vmatprep.subr.bf16.mxu0 %v10894_v54  ;;  %9982 = vmatprep.subr.bf16.mxu1 %v10900_v57 }
 0xa91   : > { %3769 = vmatpush1.bf16.msra.mxu0 %v10892_v45  ;;  %9983 = vmatpush3.bf16.msra.mxu1 %v10901_v58 }
 0xa92   : > { %3770 = vmatprep.subr.bf16.mxu0 %v10899_v56  ;;  %10223 = vmatprep.subr.bf16.mxu1 %v12298_v46 }
 0xa95   : > { %3771 = vmatpush1.bf16.msra.mxu0 %v10897_v50 }
 0xa96   : > { %3783 = vmatprep.subr.bf16.mxu0 %v10904_v31 }
 0xb2d   : > { %v2855_v37 = vpop.f32.mrb[12].mxu1 }
 0xb2e   : > { %v10185_v35 = vpop.f32.mrb[13].mxu1 }
 0xb2f   : > { %v2858_v53 = vpop.f32.mrb[14].mxu1 }
 0xb30   : > { %v2862_v49 = vpack.c.bf16 %v2858_v53, %v2855_v37  ;;  %v10186_v10 = vpop.f32.mrb[15].mxu1  ;;  %v10933_v37 = vld [vmem:[#allocation12 + $0x230] ss:$12 sps:$4 sm:$0xff]  }
 0xb31   : > { %v3339_v10 = vld [vmem:[#allocation14] sm:$0x7] }
 0xb32   : > { %2863 = vst.msk [vmem:[#allocation2 + $0x8] sm:$0xff] %vm2499_vm1, %v2862_v49  ;;  %v3352_v61 = vrot.slane %v3339_v10, %v12845_v27  ;;  %v3344_v55 = vrot.slane %v3339_v10, %v12848_v28  ;;  %v3348_v50 = vrot.slane %v3339_v10, %v12842_v26  ;;  %v10967_v10 = vld [vmem:[#allocation18 + $0x1e8] ss:$48 sps:$4 sm:$0xff]  }
 0xb37   : > { %v2981_v48 = vpop.f32.mrb[16].mxu1 }
 0xb38   : > { %v10197_v59 = vpop.f32.mrb[17].mxu1 }
 0xb39   : > { %v2984_v44 = vpop.f32.mrb[18].mxu1 }
 0xb3a   : > { %v2988_v2 = vpack.c.bf16 %v2984_v44, %v2981_v48  ;;  %v10198_v60 = vpop.f32.mrb[19].mxu1 }
 0xb3c   : > { %2990 = vrot.lane.b32.xlu1 %v2988_v2, %s12300_s1 }
 0xb3f   : > { %v3101_v62 = vpop.f32.mrb[20].mxu1 }
 0xb40   : > { %2743 = vrot.lane.b32.xlu1 %v2741_v1, %s12300_s1  ;;  %v10209_v3 = vpop.f32.mrb[21].mxu1  ;;  %v10905_v1 = vld [vmem:[#allocation12 + $0x188] ss:$12 sps:$4 sm:$0xff]  }
 0xb41   : > { %v3104_v4 = vpop.f32.mrb[22].mxu1  ;;  %v11806_v3 = vld [vmem:[%s12766_s16] sm:$0xff] }
 0xb42   : > { %v3108_v5 = vpack.c.bf16 %v3104_v4, %v3101_v62  ;;  %v10210_v17 = vpop.f32.mrb[23].mxu1 }
 0xb44   : > { %3109 = vst.msk [vmem:[#allocation2 + $0x10] sm:$0xff] %vm2499_vm1, %v3108_v5 }
 0xb47   : > { %v3227_v6 = vpop.f32.mrb[24].mxu1 }
 0xb48   : > { %v10221_v7 = vpop.f32.mrb[25].mxu1 }
 0xb49   : > { %v3230_v8 = vpop.f32.mrb[26].mxu1 }
 0xb4a   : > { %v3234_v9 = vpack.c.bf16 %v3230_v8, %v3227_v6  ;;  %v10222_v43 = vpop.f32.mrb[27].mxu1  ;;  %v11807_v8 = vld [vmem:[%s12766_s16 + $0x8] sm:$0xff] }
 0xb4c   : > { %3236 = vrot.lane.b32.xlu1 %v3234_v9, %s12300_s1 }
 0xbae   : > { %v2991_v12 = vpop.permute.xlu1 %2990 }
 0xbaf   : > { %2993 = vst.msk [vmem:[#allocation2 + $0x8] sm:$0xff] %vm2746_vm3, %v2991_v12  ;;  %v11808_v12 = vld [vmem:[%s12766_s16 + $0x18] sm:$0xff] }
 0xbb2   : > { %v2744_v0 = vpop.permute.xlu1 %2743 }
 0xbb3   : > { %2747 = vst.msk [vmem:[#allocation2] sm:$0xff] %vm2746_vm3, %v2744_v0 }
 0xbb6   : > { %v3241_v33 = vld [vmem:[#allocation2 + $0x8] sm:$0xff] }
 0xbb7   : > { %3772 = vmatprep.mubr.bf16.mxu0 %v3241_v33  ;;  %3858 = vmatprep.mubr.bf16.mxu1 %v3241_v33  ;;  %v11809_v33 = vld [vmem:[%s12766_s16 + $0x10] sm:$0xff] }
 0xbba   : > { %v3240_v15 = vld [vmem:[#allocation2] sm:$0xff] }
 0xbbb   : > { %3773 = vmatmul.mubr.bf16.vlgmr.msra.gmra.mrb[48].mxu0 %v3240_v15  ;;  %3859 = vmatmul.mubr.bf16.vlgmr.msra.gmra.mrb[28].mxu1 %v3240_v15 }
 0xbbc   : > { %3784 = vmatpush1.bf16.msra.mxu0 %v10902_v63  ;;  %10224 = vmatpush3.bf16.msra.mxu1 %v10905_v1  ;;  %v11810_v1 = vld [vmem:[%s12766_s16 + $0x20] sm:$0xff] }
 0xbbd   : > { %3785 = vmatprep.subr.bf16.mxu0 %v10908_v13  ;;  %10225 = vmatprep.subr.bf16.mxu1 %v12298_v46 }
 0xbbe   : > { %v3237_v20 = vpop.permute.xlu1 %3236  ;;  %3815 = vmatprep.mubr.bf16.mxu0 %v12297_v11  ;;  %10239 = vmatprep.mubr.msk.bf16.mxu1 %vm12299_vm0, %v12298_v46 }
 0xbbf   : > { %3239 = vst.msk [vmem:[#allocation2 + $0x10] sm:$0xff] %vm2746_vm3, %v3237_v20 }
 0xbc0   : > { %3786 = vmatpush1.bf16.msra.mxu0 %v10906_v16  ;;  %10226 = vmatpush3.bf16.msra.mxu1 %v10909_v18  ;;  %v11811_v16 = vld [vmem:[%s12766_s16 + $0x28] sm:$0xff]  ;;  %s12184_s16 = scalar_lea.vmem %s12183_s19, 1536 }
 0xbc1   : > { %3787 = vmatprep.subr.bf16.mxu0 %v10912_v19  ;;  %10227 = vmatprep.subr.bf16.mxu1 %v12298_v46  ;;  %p12186_p7 = scmp.lt.s32.totalorder %s12184_s16, %s12178_s2 }
 0xbc3   : > { %p12187_p9 = por %p12186_p7, %p12185_p12 }
 0xbc4   : > { %3788 = vmatpush1.bf16.msra.mxu0 %v10910_v21  ;;  %10228 = vmatpush3.bf16.msra.mxu1 %v10913_v22  ;;  %v10934_v22 = vld [vmem:[#allocation18] ss:$48 sps:$4 sm:$0xff]  }
 0xbc5   : > { %3789 = vmatprep.subr.bf16.mxu0 %v10916_v23  ;;  %10229 = vmatprep.subr.bf16.mxu1 %v12298_v46  ;;  %v10936_v23 = vld [vmem:[#allocation18 + $0x4] ss:$48 sps:$4 sm:$0xff]   ;;  %p12188_p4 = pnand %p12187_p9, %p12181_p11 }
 0xbc6   : > { %v3242_v51 = vld [vmem:[#allocation2 + $0x10] sm:$0xff] }
 0xbc8   : > { %3790 = vmatpush1.bf16.msra.mxu0 %v10914_v25  ;;  %10230 = vmatpush3.bf16.msra.mxu1 %v10917_v29  ;;  %v10937_v25 = vld [vmem:[#allocation18 + $0x8] ss:$48 sps:$4 sm:$0xff]   ;;  %v10939_v29 = vld [vmem:[#allocation18 + $0xc] ss:$48 sps:$4 sm:$0xff]  }
 0xbc9   : > { %3791 = vmatprep.subr.bf16.mxu0 %v10920_v30  ;;  %10231 = vmatprep.subr.bf16.mxu1 %v12298_v46  ;;  %v10942_v30 = vld [vmem:[#allocation18 + $0x64] ss:$48 sps:$4 sm:$0xff]  }
 0xbcc   : > { %3792 = vmatpush1.bf16.msra.mxu0 %v10918_v32  ;;  %10232 = vmatpush3.bf16.msra.mxu1 %v10921_v34  ;;  %v10945_v32 = vld [vmem:[#allocation18 + $0x6c] ss:$48 sps:$4 sm:$0xff]   ;;  %v10940_v34 = vld [vmem:[#allocation18 + $0x60] ss:$48 sps:$4 sm:$0xff]  }
 0xbcd   : > { %3793 = vmatprep.subr.bf16.mxu0 %v10924_v38  ;;  %10233 = vmatprep.subr.bf16.mxu1 %v12298_v46  ;;  %v10943_v38 = vld [vmem:[#allocation18 + $0x68] ss:$48 sps:$4 sm:$0xff]  }
 0xbd0   : > { %3794 = vmatpush1.bf16.msra.mxu0 %v10922_v39  ;;  %10234 = vmatpush3.bf16.msra.mxu1 %v10925_v40  ;;  %v10948_v39 = vld [vmem:[#allocation18 + $0xc4] ss:$48 sps:$4 sm:$0xff]   ;;  %v10951_v40 = vld [vmem:[#allocation18 + $0xcc] ss:$48 sps:$4 sm:$0xff]  }
 0xbd1   : > { %3795 = vmatprep.subr.bf16.mxu0 %v10928_v41  ;;  %10235 = vmatprep.subr.bf16.mxu1 %v12298_v46  ;;  %v10946_v41 = vld [vmem:[#allocation18 + $0xc0] ss:$48 sps:$4 sm:$0xff]  }
 0xbd4   : > { %3796 = vmatpush1.bf16.msra.mxu0 %v10926_v42  ;;  %10236 = vmatpush3.bf16.msra.mxu1 %v10929_v14  ;;  %v10949_v42 = vld [vmem:[#allocation18 + $0xc8] ss:$48 sps:$4 sm:$0xff]   ;;  %v10954_v14 = vld [vmem:[#allocation18 + $0x124] ss:$48 sps:$4 sm:$0xff]  }
 0xbd5   : > { %3797 = vmatprep.subr.bf16.mxu0 %v10932_v47  ;;  %10237 = vmatprep.subr.bf16.mxu1 %v12298_v46  ;;  %v10957_v47 = vld [vmem:[#allocation18 + $0x12c] ss:$48 sps:$4 sm:$0xff]  }
 0xbd8   : > { %3798 = vmatpush1.bf16.msra.mxu0 %v10930_v36  ;;  %10238 = vmatpush3.bf16.msra.mxu1 %v10933_v37  ;;  %v10952_v36 = vld [vmem:[#allocation18 + $0x120] ss:$48 sps:$4 sm:$0xff]   ;;  %v10955_v37 = vld [vmem:[#allocation18 + $0x128] ss:$48 sps:$4 sm:$0xff]  }
 0xbd9   : > { %5797 = vmatprep.subr.bf16.mxu1 %v10936_v23  ;;  %5883 = vmatprep.subr.bf16.mxu0 %v10939_v29 }
 0xbdb   : > { %3816 = vmatmul.mubr.bf16.vlgmr.msra.gmra.mrb[48].mxu0 %v3242_v51  ;;  %10240 = vmatmul.mubr.bf16.vlgmr.msra.gmra.mrb[32].mxu1 %v3242_v51  ;;  %v10960_v51 = vld [vmem:[#allocation18 + $0x184] ss:$48 sps:$4 sm:$0xff]  }
 0xbdc   : > { %5798 = vmatpush1.bf16.msra.mxu1 %v10934_v22  ;;  %5884 = vmatpush1.bf16.msra.mxu0 %v10937_v25 }
 0xbdd   : > { %5799 = vmatprep.subr.bf16.mxu1 %v10942_v30  ;;  %5885 = vmatprep.subr.bf16.mxu0 %v10945_v32 }
 0xbe0   : > { %5800 = vmatpush1.bf16.msra.mxu1 %v10940_v34  ;;  %5886 = vmatpush1.bf16.msra.mxu0 %v10943_v38  ;;  %v10996_v38 = vld [vmem:[#allocation18 + $0x3c4] ss:$48 sps:$4 sm:$0xff]  }
 0xbe1   : > { %5801 = vmatprep.subr.bf16.mxu1 %v10948_v39  ;;  %5887 = vmatprep.subr.bf16.mxu0 %v10951_v40  ;;  %v10999_v39 = vld [vmem:[#allocation18 + $0x3cc] ss:$48 sps:$4 sm:$0xff]   ;;  %v10994_v40 = vld [vmem:[#allocation18 + $0x3c0] ss:$48 sps:$4 sm:$0xff]  }
 0xbe4   : > { %5802 = vmatpush1.bf16.msra.mxu1 %v10946_v41  ;;  %5888 = vmatpush1.bf16.msra.mxu0 %v10949_v42  ;;  %v10997_v41 = vld [vmem:[#allocation18 + $0x3c8] ss:$48 sps:$4 sm:$0xff]   ;;  %v11002_v42 = vld [vmem:[#allocation18 + $0x424] ss:$48 sps:$4 sm:$0xff]  }
 0xbe5   : > { %5803 = vmatprep.subr.bf16.mxu1 %v10954_v14  ;;  %5889 = vmatprep.subr.bf16.mxu0 %v10957_v47  ;;  %v11005_v14 = vld [vmem:[#allocation18 + $0x42c] ss:$48 sps:$4 sm:$0xff]   ;;  %v11000_v47 = vld [vmem:[#allocation18 + $0x420] ss:$48 sps:$4 sm:$0xff]  }
 0xbe8   : > { %5804 = vmatpush1.bf16.msra.mxu1 %v10952_v36  ;;  %5890 = vmatpush1.bf16.msra.mxu0 %v10955_v37  ;;  %v11003_v36 = vld [vmem:[#allocation18 + $0x428] ss:$48 sps:$4 sm:$0xff]   ;;  %v11008_v37 = vld [vmem:[#allocation18 + $0x484] ss:$48 sps:$4 sm:$0xff]  }
 0xbe9   : > { %5805 = vmatprep.subr.bf16.mxu1 %v10960_v51  ;;  %v11006_v51 = vld [vmem:[#allocation18 + $0x480] ss:$48 sps:$4 sm:$0xff]  }
 0xc8e   : > { %v9984_v35 = vpop.f32.mrb[28].mxu1 }
 0xc8f   : > { %v9985_v52 = vpop.f32.mrb[29].mxu1 }
 0xc90   : > { %v9986_v53 = vadd.f32 %v9985_v52, %v9984_v35  ;;  %v9987_v45 = vpop.f32.mrb[30].mxu1  ;;  %v10963_v35 = vld [vmem:[#allocation18 + $0x18c] ss:$48 sps:$4 sm:$0xff]   ;;  %v10958_v52 = vld [vmem:[#allocation18 + $0x180] ss:$48 sps:$4 sm:$0xff]  }
 0xc91   : > { %v9988_v54 = vpop.f32.mrb[31].mxu1  ;;  %5891 = vmatprep.subr.bf16.mxu0 %v10963_v35  ;;  %5806 = vmatpush1.bf16.msra.mxu1 %v10958_v52  ;;  %v11009_v35 = vld [vmem:[#allocation18 + $0x488] ss:$48 sps:$4 sm:$0xff]   ;;  %v11011_v52 = vld [vmem:[#allocation18 + $0x48c] ss:$48 sps:$4 sm:$0xff]  }
 0xc92   : > { %v9989_v49 = vadd.f32 %v9988_v54, %v9987_v45  ;;  %v3861_v46 = vadd.f32 %v9986_v53, %v3352_v61  ;;  %v10961_v53 = vld [vmem:[#allocation18 + $0x188] ss:$48 sps:$4 sm:$0xff]   ;;  %v10966_v45 = vld [vmem:[#allocation18 + $0x1e4] ss:$48 sps:$4 sm:$0xff]   ;;  %v10969_v54 = vld [vmem:[#allocation18 + $0x1ec] ss:$48 sps:$4 sm:$0xff]  }
 0xc93   : > { %5892 = vmatpush1.bf16.msra.mxu0 %v10961_v53  ;;  %5807 = vmatprep.subr.bf16.mxu1 %v10966_v45  ;;  %v11014_v53 = vld [vmem:[#allocation18 + $0x4e4] ss:$48 sps:$4 sm:$0xff]   ;;  %v11017_v45 = vld [vmem:[#allocation18 + $0x4ec] ss:$48 sps:$4 sm:$0xff]  }
 0xc94   : > { %v3864_v44 = vadd.f32 %v9989_v49, %v3352_v61  ;;  %v10964_v49 = vld [vmem:[#allocation18 + $0x1e0] ss:$48 sps:$4 sm:$0xff]   ;;  %v10972_v61 = vld [vmem:[#allocation18 + $0x244] ss:$48 sps:$4 sm:$0xff]   ;;  %5893 = vmatprep.subr.bf16.mxu0 %v10969_v54 }
 0xc95   : > { %5808 = vmatpush1.bf16.msra.mxu1 %v10964_v49  ;;  %v11012_v54 = vld [vmem:[#allocation18 + $0x4e0] ss:$48 sps:$4 sm:$0xff]   ;;  %v11015_v49 = vld [vmem:[#allocation18 + $0x4e8] ss:$48 sps:$4 sm:$0xff]  }
 0xc96   : > { %5809 = vmatprep.subr.bf16.mxu1 %v10972_v61  ;;  %v11023_v61 = vld [vmem:[#allocation18 + $0x54c] ss:$48 sps:$4 sm:$0xff]  }
 0xc97   : > { %5894 = vmatpush1.bf16.msra.mxu0 %v10967_v10  ;;  %v11020_v10 = vld [vmem:[#allocation18 + $0x544] ss:$48 sps:$4 sm:$0xff]  }
 0xcae   : > { %v3817_v56 = vpop.f32.mrb[48].mxu0  ;;  %v3901_v57 = vpop.f32.mrb[32].mxu1 }
 0xcaf   : > { %v10247_v58 = vadd.f32 %v3817_v56, %v3344_v55  ;;  %v3902_v48 = vadd.f32 %v3901_v57, %v3861_v46  ;;  %v3819_v31 = vpop.f32.mrb[49].mxu0  ;;  %v10241_v59 = vpop.f32.mrb[33].mxu1  ;;  %v10973_v46 = vld [vmem:[#allocation18 + $0x248] ss:$48 sps:$4 sm:$0xff]   ;;  %v10978_v56 = vld [vmem:[#allocation18 + $0x2a4] ss:$48 sps:$4 sm:$0xff]  }
 0xcb0   : > { %v10248_v2 = vadd.f32 %v3819_v31, %v3348_v50  ;;  %v3821_v60 = vpop.f32.mrb[50].mxu0  ;;  %v3904_v62 = vpop.f32.mrb[34].mxu1  ;;  %v10981_v57 = vld [vmem:[#allocation18 + $0x2ac] ss:$48 sps:$4 sm:$0xff]   ;;  %v10984_v31 = vld [vmem:[#allocation18 + $0x304] ss:$48 sps:$4 sm:$0xff]  }
 0xcb1   : > { %v13064_v4 = vadd.f32 %v11806_v3, %v10247_v58  ;;  %v10249_v5 = vadd.f32 %v3821_v60, %v3344_v55  ;;  %v3905_v17 = vadd.f32 %v3904_v62, %v3864_v44  ;;  %v3823_v6 = vpop.f32.mrb[51].mxu0  ;;  %v10242_v7 = vpop.f32.mrb[35].mxu1  ;;  %v13073_v63 = vadd.f32 %v11809_v33, %v3902_v48  ;;  %v10975_v55 = vld [vmem:[#allocation18 + $0x24c] ss:$48 sps:$4 sm:$0xff]   ;;  %v10976_v58 = vld [vmem:[#allocation18 + $0x2a0] ss:$48 sps:$4 sm:$0xff]  }
 0xcb2   : > { %v13067_v9 = vadd.f32 %v11807_v8, %v10248_v2  ;;  %v10250_v43 = vadd.f32 %v3823_v6, %v3348_v50  ;;  %v10970_v50 = vld [vmem:[#allocation18 + $0x240] ss:$48 sps:$4 sm:$0xff]   ;;  %5895 = vmatprep.subr.bf16.mxu0 %v10975_v55  ;;  %v10979_v48 = vld [vmem:[#allocation18 + $0x2a8] ss:$48 sps:$4 sm:$0xff]   ;;  %v10987_v59 = vld [vmem:[#allocation18 + $0x30c] ss:$48 sps:$4 sm:$0xff]  }
 0xcb3   : > { %v13070_v0 = vadd.f32 %v11808_v12, %v10249_v5  ;;  %v13081_v18 = vadd.f32 %v11811_v16, %v3905_v17  ;;  %5810 = vmatpush1.bf16.msra.mxu1 %v10970_v50  ;;  %5896 = vmatpush1.bf16.msra.mxu0 %v10973_v46  ;;  %v10982_v44 = vld [vmem:[#allocation18 + $0x300] ss:$48 sps:$4 sm:$0xff]   ;;  %v10985_v2 = vld [vmem:[#allocation18 + $0x308] ss:$48 sps:$4 sm:$0xff]   ;;  %v10990_v60 = vld [vmem:[#allocation18 + $0x364] ss:$48 sps:$4 sm:$0xff]  }
 0xcb4   : > { %v13076_v13 = vadd.f32 %v11810_v1, %v10250_v43  ;;  %v3916_v15 = vadd.f32 %v13067_v9, %v13064_v4  ;;  %5811 = vmatprep.subr.bf16.mxu1 %v10978_v56  ;;  %5897 = vmatprep.subr.bf16.mxu0 %v10981_v57  ;;  %v10993_v62 = vld [vmem:[#allocation18 + $0x36c] ss:$48 sps:$4 sm:$0xff]   ;;  %v10988_v3 = vld [vmem:[#allocation18 + $0x360] ss:$48 sps:$4 sm:$0xff]   ;;  %v10991_v5 = vld [vmem:[#allocation18 + $0x368] ss:$48 sps:$4 sm:$0xff]  }
 0xcb5   : > { %v11018_v55 = vld [vmem:[#allocation18 + $0x540] ss:$48 sps:$4 sm:$0xff]   ;;  %v11021_v50 = vld [vmem:[#allocation18 + $0x548] ss:$48 sps:$4 sm:$0xff]   ;;  %v11026_v46 = vld [vmem:[#allocation18 + $0x5a4] ss:$48 sps:$4 sm:$0xff]  }
 0xcb6   : > { %v3917_v19 = vadd.f32 %v3916_v15, %v13073_v63  ;;  %v3920_v20 = vadd.f32 %v13076_v13, %v13070_v0  ;;  %v11029_v56 = vld [vmem:[#allocation18 + $0x5ac] ss:$48 sps:$4 sm:$0xff]   ;;  %v11024_v57 = vld [vmem:[#allocation18 + $0x5a0] ss:$48 sps:$4 sm:$0xff]  }
 0xcb7   : > { %5812 = vmatpush1.bf16.msra.mxu1 %v10976_v58  ;;  %5898 = vmatpush1.bf16.msra.mxu0 %v10979_v48  ;;  %v11027_v58 = vld [vmem:[#allocation18 + $0x5a8] ss:$48 sps:$4 sm:$0xff]   ;;  %v11032_v48 = vld [vmem:[#allocation18 + $0x604] ss:$48 sps:$4 sm:$0xff]  }
 0xcb8   : > { %3918 = vadd.xlane.f32.xlu1 %v3917_v19  ;;  %v3921_v21 = vadd.f32 %v3920_v20, %v13081_v18  ;;  %5813 = vmatprep.subr.bf16.mxu1 %v10984_v31  ;;  %v11035_v31 = vld [vmem:[#allocation18 + $0x60c] ss:$48 sps:$4 sm:$0xff]  }
 0xcb9   : > { %5899 = vmatprep.subr.bf16.mxu0 %v10987_v59 }
 0xcba   : > { %3922 = vadd.xlane.f32.xlu0 %v3921_v21 }
 0xcbb   : > { %5814 = vmatpush1.bf16.msra.mxu1 %v10982_v44  ;;  %5900 = vmatpush1.bf16.msra.mxu0 %v10985_v2 }
 0xcbc   : > { %5815 = vmatprep.subr.bf16.mxu1 %v10990_v60  ;;  %5901 = vmatprep.subr.bf16.mxu0 %v10993_v62 }
 0xcbf   : > { %5816 = vmatpush1.bf16.msra.mxu1 %v10988_v3  ;;  %5902 = vmatpush1.bf16.msra.mxu0 %v10991_v5  ;;  %v13117_v5 = vld [vmem:[#allocation15] sm:$0x7] }
 0xcc0   : > { %5817 = vmatprep.subr.bf16.mxu1 %v10996_v38  ;;  %5903 = vmatprep.subr.bf16.mxu0 %v10999_v39 }
 0xcc3   : > { %5818 = vmatpush1.bf16.msra.mxu1 %v10994_v40  ;;  %5904 = vmatpush1.bf16.msra.mxu0 %v10997_v41 }
 0xcc4   : > { %5819 = vmatprep.subr.bf16.mxu1 %v11002_v42  ;;  %5905 = vmatprep.subr.bf16.mxu0 %v11005_v14  ;;  %v11033_v42 = vld [vmem:[#allocation18 + $0x608] ss:$48 sps:$4 sm:$0xff]  }
 0xcc7   : > { %5820 = vmatpush1.bf16.msra.mxu1 %v11000_v47  ;;  %5906 = vmatpush1.bf16.msra.mxu0 %v11003_v36  ;;  %v11038_v47 = vld [vmem:[#allocation18 + $0x664] ss:$48 sps:$4 sm:$0xff]   ;;  %v11041_v36 = vld [vmem:[#allocation18 + $0x66c] ss:$48 sps:$4 sm:$0xff]  }
 0xcc8   : > { %5821 = vmatprep.subr.bf16.mxu1 %v11008_v37  ;;  %5907 = vmatprep.subr.bf16.mxu0 %v11011_v52  ;;  %v11039_v37 = vld [vmem:[#allocation18 + $0x668] ss:$48 sps:$4 sm:$0xff]   ;;  %v11042_v52 = vld [vmem:[#allocation18 + $0x6c0] ss:$48 sps:$4 sm:$0xff]  }
 0xccb   : > { %5822 = vmatpush1.bf16.msra.mxu1 %v11006_v51  ;;  %5908 = vmatpush1.bf16.msra.mxu0 %v11009_v35  ;;  %v11044_v51 = vld [vmem:[#allocation18 + $0x6c4] ss:$48 sps:$4 sm:$0xff]   ;;  %v11047_v35 = vld [vmem:[#allocation18 + $0x6cc] ss:$48 sps:$4 sm:$0xff]  }
 0xccc   : > { %5823 = vmatprep.subr.bf16.mxu1 %v11014_v53  ;;  %5909 = vmatprep.subr.bf16.mxu0 %v11017_v45  ;;  %v11045_v53 = vld [vmem:[#allocation18 + $0x6c8] ss:$48 sps:$4 sm:$0xff]   ;;  %v11050_v45 = vld [vmem:[#allocation18 + $0x724] ss:$48 sps:$4 sm:$0xff]  }
 0xccf   : > { %5824 = vmatpush1.bf16.msra.mxu1 %v11012_v54  ;;  %5910 = vmatpush1.bf16.msra.mxu0 %v11015_v49  ;;  %v11053_v54 = vld [vmem:[#allocation18 + $0x72c] ss:$48 sps:$4 sm:$0xff]   ;;  %v11048_v49 = vld [vmem:[#allocation18 + $0x720] ss:$48 sps:$4 sm:$0xff]  }
 0xcd0   : > { %5825 = vmatprep.subr.bf16.mxu1 %v11020_v10  ;;  %5911 = vmatprep.subr.bf16.mxu0 %v11023_v61  ;;  %v11051_v10 = vld [vmem:[#allocation18 + $0x728] ss:$48 sps:$4 sm:$0xff]   ;;  %v11056_v61 = vld [vmem:[#allocation18 + $0x784] ss:$48 sps:$4 sm:$0xff]  }
 0xcd3   : > { %5826 = vmatpush1.bf16.msra.mxu1 %v11018_v55  ;;  %5912 = vmatpush1.bf16.msra.mxu0 %v11021_v50  ;;  %v11059_v55 = vld [vmem:[#allocation18 + $0x78c] ss:$48 sps:$4 sm:$0xff]   ;;  %v11054_v50 = vld [vmem:[#allocation18 + $0x780] ss:$48 sps:$4 sm:$0xff]  }
 0xcd4   : > { %5827 = vmatprep.subr.bf16.mxu1 %v11026_v46  ;;  %5913 = vmatprep.subr.bf16.mxu0 %v11029_v56  ;;  %v11057_v46 = vld [vmem:[#allocation18 + $0x788] ss:$48 sps:$4 sm:$0xff]   ;;  %v11062_v56 = vld [vmem:[#allocation18 + $0x7e4] ss:$48 sps:$4 sm:$0xff]  }
 0xcd7   : > { %5828 = vmatpush1.bf16.msra.mxu1 %v11024_v57  ;;  %5914 = vmatpush1.bf16.msra.mxu0 %v11027_v58  ;;  %v11065_v57 = vld [vmem:[#allocation18 + $0x7ec] ss:$48 sps:$4 sm:$0xff]   ;;  %v11060_v58 = vld [vmem:[#allocation18 + $0x7e0] ss:$48 sps:$4 sm:$0xff]  }
 0xcd8   : > { %5840 = vmatprep.subr.bf16.mxu1 %v11032_v48  ;;  %5926 = vmatprep.subr.bf16.mxu0 %v11035_v31  ;;  %v11063_v48 = vld [vmem:[#allocation18 + $0x7e8] ss:$48 sps:$4 sm:$0xff]   ;;  %v11068_v31 = vld [vmem:[#allocation18 + $0x844] ss:$48 sps:$4 sm:$0xff]  }
 0xd45   : > { %v3919_v17 = vpop.xlane.xlu1 %3918 }
 0xd46   : > { %v3924_v6 = vmul.f32 0.0026041667, %v3919_v17  ;;  %v13119_v17 = vld [vmem:[#allocation17] sm:$0x7] }
 0xd47   : > { %v3923_v7 = vpop.xlane.xlu0 %3922 }
 0xd48   : > { %v13088_v8 = vsub.f32 %v13064_v4, %v3924_v6  ;;  %v13091_v43 = vsub.f32 %v13067_v9, %v3924_v6  ;;  %v3925_v12 = vmul.f32 0.0026041667, %v3923_v7  ;;  %v13094_v33 = vsub.f32 %v13073_v63, %v3924_v6 }
 0xd49   : > { %v3966_v6 = vrot.slane %v13117_v5, %v12842_v26  ;;  %v3962_v7 = vrot.slane %v13117_v5, %v12848_v28 }
 0xd4a   : > { %v13097_v1 = vsub.f32 %v13070_v0, %v3925_v12  ;;  %v13100_v15 = vsub.f32 %v13076_v13, %v3925_v12  ;;  %v13103_v16 = vsub.f32 %v13081_v18, %v3925_v12  ;;  %v3932_v19 = vmul.f32 %v13088_v8, %v13088_v8 }
 0xd4b   : > { %v3933_v20 = vmul.f32 %v13091_v43, %v13091_v43  ;;  %v3934_v23 = vmul.f32 %v13094_v33, %v13094_v33 }
 0xd4c   : > { %v3935_v21 = vmul.f32 %v13097_v1, %v13097_v1  ;;  %v3936_v22 = vmul.f32 %v13100_v15, %v13100_v15  ;;  %v3937_v29 = vmul.f32 %v13103_v16, %v13103_v16 }
 0xd4d   : > { %v3938_v25 = vadd.f32 %v3933_v20, %v3932_v19 }
 0xd4e   : > { %v3942_v30 = vadd.f32 %v3936_v22, %v3935_v21 }
 0xd4f   : > { %v3939_v32 = vadd.f32 %v3938_v25, %v3934_v23  ;;  %v3988_v23 = vrot.slane %v13119_v17, %v12842_v26 }
 0xd50   : > { %v3943_v34 = vadd.f32 %v3942_v30, %v3937_v29  ;;  %v3984_v29 = vrot.slane %v13119_v17, %v12848_v28 }
 0xd51   : > { %3940 = vadd.xlane.f32.xlu0 %v3939_v32 }
 0xd52   : > { %3944 = vadd.xlane.f32.xlu1 %v3943_v34 }
 0xdde   : > { %v3941_v59 = vpop.xlane.xlu0 %3940 }
 0xddf   : > { %v3946_v44 = vmul.f32 0.0026041667, %v3941_v59  ;;  %v3945_v2 = vpop.xlane.xlu1 %3944  ;;  %v11071_v59 = vld [vmem:[#allocation18 + $0x84c] ss:$48 sps:$4 sm:$0xff]  }
 0xde0   : > { %v3947_v60 = vmul.f32 0.0026041667, %v3945_v2 }
 0xde1   : > { %v3948_v62 = vadd.f32 1e-05, %v3946_v44 }
 0xde2   : > { %v3949_v3 = vadd.f32 1e-05, %v3947_v60  ;;  %v3970_v60 = vrot.slane %v13117_v5, %v12845_v27 }
 0xde3   : > { %11802 = vrsqrt.f32 %v3948_v62  ;;  %v11066_v62 = vld [vmem:[#allocation18 + $0x840] ss:$48 sps:$4 sm:$0xff]  }
 0xde4   : > { %11804 = vrsqrt.f32 %v3949_v3  ;;  %v11069_v3 = vld [vmem:[#allocation18 + $0x848] ss:$48 sps:$4 sm:$0xff]  }
 0xded   : > { %v13125_v12 = vpop.eup %11802 }
 0xdee   : > { %v13127_v19 = vpop.eup %11804  ;;  %v3953_v20 = vmul.f32 %v13125_v12, %v13091_v43  ;;  %v3952_v21 = vmul.f32 %v13125_v12, %v13088_v8  ;;  %v3954_v2 = vmul.f32 %v13125_v12, %v13094_v33  ;;  %v11075_v33 = vld [vmem:[#allocation18 + $0x8a8] ss:$48 sps:$4 sm:$0xff]   ;;  %v11080_v12 = vld [vmem:[#allocation18 + $0x14] ss:$48 sps:$4 sm:$0xff]  }
 0xdef   : > { %v3956_v22 = vmul.f32 %v13127_v19, %v13100_v15  ;;  %v3955_v25 = vmul.f32 %v13127_v19, %v13097_v1  ;;  %v11030_v15 = vld [vmem:[#allocation18 + $0x600] ss:$48 sps:$4 sm:$0xff]   ;;  %v3957_v44 = vmul.f32 %v13127_v19, %v13103_v16  ;;  %v11083_v19 = vld [vmem:[#allocation18 + $0x1c] ss:$48 sps:$4 sm:$0xff]  }
 0xdf0   : > { %v3975_v30 = vmul.f32 %v3966_v6, %v3953_v20  ;;  %v3974_v32 = vmul.f32 %v3962_v7, %v3952_v21  ;;  %v11036_v1 = vld [vmem:[#allocation18 + $0x660] ss:$48 sps:$4 sm:$0xff]   ;;  %v3976_v21 = vmul.f32 %v3970_v60, %v3954_v2  ;;  %v11137_v2 = vld [vmem:[#allocation18 + $0x37c] ss:$48 sps:$4 sm:$0xff]  }
 0xdf1   : > { %v3978_v34 = vmul.f32 %v3966_v6, %v3956_v22  ;;  %v3977_v38 = vmul.f32 %v3962_v7, %v3955_v25  ;;  %v11074_v6 = vld [vmem:[#allocation18 + $0x8a4] ss:$48 sps:$4 sm:$0xff]   ;;  %v11077_v7 = vld [vmem:[#allocation18 + $0x8ac] ss:$48 sps:$4 sm:$0xff]   ;;  %v3979_v20 = vmul.f32 %v3970_v60, %v3957_v44  ;;  %v3992_v22 = vrot.slane %v13119_v17, %v12845_v27  ;;  %v11072_v16 = vld [vmem:[#allocation18 + $0x8a0] ss:$48 sps:$4 sm:$0xff]  }
 0xdf2   : > { %v3997_v43 = vadd.f32 %v3988_v23, %v3975_v30  ;;  %v3996_v40 = vadd.f32 %v3984_v29, %v3974_v32  ;;  %v11078_v25 = vld [vmem:[#allocation18 + $0x10] ss:$48 sps:$4 sm:$0xff]   ;;  %v11081_v30 = vld [vmem:[#allocation18 + $0x18] ss:$48 sps:$4 sm:$0xff]   ;;  %v11086_v32 = vld [vmem:[#allocation18 + $0x74] ss:$48 sps:$4 sm:$0xff]  }
 0xdf3   : > { %v4000_v39 = vadd.f32 %v3988_v23, %v3978_v34  ;;  %v3999_v8 = vadd.f32 %v3984_v29, %v3977_v38  ;;  %v4001_v5 = vadd.f32 %v3992_v22, %v3979_v20  ;;  %v3998_v23 = vadd.f32 %v3992_v22, %v3976_v21  ;;  %v11089_v17 = vld [vmem:[#allocation18 + $0x7c] ss:$48 sps:$4 sm:$0xff]   ;;  %v11084_v34 = vld [vmem:[#allocation18 + $0x70] ss:$48 sps:$4 sm:$0xff]   ;;  %v11087_v38 = vld [vmem:[#allocation18 + $0x78] ss:$48 sps:$4 sm:$0xff]  }
 0xdf4   : > { %v11134_v44 = vld [vmem:[#allocation18 + $0x374] ss:$48 sps:$4 sm:$0xff]   ;;  %v11132_v60 = vld [vmem:[#allocation18 + $0x370] ss:$48 sps:$4 sm:$0xff]   ;;  %v11141_v20 = vld [vmem:[#allocation18 + $0x3d8] ss:$48 sps:$4 sm:$0xff]  }
 0xdf5   : > { %v13141_v41 = vpack.c.bf16 %v4000_v39, %v3997_v43  ;;  %v13143_v14 = vpack.c.bf16 %v3999_v8, %v3996_v40  ;;  %v13159_v29 = vpack.c.bf16 %v4001_v5, %v3998_v23  ;;  %v11092_v43 = vld [vmem:[#allocation18 + $0xd4] ss:$48 sps:$4 sm:$0xff]   ;;  %v11095_v39 = vld [vmem:[#allocation18 + $0xdc] ss:$48 sps:$4 sm:$0xff]   ;;  %v11090_v40 = vld [vmem:[#allocation18 + $0xd0] ss:$48 sps:$4 sm:$0xff]  }
 0xdf6   : > { %v11093_v8 = vld [vmem:[#allocation18 + $0xd8] ss:$48 sps:$4 sm:$0xff]   ;;  %v11146_v21 = vld [vmem:[#allocation18 + $0x434] ss:$48 sps:$4 sm:$0xff]   ;;  %v11149_v22 = vld [vmem:[#allocation18 + $0x43c] ss:$48 sps:$4 sm:$0xff]  }
 0xdf7   : > { %5829 = vmatprep.mubr.bf16.mxu1 %v13141_v41  ;;  %5915 = vmatprep.mubr.bf16.mxu0 %v13141_v41  ;;  %v11152_v5 = vld [vmem:[#allocation18 + $0x494] ss:$48 sps:$4 sm:$0xff]   ;;  %v11153_v23 = vld [vmem:[#allocation18 + $0x498] ss:$48 sps:$4 sm:$0xff]  }
 0xdf8   : > { %5830 = vmatmul.mubr.bf16.vlgmr.msra.gmra.mrb[36].mxu1 %v13143_v14  ;;  %5916 = vmatmul.mubr.bf16.vlgmr.msra.gmra.mrb[52].mxu0 %v13143_v14 }
 0xdf9   : > { %5841 = vmatpush1.bf16.msra.mxu1 %v11030_v15  ;;  %5927 = vmatpush1.bf16.msra.mxu0 %v11033_v42  ;;  %v11098_v15 = vld [vmem:[#allocation18 + $0x134] ss:$48 sps:$4 sm:$0xff]   ;;  %v11101_v42 = vld [vmem:[#allocation18 + $0x13c] ss:$48 sps:$4 sm:$0xff]  }
 0xdfa   : > { %5842 = vmatprep.subr.bf16.mxu1 %v11038_v47  ;;  %5928 = vmatprep.subr.bf16.mxu0 %v11041_v36  ;;  %v11096_v47 = vld [vmem:[#allocation18 + $0x130] ss:$48 sps:$4 sm:$0xff]   ;;  %v11099_v36 = vld [vmem:[#allocation18 + $0x138] ss:$48 sps:$4 sm:$0xff]  }
 0xdfb   : > { %5872 = vmatprep.mubr.bf16.mxu1 %v12297_v11  ;;  %5958 = vmatprep.mubr.bf16.mxu0 %v12297_v11 }
 0xdfd   : > { %5843 = vmatpush1.bf16.msra.mxu1 %v11036_v1  ;;  %5929 = vmatpush1.bf16.msra.mxu0 %v11039_v37  ;;  %v11104_v1 = vld [vmem:[#allocation18 + $0x194] ss:$48 sps:$4 sm:$0xff]   ;;  %v11107_v37 = vld [vmem:[#allocation18 + $0x19c] ss:$48 sps:$4 sm:$0xff]  }
 0xdfe   : > { %5844 = vmatprep.subr.bf16.mxu1 %v11044_v51  ;;  %5930 = vmatprep.subr.bf16.mxu0 %v11047_v35  ;;  %v11102_v51 = vld [vmem:[#allocation18 + $0x190] ss:$48 sps:$4 sm:$0xff]   ;;  %v11105_v35 = vld [vmem:[#allocation18 + $0x198] ss:$48 sps:$4 sm:$0xff]  }
 0xe01   : > { %5845 = vmatpush1.bf16.msra.mxu1 %v11042_v52  ;;  %5931 = vmatpush1.bf16.msra.mxu0 %v11045_v53  ;;  %v11110_v52 = vld [vmem:[#allocation18 + $0x1f4] ss:$48 sps:$4 sm:$0xff]   ;;  %v11113_v53 = vld [vmem:[#allocation18 + $0x1fc] ss:$48 sps:$4 sm:$0xff]  }
 0xe02   : > { %5846 = vmatprep.subr.bf16.mxu1 %v11050_v45  ;;  %5932 = vmatprep.subr.bf16.mxu0 %v11053_v54  ;;  %v11108_v45 = vld [vmem:[#allocation18 + $0x1f0] ss:$48 sps:$4 sm:$0xff]   ;;  %v11111_v54 = vld [vmem:[#allocation18 + $0x1f8] ss:$48 sps:$4 sm:$0xff]  }
 0xe05   : > { %5847 = vmatpush1.bf16.msra.mxu1 %v11048_v49  ;;  %5933 = vmatpush1.bf16.msra.mxu0 %v11051_v10  ;;  %v11116_v49 = vld [vmem:[#allocation18 + $0x254] ss:$48 sps:$4 sm:$0xff]   ;;  %v11119_v10 = vld [vmem:[#allocation18 + $0x25c] ss:$48 sps:$4 sm:$0xff]  }
 0xe06   : > { %5848 = vmatprep.subr.bf16.mxu1 %v11056_v61  ;;  %5934 = vmatprep.subr.bf16.mxu0 %v11059_v55  ;;  %v11114_v61 = vld [vmem:[#allocation18 + $0x250] ss:$48 sps:$4 sm:$0xff]   ;;  %v11117_v55 = vld [vmem:[#allocation18 + $0x258] ss:$48 sps:$4 sm:$0xff]  }
 0xe09   : > { %5849 = vmatpush1.bf16.msra.mxu1 %v11054_v50  ;;  %5935 = vmatpush1.bf16.msra.mxu0 %v11057_v46  ;;  %v11122_v50 = vld [vmem:[#allocation18 + $0x2b4] ss:$48 sps:$4 sm:$0xff]   ;;  %v11125_v46 = vld [vmem:[#allocation18 + $0x2bc] ss:$48 sps:$4 sm:$0xff]  }
 0xe0a   : > { %5850 = vmatprep.subr.bf16.mxu1 %v11062_v56  ;;  %5936 = vmatprep.subr.bf16.mxu0 %v11065_v57  ;;  %v11120_v56 = vld [vmem:[#allocation18 + $0x2b0] ss:$48 sps:$4 sm:$0xff]   ;;  %v11123_v57 = vld [vmem:[#allocation18 + $0x2b8] ss:$48 sps:$4 sm:$0xff]  }
 0xe0d   : > { %5851 = vmatpush1.bf16.msra.mxu1 %v11060_v58  ;;  %5937 = vmatpush1.bf16.msra.mxu0 %v11063_v48  ;;  %v11128_v58 = vld [vmem:[#allocation18 + $0x314] ss:$48 sps:$4 sm:$0xff]   ;;  %v11131_v48 = vld [vmem:[#allocation18 + $0x31c] ss:$48 sps:$4 sm:$0xff]  }
 0xe0e   : > { %5852 = vmatprep.subr.bf16.mxu1 %v11068_v31  ;;  %5938 = vmatprep.subr.bf16.mxu0 %v11071_v59  ;;  %v11126_v31 = vld [vmem:[#allocation18 + $0x310] ss:$48 sps:$4 sm:$0xff]   ;;  %v11129_v59 = vld [vmem:[#allocation18 + $0x318] ss:$48 sps:$4 sm:$0xff]  }
 0xe11   : > { %5853 = vmatpush1.bf16.msra.mxu1 %v11066_v62  ;;  %5939 = vmatpush1.bf16.msra.mxu0 %v11069_v3  ;;  %v11135_v62 = vld [vmem:[#allocation18 + $0x378] ss:$48 sps:$4 sm:$0xff]   ;;  %v11140_v3 = vld [vmem:[#allocation18 + $0x3d4] ss:$48 sps:$4 sm:$0xff]  }
 0xe12   : > { %5854 = vmatprep.subr.bf16.mxu1 %v11074_v6  ;;  %5940 = vmatprep.subr.bf16.mxu0 %v11077_v7  ;;  %v11143_v6 = vld [vmem:[#allocation18 + $0x3dc] ss:$48 sps:$4 sm:$0xff]   ;;  %v11138_v7 = vld [vmem:[#allocation18 + $0x3d0] ss:$48 sps:$4 sm:$0xff]  }
 0xe15   : > { %5855 = vmatpush1.bf16.msra.mxu1 %v11072_v16  ;;  %5941 = vmatpush1.bf16.msra.mxu0 %v11075_v33  ;;  %v11144_v16 = vld [vmem:[#allocation18 + $0x430] ss:$48 sps:$4 sm:$0xff]   ;;  %v11147_v33 = vld [vmem:[#allocation18 + $0x438] ss:$48 sps:$4 sm:$0xff]  }
 0xe16   : > { %5969 = vmatprep.subr.bf16.mxu1 %v11080_v12  ;;  %6055 = vmatprep.subr.bf16.mxu0 %v11083_v19  ;;  %v11155_v12 = vld [vmem:[#allocation18 + $0x49c] ss:$48 sps:$4 sm:$0xff]   ;;  %v11150_v19 = vld [vmem:[#allocation18 + $0x490] ss:$48 sps:$4 sm:$0xff]  }
 0xe18   : > { %5873 = vmatmul.mubr.bf16.vlgmr.msra.gmra.mrb[36].mxu1 %v13159_v29  ;;  %5959 = vmatmul.mubr.bf16.vlgmr.msra.gmra.mrb[52].mxu0 %v13159_v29 }
 0xe19   : > { %5970 = vmatpush1.bf16.msra.mxu1 %v11078_v25  ;;  %6001 = vmatprep.mubr.bf16.mxu1 %v13141_v41  ;;  %v11158_v25 = vld [vmem:[#allocation18 + $0x4f4] ss:$48 sps:$4 sm:$0xff]  }
 0xe1a   : > { %6056 = vmatpush1.bf16.msra.mxu0 %v11081_v30  ;;  %6087 = vmatprep.mubr.bf16.mxu0 %v13141_v41  ;;  %v11161_v30 = vld [vmem:[#allocation18 + $0x4fc] ss:$48 sps:$4 sm:$0xff]  }
 0xe1b   : > { %5971 = vmatprep.subr.bf16.mxu1 %v11086_v32  ;;  %6057 = vmatprep.subr.bf16.mxu0 %v11089_v17  ;;  %v11156_v32 = vld [vmem:[#allocation18 + $0x4f0] ss:$48 sps:$4 sm:$0xff]   ;;  %v11159_v17 = vld [vmem:[#allocation18 + $0x4f8] ss:$48 sps:$4 sm:$0xff]  }
 0xe1d   : > { %5972 = vmatpush1.bf16.msra.mxu1 %v11084_v34  ;;  %v11164_v34 = vld [vmem:[#allocation18 + $0x554] ss:$48 sps:$4 sm:$0xff]  }
 0xe1e   : > { %6058 = vmatpush1.bf16.msra.mxu0 %v11087_v38  ;;  %5973 = vmatprep.subr.bf16.mxu1 %v11092_v43  ;;  %v11167_v38 = vld [vmem:[#allocation18 + $0x55c] ss:$48 sps:$4 sm:$0xff]   ;;  %v11162_v43 = vld [vmem:[#allocation18 + $0x550] ss:$48 sps:$4 sm:$0xff]  }
 0xe1f   : > { %6059 = vmatprep.subr.bf16.mxu0 %v11095_v39  ;;  %v11165_v39 = vld [vmem:[#allocation18 + $0x558] ss:$48 sps:$4 sm:$0xff]  }
 0xe21   : > { %5974 = vmatpush1.bf16.msra.mxu1 %v11090_v40  ;;  %v11170_v40 = vld [vmem:[#allocation18 + $0x5b4] ss:$48 sps:$4 sm:$0xff]  }
 0xe22   : > { %6060 = vmatpush1.bf16.msra.mxu0 %v11093_v8  ;;  %5975 = vmatprep.subr.bf16.mxu1 %v11098_v15  ;;  %v11173_v8 = vld [vmem:[#allocation18 + $0x5bc] ss:$48 sps:$4 sm:$0xff]   ;;  %v11168_v15 = vld [vmem:[#allocation18 + $0x5b0] ss:$48 sps:$4 sm:$0xff]  }
 0xe23   : > { %6061 = vmatprep.subr.bf16.mxu0 %v11101_v42  ;;  %v11171_v42 = vld [vmem:[#allocation18 + $0x5b8] ss:$48 sps:$4 sm:$0xff]  }
 0xe25   : > { %5976 = vmatpush1.bf16.msra.mxu1 %v11096_v47  ;;  %v11176_v47 = vld [vmem:[#allocation18 + $0x614] ss:$48 sps:$4 sm:$0xff]  }
 0xe26   : > { %6062 = vmatpush1.bf16.msra.mxu0 %v11099_v36  ;;  %5977 = vmatprep.subr.bf16.mxu1 %v11104_v1  ;;  %v11179_v36 = vld [vmem:[#allocation18 + $0x61c] ss:$48 sps:$4 sm:$0xff]   ;;  %v11174_v1 = vld [vmem:[#allocation18 + $0x610] ss:$48 sps:$4 sm:$0xff]  }
 0xe27   : > { %6063 = vmatprep.subr.bf16.mxu0 %v11107_v37  ;;  %v11177_v37 = vld [vmem:[#allocation18 + $0x618] ss:$48 sps:$4 sm:$0xff]  }
 0xe29   : > { %5978 = vmatpush1.bf16.msra.mxu1 %v11102_v51  ;;  %v11182_v51 = vld [vmem:[#allocation18 + $0x674] ss:$48 sps:$4 sm:$0xff]  }
 0xe2a   : > { %6064 = vmatpush1.bf16.msra.mxu0 %v11105_v35  ;;  %5979 = vmatprep.subr.bf16.mxu1 %v11110_v52  ;;  %v11185_v35 = vld [vmem:[#allocation18 + $0x67c] ss:$48 sps:$4 sm:$0xff]   ;;  %v11180_v52 = vld [vmem:[#allocation18 + $0x670] ss:$48 sps:$4 sm:$0xff]  }
 0xe2b   : > { %6065 = vmatprep.subr.bf16.mxu0 %v11113_v53  ;;  %v11183_v53 = vld [vmem:[#allocation18 + $0x678] ss:$48 sps:$4 sm:$0xff]  }
 0xe2d   : > { %5980 = vmatpush1.bf16.msra.mxu1 %v11108_v45  ;;  %v11188_v45 = vld [vmem:[#allocation18 + $0x6d4] ss:$48 sps:$4 sm:$0xff]  }
 0xe2e   : > { %6066 = vmatpush1.bf16.msra.mxu0 %v11111_v54  ;;  %5981 = vmatprep.subr.bf16.mxu1 %v11116_v49  ;;  %v11191_v54 = vld [vmem:[#allocation18 + $0x6dc] ss:$48 sps:$4 sm:$0xff]   ;;  %v11186_v49 = vld [vmem:[#allocation18 + $0x6d0] ss:$48 sps:$4 sm:$0xff]  }
 0xe2f   : > { %6067 = vmatprep.subr.bf16.mxu0 %v11119_v10  ;;  %v11189_v10 = vld [vmem:[#allocation18 + $0x6d8] ss:$48 sps:$4 sm:$0xff]  }
 0xe31   : > { %5982 = vmatpush1.bf16.msra.mxu1 %v11114_v61  ;;  %v11194_v61 = vld [vmem:[#allocation18 + $0x734] ss:$48 sps:$4 sm:$0xff]  }
 0xe32   : > { %6068 = vmatpush1.bf16.msra.mxu0 %v11117_v55  ;;  %5983 = vmatprep.subr.bf16.mxu1 %v11122_v50  ;;  %v11197_v55 = vld [vmem:[#allocation18 + $0x73c] ss:$48 sps:$4 sm:$0xff]   ;;  %v11192_v50 = vld [vmem:[#allocation18 + $0x730] ss:$48 sps:$4 sm:$0xff]  }
 0xe33   : > { %6069 = vmatprep.subr.bf16.mxu0 %v11125_v46  ;;  %v11195_v46 = vld [vmem:[#allocation18 + $0x738] ss:$48 sps:$4 sm:$0xff]  }
 0xe35   : > { %5984 = vmatpush1.bf16.msra.mxu1 %v11120_v56  ;;  %v11200_v56 = vld [vmem:[#allocation18 + $0x794] ss:$48 sps:$4 sm:$0xff]  }
 0xe36   : > { %6070 = vmatpush1.bf16.msra.mxu0 %v11123_v57  ;;  %5985 = vmatprep.subr.bf16.mxu1 %v11128_v58  ;;  %v11203_v57 = vld [vmem:[#allocation18 + $0x79c] ss:$48 sps:$4 sm:$0xff]   ;;  %v11198_v58 = vld [vmem:[#allocation18 + $0x790] ss:$48 sps:$4 sm:$0xff]  }
 0xe37   : > { %6071 = vmatprep.subr.bf16.mxu0 %v11131_v48  ;;  %v11201_v48 = vld [vmem:[#allocation18 + $0x798] ss:$48 sps:$4 sm:$0xff]  }
 0xe39   : > { %5986 = vmatpush1.bf16.msra.mxu1 %v11126_v31  ;;  %v11206_v31 = vld [vmem:[#allocation18 + $0x7f4] ss:$48 sps:$4 sm:$0xff]  }
 0xe3a   : > { %6072 = vmatpush1.bf16.msra.mxu0 %v11129_v59  ;;  %5987 = vmatprep.subr.bf16.mxu1 %v11134_v44  ;;  %v11209_v59 = vld [vmem:[#allocation18 + $0x7fc] ss:$48 sps:$4 sm:$0xff]   ;;  %v11204_v44 = vld [vmem:[#allocation18 + $0x7f0] ss:$48 sps:$4 sm:$0xff]  }
 0xe3b   : > { %6073 = vmatprep.subr.bf16.mxu0 %v11137_v2  ;;  %v11207_v2 = vld [vmem:[#allocation18 + $0x7f8] ss:$48 sps:$4 sm:$0xff]  }
 0xe3d   : > { %5988 = vmatpush1.bf16.msra.mxu1 %v11132_v60  ;;  %v11212_v60 = vld [vmem:[#allocation18 + $0x854] ss:$48 sps:$4 sm:$0xff]  }
 0xe3e   : > { %6074 = vmatpush1.bf16.msra.mxu0 %v11135_v62  ;;  %5989 = vmatprep.subr.bf16.mxu1 %v11140_v3  ;;  %v11215_v62 = vld [vmem:[#allocation18 + $0x85c] ss:$48 sps:$4 sm:$0xff]   ;;  %v11210_v3 = vld [vmem:[#allocation18 + $0x850] ss:$48 sps:$4 sm:$0xff]  }
 0xe3f   : > { %6075 = vmatprep.subr.bf16.mxu0 %v11143_v6  ;;  %v11213_v6 = vld [vmem:[#allocation18 + $0x858] ss:$48 sps:$4 sm:$0xff]  }
 0xe41   : > { %5990 = vmatpush1.bf16.msra.mxu1 %v11138_v7  ;;  %v11218_v7 = vld [vmem:[#allocation18 + $0x8b4] ss:$48 sps:$4 sm:$0xff]  }
 0xe42   : > { %6076 = vmatpush1.bf16.msra.mxu0 %v11141_v20  ;;  %5991 = vmatprep.subr.bf16.mxu1 %v11146_v21  ;;  %v11221_v20 = vld [vmem:[#allocation18 + $0x8bc] ss:$48 sps:$4 sm:$0xff]   ;;  %v11216_v21 = vld [vmem:[#allocation18 + $0x8b0] ss:$48 sps:$4 sm:$0xff]  }
 0xe43   : > { %6077 = vmatprep.subr.bf16.mxu0 %v11149_v22  ;;  %v11219_v22 = vld [vmem:[#allocation18 + $0x8b8] ss:$48 sps:$4 sm:$0xff]  }
 0xe45   : > { %5992 = vmatpush1.bf16.msra.mxu1 %v11144_v16  ;;  %v11224_v16 = vld [vmem:[#allocation18 + $0x24] ss:$48 sps:$4 sm:$0xff]  }
 0xe46   : > { %6078 = vmatpush1.bf16.msra.mxu0 %v11147_v33  ;;  %5993 = vmatprep.subr.bf16.mxu1 %v11152_v5  ;;  %v11227_v33 = vld [vmem:[#allocation18 + $0x2c] ss:$48 sps:$4 sm:$0xff]   ;;  %v11222_v5 = vld [vmem:[#allocation18 + $0x20] ss:$48 sps:$4 sm:$0xff]  }
 0xe47   : > { %6079 = vmatprep.subr.bf16.mxu0 %v11155_v12  ;;  %v11225_v12 = vld [vmem:[#allocation18 + $0x28] ss:$48 sps:$4 sm:$0xff]  }
 0xe49   : > { %5994 = vmatpush1.bf16.msra.mxu1 %v11150_v19  ;;  %v11230_v19 = vld [vmem:[#allocation18 + $0x84] ss:$48 sps:$4 sm:$0xff]  }
 0xe4a   : > { %6080 = vmatpush1.bf16.msra.mxu0 %v11153_v23  ;;  %5995 = vmatprep.subr.bf16.mxu1 %v11158_v25  ;;  %v11233_v23 = vld [vmem:[#allocation18 + $0x8c] ss:$48 sps:$4 sm:$0xff]   ;;  %v11228_v25 = vld [vmem:[#allocation18 + $0x80] ss:$48 sps:$4 sm:$0xff]  }
 0xe4b   : > { %6081 = vmatprep.subr.bf16.mxu0 %v11161_v30  ;;  %v11231_v30 = vld [vmem:[#allocation18 + $0x88] ss:$48 sps:$4 sm:$0xff]  }
 0xe4d   : > { %5996 = vmatpush1.bf16.msra.mxu1 %v11156_v32  ;;  %v11236_v32 = vld [vmem:[#allocation18 + $0xe4] ss:$48 sps:$4 sm:$0xff]  }
 0xe4e   : > { %6082 = vmatpush1.bf16.msra.mxu0 %v11159_v17  ;;  %5997 = vmatprep.subr.bf16.mxu1 %v11164_v34  ;;  %v11239_v17 = vld [vmem:[#allocation18 + $0xec] ss:$48 sps:$4 sm:$0xff]   ;;  %v11234_v34 = vld [vmem:[#allocation18 + $0xe0] ss:$48 sps:$4 sm:$0xff]  }
 0xe4f   : > { %6083 = vmatprep.subr.bf16.mxu0 %v11167_v38  ;;  %v11237_v38 = vld [vmem:[#allocation18 + $0xe8] ss:$48 sps:$4 sm:$0xff]  }
 0xe51   : > { %5998 = vmatpush1.bf16.msra.mxu1 %v11162_v43  ;;  %v11242_v43 = vld [vmem:[#allocation18 + $0x144] ss:$48 sps:$4 sm:$0xff]  }
 0xe52   : > { %6084 = vmatpush1.bf16.msra.mxu0 %v11165_v39  ;;  %5999 = vmatprep.subr.bf16.mxu1 %v11170_v40  ;;  %v11245_v39 = vld [vmem:[#allocation18 + $0x14c] ss:$48 sps:$4 sm:$0xff]   ;;  %v11240_v40 = vld [vmem:[#allocation18 + $0x140] ss:$48 sps:$4 sm:$0xff]  }
 0xe53   : > { %6085 = vmatprep.subr.bf16.mxu0 %v11173_v8  ;;  %v11243_v8 = vld [vmem:[#allocation18 + $0x148] ss:$48 sps:$4 sm:$0xff]  }
 0xe55   : > { %6000 = vmatpush1.bf16.msra.mxu1 %v11168_v15  ;;  %v11248_v15 = vld [vmem:[#allocation18 + $0x1a4] ss:$48 sps:$4 sm:$0xff]  }
 0xe56   : > { %6086 = vmatpush1.bf16.msra.mxu0 %v11171_v42  ;;  %6012 = vmatprep.subr.bf16.mxu1 %v11176_v47  ;;  %v11251_v42 = vld [vmem:[#allocation18 + $0x1ac] ss:$48 sps:$4 sm:$0xff]   ;;  %v11249_v47 = vld [vmem:[#allocation18 + $0x1a8] ss:$48 sps:$4 sm:$0xff]  }
 0xe57   : > { %6098 = vmatprep.subr.bf16.mxu0 %v11179_v36  ;;  %v11254_v36 = vld [vmem:[#allocation18 + $0x204] ss:$48 sps:$4 sm:$0xff]  }
 0xe58   : > { %6002 = vmatmul.mubr.bf16.vlgmr.msra.gmra.mrb[40].mxu1 %v13143_v14 }
 0xe59   : > { %6088 = vmatmul.mubr.bf16.vlgmr.msra.gmra.mrb[56].mxu0 %v13143_v14  ;;  %6013 = vmatpush1.bf16.msra.mxu1 %v11174_v1  ;;  %v11257_v1 = vld [vmem:[#allocation18 + $0x20c] ss:$48 sps:$4 sm:$0xff]  }
 0xe5a   : > { %6099 = vmatpush1.bf16.msra.mxu0 %v11177_v37  ;;  %6014 = vmatprep.subr.bf16.mxu1 %v11182_v51  ;;  %v11252_v37 = vld [vmem:[#allocation18 + $0x200] ss:$48 sps:$4 sm:$0xff]   ;;  %v11255_v51 = vld [vmem:[#allocation18 + $0x208] ss:$48 sps:$4 sm:$0xff]  }
 0xe5b   : > { %6100 = vmatprep.subr.bf16.mxu0 %v11185_v35  ;;  %6044 = vmatprep.mubr.bf16.mxu1 %v12297_v11  ;;  %v11260_v35 = vld [vmem:[#allocation18 + $0x264] ss:$48 sps:$4 sm:$0xff]  }
 0xe5c   : > { %6130 = vmatprep.mubr.bf16.mxu0 %v12297_v11 }
 0xe5d   : > { %6015 = vmatpush1.bf16.msra.mxu1 %v11180_v52  ;;  %v11263_v52 = vld [vmem:[#allocation18 + $0x26c] ss:$48 sps:$4 sm:$0xff]  }
 0xe5e   : > { %6101 = vmatpush1.bf16.msra.mxu0 %v11183_v53  ;;  %6016 = vmatprep.subr.bf16.mxu1 %v11188_v45  ;;  %v11258_v53 = vld [vmem:[#allocation18 + $0x260] ss:$48 sps:$4 sm:$0xff]   ;;  %v11261_v45 = vld [vmem:[#allocation18 + $0x268] ss:$48 sps:$4 sm:$0xff]  }
 0xe5f   : > { %6102 = vmatprep.subr.bf16.mxu0 %v11191_v54  ;;  %v11266_v54 = vld [vmem:[#allocation18 + $0x2c4] ss:$48 sps:$4 sm:$0xff]  }
 0xe61   : > { %6017 = vmatpush1.bf16.msra.mxu1 %v11186_v49  ;;  %v11269_v49 = vld [vmem:[#allocation18 + $0x2cc] ss:$48 sps:$4 sm:$0xff]  }
 0xe62   : > { %6103 = vmatpush1.bf16.msra.mxu0 %v11189_v10  ;;  %6018 = vmatprep.subr.bf16.mxu1 %v11194_v61  ;;  %v11264_v10 = vld [vmem:[#allocation18 + $0x2c0] ss:$48 sps:$4 sm:$0xff]   ;;  %v11267_v61 = vld [vmem:[#allocation18 + $0x2c8] ss:$48 sps:$4 sm:$0xff]  }
 0xe63   : > { %6104 = vmatprep.subr.bf16.mxu0 %v11197_v55  ;;  %v11272_v55 = vld [vmem:[#allocation18 + $0x324] ss:$48 sps:$4 sm:$0xff]  }
 0xe65   : > { %6019 = vmatpush1.bf16.msra.mxu1 %v11192_v50  ;;  %v11275_v50 = vld [vmem:[#allocation18 + $0x32c] ss:$48 sps:$4 sm:$0xff]  }
 0xe66   : > { %6105 = vmatpush1.bf16.msra.mxu0 %v11195_v46  ;;  %6020 = vmatprep.subr.bf16.mxu1 %v11200_v56  ;;  %v11270_v46 = vld [vmem:[#allocation18 + $0x320] ss:$48 sps:$4 sm:$0xff]   ;;  %v11273_v56 = vld [vmem:[#allocation18 + $0x328] ss:$48 sps:$4 sm:$0xff]  }
 0xe67   : > { %6106 = vmatprep.subr.bf16.mxu0 %v11203_v57  ;;  %v11278_v57 = vld [vmem:[#allocation18 + $0x384] ss:$48 sps:$4 sm:$0xff]  }
 0xe69   : > { %6021 = vmatpush1.bf16.msra.mxu1 %v11198_v58  ;;  %v11281_v58 = vld [vmem:[#allocation18 + $0x38c] ss:$48 sps:$4 sm:$0xff]  }
 0xe6a   : > { %6107 = vmatpush1.bf16.msra.mxu0 %v11201_v48  ;;  %6022 = vmatprep.subr.bf16.mxu1 %v11206_v31  ;;  %v11276_v48 = vld [vmem:[#allocation18 + $0x380] ss:$48 sps:$4 sm:$0xff]   ;;  %v11279_v31 = vld [vmem:[#allocation18 + $0x388] ss:$48 sps:$4 sm:$0xff]  }
 0xe6b   : > { %6108 = vmatprep.subr.bf16.mxu0 %v11209_v59  ;;  %v11284_v59 = vld [vmem:[#allocation18 + $0x3e4] ss:$48 sps:$4 sm:$0xff]  }
 0xe6d   : > { %6023 = vmatpush1.bf16.msra.mxu1 %v11204_v44  ;;  %v11287_v44 = vld [vmem:[#allocation18 + $0x3ec] ss:$48 sps:$4 sm:$0xff]  }
 0xe6e   : > { %6109 = vmatpush1.bf16.msra.mxu0 %v11207_v2  ;;  %6024 = vmatprep.subr.bf16.mxu1 %v11212_v60  ;;  %v11282_v2 = vld [vmem:[#allocation18 + $0x3e0] ss:$48 sps:$4 sm:$0xff]   ;;  %v11285_v60 = vld [vmem:[#allocation18 + $0x3e8] ss:$48 sps:$4 sm:$0xff]  }
 0xe6f   : > { %6110 = vmatprep.subr.bf16.mxu0 %v11215_v62  ;;  %v11290_v62 = vld [vmem:[#allocation18 + $0x444] ss:$48 sps:$4 sm:$0xff]  }
 0xe71   : > { %6025 = vmatpush1.bf16.msra.mxu1 %v11210_v3  ;;  %v11293_v3 = vld [vmem:[#allocation18 + $0x44c] ss:$48 sps:$4 sm:$0xff]  }
 0xe72   : > { %6111 = vmatpush1.bf16.msra.mxu0 %v11213_v6  ;;  %6026 = vmatprep.subr.bf16.mxu1 %v11218_v7  ;;  %v11288_v6 = vld [vmem:[#allocation18 + $0x440] ss:$48 sps:$4 sm:$0xff]   ;;  %v11291_v7 = vld [vmem:[#allocation18 + $0x448] ss:$48 sps:$4 sm:$0xff]  }
 0xe73   : > { %6112 = vmatprep.subr.bf16.mxu0 %v11221_v20  ;;  %v11296_v20 = vld [vmem:[#allocation18 + $0x4a4] ss:$48 sps:$4 sm:$0xff]  }
 0xe75   : > { %6027 = vmatpush1.bf16.msra.mxu1 %v11216_v21  ;;  %v11299_v21 = vld [vmem:[#allocation18 + $0x4ac] ss:$48 sps:$4 sm:$0xff]  }
 0xe76   : > { %6113 = vmatpush1.bf16.msra.mxu0 %v11219_v22  ;;  %6141 = vmatprep.subr.bf16.mxu1 %v11224_v16  ;;  %v11294_v22 = vld [vmem:[#allocation18 + $0x4a0] ss:$48 sps:$4 sm:$0xff]   ;;  %v11297_v16 = vld [vmem:[#allocation18 + $0x4a8] ss:$48 sps:$4 sm:$0xff]  }
 0xe77   : > { %6227 = vmatprep.subr.bf16.mxu0 %v11227_v33  ;;  %v11302_v33 = vld [vmem:[#allocation18 + $0x504] ss:$48 sps:$4 sm:$0xff]  }
 0xe78   : > { %6045 = vmatmul.mubr.bf16.vlgmr.msra.gmra.mrb[40].mxu1 %v13159_v29 }
 0xe79   : > { %6131 = vmatmul.mubr.bf16.vlgmr.msra.gmra.mrb[56].mxu0 %v13159_v29  ;;  %6142 = vmatpush1.bf16.msra.mxu1 %v11222_v5  ;;  %v11305_v5 = vld [vmem:[#allocation18 + $0x50c] ss:$48 sps:$4 sm:$0xff]  }
 0xe7a   : > { %6173 = vmatprep.mubr.bf16.mxu1 %v13141_v41  ;;  %6228 = vmatpush1.bf16.msra.mxu0 %v11225_v12  ;;  %v11300_v12 = vld [vmem:[#allocation18 + $0x500] ss:$48 sps:$4 sm:$0xff]  }
 0xe7b   : > { %6259 = vmatprep.mubr.bf16.mxu0 %v13141_v41  ;;  %6143 = vmatprep.subr.bf16.mxu1 %v11230_v19  ;;  %v11246_v41 = vld [vmem:[#allocation18 + $0x1a0] ss:$48 sps:$4 sm:$0xff]   ;;  %v11303_v19 = vld [vmem:[#allocation18 + $0x508] ss:$48 sps:$4 sm:$0xff]  }
 0xe7c   : > { %6229 = vmatprep.subr.bf16.mxu0 %v11233_v23  ;;  %v11308_v23 = vld [vmem:[#allocation18 + $0x564] ss:$48 sps:$4 sm:$0xff]  }
 0xe7d   : > { %6144 = vmatpush1.bf16.msra.mxu1 %v11228_v25  ;;  %v11311_v25 = vld [vmem:[#allocation18 + $0x56c] ss:$48 sps:$4 sm:$0xff]  }
 0xe7e   : > { %6230 = vmatpush1.bf16.msra.mxu0 %v11231_v30  ;;  %6145 = vmatprep.subr.bf16.mxu1 %v11236_v32  ;;  %v11306_v30 = vld [vmem:[#allocation18 + $0x560] ss:$48 sps:$4 sm:$0xff]   ;;  %v11309_v32 = vld [vmem:[#allocation18 + $0x568] ss:$48 sps:$4 sm:$0xff]  }
 0xe7f   : > { %6231 = vmatprep.subr.bf16.mxu0 %v11239_v17  ;;  %v11314_v17 = vld [vmem:[#allocation18 + $0x5c4] ss:$48 sps:$4 sm:$0xff]  }
 0xe81   : > { %6146 = vmatpush1.bf16.msra.mxu1 %v11234_v34  ;;  %v11317_v34 = vld [vmem:[#allocation18 + $0x5cc] ss:$48 sps:$4 sm:$0xff]  }
 0xe82   : > { %6232 = vmatpush1.bf16.msra.mxu0 %v11237_v38  ;;  %6147 = vmatprep.subr.bf16.mxu1 %v11242_v43  ;;  %v11312_v38 = vld [vmem:[#allocation18 + $0x5c0] ss:$48 sps:$4 sm:$0xff]   ;;  %v11315_v43 = vld [vmem:[#allocation18 + $0x5c8] ss:$48 sps:$4 sm:$0xff]  }
 0xe83   : > { %6233 = vmatprep.subr.bf16.mxu0 %v11245_v39  ;;  %v11320_v39 = vld [vmem:[#allocation18 + $0x624] ss:$48 sps:$4 sm:$0xff]  }
 0xe85   : > { %6148 = vmatpush1.bf16.msra.mxu1 %v11240_v40  ;;  %v11323_v40 = vld [vmem:[#allocation18 + $0x62c] ss:$48 sps:$4 sm:$0xff]  }
 0xe86   : > { %6234 = vmatpush1.bf16.msra.mxu0 %v11243_v8  ;;  %6149 = vmatprep.subr.bf16.mxu1 %v11248_v15  ;;  %v11318_v8 = vld [vmem:[#allocation18 + $0x620] ss:$48 sps:$4 sm:$0xff]   ;;  %v11321_v15 = vld [vmem:[#allocation18 + $0x628] ss:$48 sps:$4 sm:$0xff]  }
 0xe87   : > { %6235 = vmatprep.subr.bf16.mxu0 %v11251_v42  ;;  %v11326_v42 = vld [vmem:[#allocation18 + $0x684] ss:$48 sps:$4 sm:$0xff]  }
 0xe89   : > { %6150 = vmatpush1.bf16.msra.mxu1 %v11246_v41  ;;  %v11329_v41 = vld [vmem:[#allocation18 + $0x68c] ss:$48 sps:$4 sm:$0xff]  }
 0xe8a   : > { %6236 = vmatpush1.bf16.msra.mxu0 %v11249_v47  ;;  %6151 = vmatprep.subr.bf16.mxu1 %v11254_v36  ;;  %v11324_v47 = vld [vmem:[#allocation18 + $0x680] ss:$48 sps:$4 sm:$0xff]   ;;  %v11327_v36 = vld [vmem:[#allocation18 + $0x688] ss:$48 sps:$4 sm:$0xff]  }
 0xe8b   : > { %6237 = vmatprep.subr.bf16.mxu0 %v11257_v1  ;;  %v11332_v1 = vld [vmem:[#allocation18 + $0x6e4] ss:$48 sps:$4 sm:$0xff]  }
 0xe8d   : > { %6152 = vmatpush1.bf16.msra.mxu1 %v11252_v37  ;;  %v11335_v37 = vld [vmem:[#allocation18 + $0x6ec] ss:$48 sps:$4 sm:$0xff]  }
 0xe8e   : > { %6238 = vmatpush1.bf16.msra.mxu0 %v11255_v51  ;;  %6153 = vmatprep.subr.bf16.mxu1 %v11260_v35  ;;  %v11330_v51 = vld [vmem:[#allocation18 + $0x6e0] ss:$48 sps:$4 sm:$0xff]   ;;  %v11333_v35 = vld [vmem:[#allocation18 + $0x6e8] ss:$48 sps:$4 sm:$0xff]  }
 0xe8f   : > { %6239 = vmatprep.subr.bf16.mxu0 %v11263_v52  ;;  %v11338_v52 = vld [vmem:[#allocation18 + $0x744] ss:$48 sps:$4 sm:$0xff]  }
 0xe91   : > { %6154 = vmatpush1.bf16.msra.mxu1 %v11258_v53  ;;  %v11336_v53 = vld [vmem:[#allocation18 + $0x740] ss:$48 sps:$4 sm:$0xff]  }
 0xe92   : > { %6240 = vmatpush1.bf16.msra.mxu0 %v11261_v45  ;;  %6155 = vmatprep.subr.bf16.mxu1 %v11266_v54  ;;  %v11339_v45 = vld [vmem:[#allocation18 + $0x748] ss:$48 sps:$4 sm:$0xff]   ;;  %v11344_v54 = vld [vmem:[#allocation18 + $0x7a4] ss:$48 sps:$4 sm:$0xff]  }
 0xe93   : > { %6241 = vmatprep.subr.bf16.mxu0 %v11269_v49  ;;  %v11347_v49 = vld [vmem:[#allocation18 + $0x7ac] ss:$48 sps:$4 sm:$0xff]  }
 0xe95   : > { %6156 = vmatpush1.bf16.msra.mxu1 %v11264_v10  ;;  %v11342_v10 = vld [vmem:[#allocation18 + $0x7a0] ss:$48 sps:$4 sm:$0xff]  }
 0xe96   : > { %6242 = vmatpush1.bf16.msra.mxu0 %v11267_v61  ;;  %6157 = vmatprep.subr.bf16.mxu1 %v11272_v55  ;;  %v11350_v61 = vld [vmem:[#allocation18 + $0x804] ss:$48 sps:$4 sm:$0xff]   ;;  %v11353_v55 = vld [vmem:[#allocation18 + $0x80c] ss:$48 sps:$4 sm:$0xff]  }
 0xe97   : > { %6243 = vmatprep.subr.bf16.mxu0 %v11275_v50  ;;  %v11348_v50 = vld [vmem:[#allocation18 + $0x800] ss:$48 sps:$4 sm:$0xff]  }
 0xe99   : > { %6158 = vmatpush1.bf16.msra.mxu1 %v11270_v46  ;;  %v11351_v46 = vld [vmem:[#allocation18 + $0x808] ss:$48 sps:$4 sm:$0xff]  }
 0xe9a   : > { %6244 = vmatpush1.bf16.msra.mxu0 %v11273_v56  ;;  %6159 = vmatprep.subr.bf16.mxu1 %v11278_v57  ;;  %v11356_v56 = vld [vmem:[#allocation18 + $0x864] ss:$48 sps:$4 sm:$0xff]   ;;  %v11359_v57 = vld [vmem:[#allocation18 + $0x86c] ss:$48 sps:$4 sm:$0xff]  }
 0xe9b   : > { %6245 = vmatprep.subr.bf16.mxu0 %v11281_v58  ;;  %v11354_v58 = vld [vmem:[#allocation18 + $0x860] ss:$48 sps:$4 sm:$0xff]  }
 0xe9d   : > { %6160 = vmatpush1.bf16.msra.mxu1 %v11276_v48  ;;  %v11357_v48 = vld [vmem:[#allocation18 + $0x868] ss:$48 sps:$4 sm:$0xff]  }
 0xe9e   : > { %6246 = vmatpush1.bf16.msra.mxu0 %v11279_v31  ;;  %6161 = vmatprep.subr.bf16.mxu1 %v11284_v59  ;;  %v11362_v31 = vld [vmem:[#allocation18 + $0x8c4] ss:$48 sps:$4 sm:$0xff]   ;;  %v11365_v59 = vld [vmem:[#allocation18 + $0x8cc] ss:$48 sps:$4 sm:$0xff]  }
 0xe9f   : > { %6247 = vmatprep.subr.bf16.mxu0 %v11287_v44  ;;  %v11360_v44 = vld [vmem:[#allocation18 + $0x8c0] ss:$48 sps:$4 sm:$0xff]  }
 0xea1   : > { %6162 = vmatpush1.bf16.msra.mxu1 %v11282_v2  ;;  %v11363_v2 = vld [vmem:[#allocation18 + $0x8c8] ss:$48 sps:$4 sm:$0xff]  }
 0xea2   : > { %6248 = vmatpush1.bf16.msra.mxu0 %v11285_v60  ;;  %6163 = vmatprep.subr.bf16.mxu1 %v11290_v62  ;;  %v11368_v60 = vld [vmem:[#allocation21 + $0x4] ss:$12 sps:$4 sm:$0xff]   ;;  %v11369_v62 = vld [vmem:[#allocation21 + $0xc8] ss:$12 sps:$4 sm:$0xff]  }
 0xea3   : > { %6249 = vmatprep.subr.bf16.mxu0 %v11293_v3  ;;  %v11366_v3 = vld [vmem:[#allocation21] ss:$12 sps:$4 sm:$0xff]  }
 0xea5   : > { %6164 = vmatpush1.bf16.msra.mxu1 %v11288_v6  ;;  %v11370_v6 = vld [vmem:[#allocation21 + $0x8] ss:$12 sps:$4 sm:$0xff]  }
 0xea6   : > { %6250 = vmatpush1.bf16.msra.mxu0 %v11291_v7  ;;  %6165 = vmatprep.subr.bf16.mxu1 %v11296_v20  ;;  %v11373_v7 = vld [vmem:[#allocation21 + $0x1c] ss:$12 sps:$4 sm:$0xff]   ;;  %v11374_v20 = vld [vmem:[#allocation21 + $0xe0] ss:$12 sps:$4 sm:$0xff]  }
 0xea7   : > { %6251 = vmatprep.subr.bf16.mxu0 %v11299_v21  ;;  %v11371_v21 = vld [vmem:[#allocation21 + $0x18] ss:$12 sps:$4 sm:$0xff]  }
 0xea9   : > { %6166 = vmatpush1.bf16.msra.mxu1 %v11294_v22  ;;  %v11375_v22 = vld [vmem:[#allocation21 + $0x20] ss:$12 sps:$4 sm:$0xff]  }
 0xeaa   : > { %6252 = vmatpush1.bf16.msra.mxu0 %v11297_v16  ;;  %6167 = vmatprep.subr.bf16.mxu1 %v11302_v33  ;;  %v11378_v16 = vld [vmem:[#allocation21 + $0x34] ss:$12 sps:$4 sm:$0xff]   ;;  %v11379_v33 = vld [vmem:[#allocation21 + $0xf8] ss:$12 sps:$4 sm:$0xff]  }
 0xeab   : > { %6253 = vmatprep.subr.bf16.mxu0 %v11305_v5  ;;  %v11376_v5 = vld [vmem:[#allocation21 + $0x30] ss:$12 sps:$4 sm:$0xff]  }
 0xead   : > { %6168 = vmatpush1.bf16.msra.mxu1 %v11300_v12  ;;  %v11380_v12 = vld [vmem:[#allocation21 + $0x38] ss:$12 sps:$4 sm:$0xff]  }
 0xeae   : > { %6254 = vmatpush1.bf16.msra.mxu0 %v11303_v19  ;;  %6169 = vmatprep.subr.bf16.mxu1 %v11308_v23  ;;  %v11383_v19 = vld [vmem:[#allocation21 + $0x4c] ss:$12 sps:$4 sm:$0xff]   ;;  %v11384_v23 = vld [vmem:[#allocation21 + $0x110] ss:$12 sps:$4 sm:$0xff]  }
 0xeaf   : > { %6255 = vmatprep.subr.bf16.mxu0 %v11311_v25  ;;  %v11381_v25 = vld [vmem:[#allocation21 + $0x48] ss:$12 sps:$4 sm:$0xff]  }
 0xeb1   : > { %6170 = vmatpush1.bf16.msra.mxu1 %v11306_v30  ;;  %v11388_v30 = vld [vmem:[#allocation21 + $0x64] ss:$12 sps:$4 sm:$0xff]  }
 0xeb2   : > { %6256 = vmatpush1.bf16.msra.mxu0 %v11309_v32  ;;  %6171 = vmatprep.subr.bf16.mxu1 %v11314_v17  ;;  %v11389_v32 = vld [vmem:[#allocation21 + $0x128] ss:$12 sps:$4 sm:$0xff]   ;;  %v11386_v17 = vld [vmem:[#allocation21 + $0x60] ss:$12 sps:$4 sm:$0xff]  }
 0xeb3   : > { %6257 = vmatprep.subr.bf16.mxu0 %v11317_v34  ;;  %v13179_v34 = vld [vmem:[#allocation20] sm:$0xff] }
 0xeb5   : > { %6172 = vmatpush1.bf16.msra.mxu1 %v11312_v38  ;;  %v4311_v38 = vsub.s32 3, %v12839_v24 }
 0xeb6   : > { %6258 = vmatpush1.bf16.msra.mxu0 %v11315_v43  ;;  %6184 = vmatprep.subr.bf16.mxu1 %v11320_v39  ;;  %v11390_v43 = vld [vmem:[#allocation21 + $0x68] ss:$12 sps:$4 sm:$0xff]  }
 0xeb7   : > { %6270 = vmatprep.subr.bf16.mxu0 %v11323_v40  ;;  %v11393_v39 = vld [vmem:[#allocation21 + $0x7c] ss:$12 sps:$4 sm:$0xff]   ;;  %v11394_v40 = vld [vmem:[#allocation21 + $0x140] ss:$12 sps:$4 sm:$0xff]  }
 0xeb8   : > { %6174 = vmatmul.mubr.bf16.vlgmr.msra.gmra.mrb[44].mxu1 %v13143_v14 }
 0xeb9   : > { %6260 = vmatmul.mubr.bf16.vlgmr.msra.gmra.mrb[60].mxu0 %v13143_v14  ;;  %6185 = vmatpush1.bf16.msra.mxu1 %v11318_v8  ;;  %v11341_v14 = vld [vmem:[#allocation18 + $0x74c] ss:$48 sps:$4 sm:$0xff]   ;;  %v4300_v8 = vrot.slane %v13179_v34, %v12848_v28 }
 0xeba   : > { %6271 = vmatpush1.bf16.msra.mxu0 %v11321_v15  ;;  %6186 = vmatprep.subr.bf16.mxu1 %v11326_v42  ;;  %v4308_v15 = vrot.slane %v13179_v34, %v12845_v27  ;;  %v4304_v42 = vrot.slane %v13179_v34, %v12842_v26 }
 0xebb   : > { %6272 = vmatprep.subr.bf16.mxu0 %v11329_v41  ;;  %6216 = vmatprep.mubr.bf16.mxu1 %v12297_v11  ;;  %v4312_v41 = vrot.slane %v13179_v34, %v4311_v38 }
 0xebc   : > { %6302 = vmatprep.mubr.bf16.mxu0 %v12297_v11  ;;  %v11345_v11 = vld [vmem:[#allocation18 + $0x7a8] ss:$48 sps:$4 sm:$0xff]  }
 0xebd   : > { %6187 = vmatpush1.bf16.msra.mxu1 %v11324_v47  ;;  %v11391_v47 = vld [vmem:[#allocation21 + $0x78] ss:$12 sps:$4 sm:$0xff]  }
 0xebe   : > { %6273 = vmatpush1.bf16.msra.mxu0 %v11327_v36  ;;  %6188 = vmatprep.subr.bf16.mxu1 %v11332_v1  ;;  %v11395_v36 = vld [vmem:[#allocation21 + $0x80] ss:$12 sps:$4 sm:$0xff]  }
 0xebf   : > { %6274 = vmatprep.subr.bf16.mxu0 %v11335_v37  ;;  %v11398_v1 = vld [vmem:[#allocation21 + $0x94] ss:$12 sps:$4 sm:$0xff]  }
 0xec1   : > { %6189 = vmatpush1.bf16.msra.mxu1 %v11330_v51 }
 0xec2   : > { %6275 = vmatpush1.bf16.msra.mxu0 %v11333_v35  ;;  %6190 = vmatprep.subr.bf16.mxu1 %v11338_v52  ;;  %v11399_v35 = vld [vmem:[#allocation21 + $0x158] ss:$12 sps:$4 sm:$0xff]  }
 0xec3   : > { %6276 = vmatprep.subr.bf16.mxu0 %v11341_v14 }
 0xec5   : > { %6191 = vmatpush1.bf16.msra.mxu1 %v11336_v53 }
 0xec6   : > { %6277 = vmatpush1.bf16.msra.mxu0 %v11339_v45  ;;  %6192 = vmatprep.subr.bf16.mxu1 %v11344_v54 }
 0xec7   : > { %6278 = vmatprep.subr.bf16.mxu0 %v11347_v49 }
 0xec9   : > { %6193 = vmatpush1.bf16.msra.mxu1 %v11342_v10 }
 0xeca   : > { %6279 = vmatpush1.bf16.msra.mxu0 %v11345_v11  ;;  %6194 = vmatprep.subr.bf16.mxu1 %v11350_v61  ;;  %v11396_v61 = vld [vmem:[#allocation21 + $0x90] ss:$12 sps:$4 sm:$0xff]  }
 0xecb   : > { %6280 = vmatprep.subr.bf16.mxu0 %v11353_v55 }
 0xecd   : > { %6195 = vmatpush1.bf16.msra.mxu1 %v11348_v50 }
 0xece   : > { %6281 = vmatpush1.bf16.msra.mxu0 %v11351_v46  ;;  %6196 = vmatprep.subr.bf16.mxu1 %v11356_v56 }
 0xecf   : > { %6282 = vmatprep.subr.bf16.mxu0 %v11359_v57  ;;  %v11400_v57 = vld [vmem:[#allocation21 + $0x98] ss:$12 sps:$4 sm:$0xff]  }
 0xed1   : > { %6197 = vmatpush1.bf16.msra.mxu1 %v11354_v58  ;;  %v11403_v58 = vld [vmem:[#allocation21 + $0xac] ss:$12 sps:$4 sm:$0xff]  }
 0xed2   : > { %6283 = vmatpush1.bf16.msra.mxu0 %v11357_v48  ;;  %6198 = vmatprep.subr.bf16.mxu1 %v11362_v31 }
 0xed3   : > { %6284 = vmatprep.subr.bf16.mxu0 %v11365_v59  ;;  %v11404_v59 = vld [vmem:[#allocation21 + $0x170] ss:$12 sps:$4 sm:$0xff]  }
 0xed5   : > { %6199 = vmatpush1.bf16.msra.mxu1 %v11360_v44 }
 0xed6   : > { %6285 = vmatpush1.bf16.msra.mxu0 %v11363_v2  ;;  %8286 = vmatprep.subr.bf16.mxu1 %v11368_v60 }
 0xed7   : > { %9999 = vmatprep.subr.bf16.mxu0 %v11369_v62 }
 0xed8   : > { %6217 = vmatmul.mubr.bf16.vlgmr.msra.gmra.mrb[44].mxu1 %v13159_v29 }
 0xed9   : > { %6303 = vmatmul.mubr.bf16.vlgmr.msra.gmra.mrb[60].mxu0 %v13159_v29  ;;  %8287 = vmatpush1.bf16.msra.mxu1 %v11366_v3  ;;  %v11385_v29 = vld [vmem:[#allocation21 + $0x50] ss:$12 sps:$4 sm:$0xff]  }
 0xeda   : > { %10000 = vmatpush3.bf16.msra.mxu0 %v11370_v6  ;;  %8288 = vmatprep.subr.bf16.mxu1 %v11373_v7 }
 0xedb   : > { %10001 = vmatprep.subr.bf16.mxu0 %v11374_v20 }
 0xedd   : > { %8289 = vmatpush1.bf16.msra.mxu1 %v11371_v21  ;;  %v11401_v21 = vld [vmem:[#allocation21 + $0xa8] ss:$12 sps:$4 sm:$0xff]  }
 0xede   : > { %10002 = vmatpush3.bf16.msra.mxu0 %v11375_v22  ;;  %8290 = vmatprep.subr.bf16.mxu1 %v11378_v16 }
 0xedf   : > { %10003 = vmatprep.subr.bf16.mxu0 %v11379_v33  ;;  %v11405_v33 = vld [vmem:[#allocation21 + $0xb0] ss:$12 sps:$4 sm:$0xff]  }
 0xee1   : > { %8291 = vmatpush1.bf16.msra.mxu1 %v11376_v5 }
 0xee2   : > { %10004 = vmatpush3.bf16.msra.mxu0 %v11380_v12  ;;  %8292 = vmatprep.subr.bf16.mxu1 %v11383_v19  ;;  %v11408_v19 = vld [vmem:[#allocation21 + $0xc4] ss:$12 sps:$4 sm:$0xff]  }
 0xee3   : > { %10005 = vmatprep.subr.bf16.mxu0 %v11384_v23  ;;  %v11409_v23 = vld [vmem:[#allocation21 + $0x248] ss:$12 sps:$4 sm:$0xff]  }
 0xee5   : > { %8293 = vmatpush1.bf16.msra.mxu1 %v11381_v25  ;;  %v11406_v25 = vld [vmem:[#allocation21 + $0xc0] ss:$12 sps:$4 sm:$0xff]  }
 0xee6   : > { %10006 = vmatpush3.bf16.msra.mxu0 %v11385_v29  ;;  %8294 = vmatprep.subr.bf16.mxu1 %v11388_v30  ;;  %v11410_v29 = vld [vmem:[#allocation21 + $0x188] ss:$12 sps:$4 sm:$0xff]  }
 0xee7   : > { %10007 = vmatprep.subr.bf16.mxu0 %v11389_v32  ;;  %v11413_v30 = vld [vmem:[#allocation21 + $0xdc] ss:$12 sps:$4 sm:$0xff]   ;;  %v11414_v32 = vld [vmem:[#allocation21 + $0x260] ss:$12 sps:$4 sm:$0xff]  }
 0xee9   : > { %8295 = vmatpush1.bf16.msra.mxu1 %v11386_v17  ;;  %v11411_v17 = vld [vmem:[#allocation21 + $0xd8] ss:$12 sps:$4 sm:$0xff]  }
 0xeea   : > { %10008 = vmatpush3.bf16.msra.mxu0 %v11390_v43  ;;  %8296 = vmatprep.subr.bf16.mxu1 %v11393_v39  ;;  %v11415_v43 = vld [vmem:[#allocation21 + $0x1a0] ss:$12 sps:$4 sm:$0xff]  }
 0xeeb   : > { %v5874_v37 = vpop.f32.mrb[36].mxu1  ;;  %v5960_v51 = vpop.f32.mrb[52].mxu0  ;;  %10009 = vmatprep.subr.bf16.mxu0 %v11394_v40  ;;  %v11418_v39 = vld [vmem:[#allocation21 + $0xf4] ss:$12 sps:$4 sm:$0xff]   ;;  %v11419_v40 = vld [vmem:[#allocation21 + $0x278] ss:$12 sps:$4 sm:$0xff]  }
 0xeec   : > { %v10251_v52 = vadd.f32 %v5874_v37, %v4300_v8  ;;  %v10255_v14 = vadd.f32 %v5960_v51, %v4308_v15  ;;  %v5876_v53 = vpop.f32.mrb[37].mxu1  ;;  %v5962_v45 = vpop.f32.mrb[53].mxu0  ;;  %v11429_v37 = vld [vmem:[#allocation21 + $0x2a8] ss:$12 sps:$4 sm:$0xff]   ;;  %v11426_v51 = vld [vmem:[#allocation21 + $0x120] ss:$12 sps:$4 sm:$0xff]  }
 0xeed   : > { %v10252_v54 = vadd.f32 %v5876_v53, %v4304_v42  ;;  %v10256_v49 = vadd.f32 %v5962_v45, %v4312_v41  ;;  %v5878_v10 = vpop.f32.mrb[38].mxu1  ;;  %v5964_v11 = vpop.f32.mrb[54].mxu0  ;;  %8297 = vmatpush1.bf16.msra.mxu1 %v11391_v47  ;;  %v11421_v47 = vld [vmem:[#allocation21 + $0x108] ss:$12 sps:$4 sm:$0xff]   ;;  %v11431_v53 = vld [vmem:[#allocation21 + $0x138] ss:$12 sps:$4 sm:$0xff]  }
 0xeee   : > { %v10253_v55 = vadd.f32 %v5878_v10, %v4300_v8  ;;  %v10257_v50 = vadd.f32 %v5964_v11, %v4308_v15  ;;  %10010 = vmatpush3.bf16.msra.mxu0 %v11395_v36  ;;  %v5880_v46 = vpop.f32.mrb[39].mxu1  ;;  %v5966_v56 = vpop.f32.mrb[55].mxu0  ;;  %8298 = vmatprep.subr.bf16.mxu1 %v11398_v1  ;;  %v6313_v44 = vmax.f32 %v10251_v52, 0.0  ;;  %v6315_v2 = vmax.f32 %v10255_v14, 0.0  ;;  %v11416_v8 = vld [vmem:[#allocation21 + $0xf0] ss:$12 sps:$4 sm:$0xff]  }
 0xeef   : > { %v10254_v48 = vadd.f32 %v5880_v46, %v4304_v42  ;;  %v10258_v31 = vadd.f32 %v5966_v56, %v4312_v41  ;;  %10011 = vmatprep.subr.bf16.mxu0 %v11399_v35  ;;  %v6314_v3 = vmax.f32 %v10252_v54, 0.0  ;;  %v6316_v6 = vmax.f32 %v10256_v49, 0.0  ;;  %v11420_v15 = vld [vmem:[#allocation21 + $0x1b8] ss:$12 sps:$4 sm:$0xff]   ;;  %v11424_v41 = vld [vmem:[#allocation21 + $0x290] ss:$12 sps:$4 sm:$0xff]  }
 0xef0   : > { %v6325_v60 = vmax.f32 %v10253_v55, 0.0  ;;  %v6327_v62 = vmax.f32 %v10257_v50, 0.0  ;;  %v11423_v42 = vld [vmem:[#allocation21 + $0x10c] ss:$12 sps:$4 sm:$0xff]   ;;  %v11425_v36 = vld [vmem:[#allocation21 + $0x1d0] ss:$12 sps:$4 sm:$0xff]  }
 0xef1   : > { %v6326_v7 = vmax.f32 %v10254_v48, 0.0  ;;  %v6328_v20 = vmax.f32 %v10258_v31, 0.0  ;;  %8299 = vmatpush1.bf16.msra.mxu1 %v11396_v61  ;;  %v11428_v1 = vld [vmem:[#allocation21 + $0x124] ss:$12 sps:$4 sm:$0xff]   ;;  %v11430_v35 = vld [vmem:[#allocation21 + $0x1e8] ss:$12 sps:$4 sm:$0xff]  }
 0xef2   : > { %v13191_v22 = vpack.c.bf16 %v6325_v60, %v6313_v44  ;;  %v13193_v16 = vpack.c.bf16 %v6327_v62, %v6315_v2  ;;  %10012 = vmatpush3.bf16.msra.mxu0 %v11400_v57  ;;  %8300 = vmatprep.subr.bf16.mxu1 %v11403_v58  ;;  %v11433_v52 = vld [vmem:[#allocation21 + $0x13c] ss:$12 sps:$4 sm:$0xff]   ;;  %v11434_v14 = vld [vmem:[#allocation21 + $0x2c0] ss:$12 sps:$4 sm:$0xff]   ;;  %v11439_v49 = vld [vmem:[#allocation21 + $0x2d8] ss:$12 sps:$4 sm:$0xff]  }
 0xef3   : > { %v6338_v5 = vpack.c.bf16 %v6326_v7, %v6314_v3  ;;  %v13195_v12 = vpack.c.bf16 %v6328_v20, %v6316_v6  ;;  %10013 = vmatprep.subr.bf16.mxu0 %v11404_v59  ;;  %v11435_v45 = vld [vmem:[#allocation21 + $0x200] ss:$12 sps:$4 sm:$0xff]   ;;  %v11436_v10 = vld [vmem:[#allocation21 + $0x150] ss:$12 sps:$4 sm:$0xff]   ;;  %v11440_v11 = vld [vmem:[#allocation21 + $0x218] ss:$12 sps:$4 sm:$0xff]  }
 0xef4   : > { %v11438_v54 = vld [vmem:[#allocation21 + $0x154] ss:$12 sps:$4 sm:$0xff]   ;;  %v11443_v61 = vld [vmem:[#allocation21 + $0x16c] ss:$12 sps:$4 sm:$0xff]   ;;  %v11444_v55 = vld [vmem:[#allocation21 + $0x2f0] ss:$12 sps:$4 sm:$0xff]  }
 0xef5   : > { %8301 = vmatpush1.bf16.msra.mxu1 %v11401_v21  ;;  %8318 = vmatprep.mubr.bf16.mxu1 %v6338_v5  ;;  %v11441_v50 = vld [vmem:[#allocation21 + $0x168] ss:$12 sps:$4 sm:$0xff]   ;;  %v11445_v46 = vld [vmem:[#allocation21 + $0x230] ss:$12 sps:$4 sm:$0xff]   ;;  %v11446_v58 = vld [vmem:[#allocation21 + $0x180] ss:$12 sps:$4 sm:$0xff]  }
 0xef6   : > { %10014 = vmatpush3.bf16.msra.mxu0 %v11405_v33  ;;  %8576 = vmatprep.mubr.bf16.mxu0 %v6338_v5  ;;  %v11448_v56 = vld [vmem:[#allocation21 + $0x184] ss:$12 sps:$4 sm:$0xff]   ;;  %v11470_v57 = vld [vmem:[#allocation21 + $0x3c8] ss:$12 sps:$4 sm:$0xff]   ;;  %v11475_v59 = vld [vmem:[#allocation21 + $0x3e0] ss:$12 sps:$4 sm:$0xff]  }
 0xef7   : > { %8302 = vmatprep.subr.bf16.mxu1 %v11408_v19  ;;  %10021 = vmatprep.subr.bf16.mxu0 %v11409_v23  ;;  %v11451_v48 = vld [vmem:[#allocation21 + $0x19c] ss:$12 sps:$4 sm:$0xff]   ;;  %v11449_v44 = vld [vmem:[#allocation21 + $0x198] ss:$12 sps:$4 sm:$0xff]   ;;  %v11454_v2 = vld [vmem:[#allocation21 + $0x1b4] ss:$12 sps:$4 sm:$0xff]  }
 0xef8   : > { %v11471_v31 = vld [vmem:[#allocation21 + $0x308] ss:$12 sps:$4 sm:$0xff]   ;;  %v11476_v60 = vld [vmem:[#allocation21 + $0x320] ss:$12 sps:$4 sm:$0xff]   ;;  %v11480_v62 = vld [vmem:[#allocation21 + $0x3f8] ss:$12 sps:$4 sm:$0xff]  }
 0xef9   : > { %8577 = vmatmul.mubr.bf16.vlgmr.msra.gmra.mrb[64].mxu0 %v13191_v22  ;;  %8303 = vmatpush1.bf16.msra.mxu1 %v11406_v25  ;;  %v11452_v3 = vld [vmem:[#allocation21 + $0x1b0] ss:$12 sps:$4 sm:$0xff]   ;;  %v11457_v6 = vld [vmem:[#allocation21 + $0x1cc] ss:$12 sps:$4 sm:$0xff]   ;;  %v11455_v21 = vld [vmem:[#allocation21 + $0x1c8] ss:$12 sps:$4 sm:$0xff]  }
 0xefa   : > { %10022 = vmatpush3.bf16.msra.mxu0 %v11410_v29  ;;  %8617 = vmatprep.mubr.bf16.mxu0 %v13195_v12  ;;  %v11481_v7 = vld [vmem:[#allocation21 + $0x338] ss:$12 sps:$4 sm:$0xff]   ;;  %v11485_v20 = vld [vmem:[#allocation21 + $0x410] ss:$12 sps:$4 sm:$0xff]   ;;  %v11490_v5 = vld [vmem:[#allocation21 + $0x428] ss:$12 sps:$4 sm:$0xff]  }
 0xefb   : > { %8304 = vmatprep.subr.bf16.mxu1 %v11413_v30  ;;  %10023 = vmatprep.subr.bf16.mxu0 %v11414_v32  ;;  %v11486_v33 = vld [vmem:[#allocation21 + $0x350] ss:$12 sps:$4 sm:$0xff]   ;;  %v11491_v23 = vld [vmem:[#allocation21 + $0x368] ss:$12 sps:$4 sm:$0xff]   ;;  %v11495_v25 = vld [vmem:[#allocation21 + $0x440] ss:$12 sps:$4 sm:$0xff]  }
 0xefc   : > { %v11463_v19 = vld [vmem:[#allocation21 + $0x1fc] ss:$12 sps:$4 sm:$0xff]   ;;  %v11461_v29 = vld [vmem:[#allocation21 + $0x1f8] ss:$12 sps:$4 sm:$0xff]   ;;  %v11466_v30 = vld [vmem:[#allocation21 + $0x214] ss:$12 sps:$4 sm:$0xff]  }
 0xefd   : > { %8305 = vmatpush1.bf16.msra.mxu1 %v11411_v17  ;;  %v11496_v32 = vld [vmem:[#allocation21 + $0x380] ss:$12 sps:$4 sm:$0xff]   ;;  %v11500_v17 = vld [vmem:[#allocation21 + $0x458] ss:$12 sps:$4 sm:$0xff]  }
 0xefe   : > { %10024 = vmatpush3.bf16.msra.mxu0 %v11415_v43  ;;  %8306 = vmatprep.subr.bf16.mxu1 %v11418_v39  ;;  %v11464_v43 = vld [vmem:[#allocation21 + $0x210] ss:$12 sps:$4 sm:$0xff]   ;;  %v11469_v39 = vld [vmem:[#allocation21 + $0x22c] ss:$12 sps:$4 sm:$0xff]  }
 0xeff   : > { %10025 = vmatprep.subr.bf16.mxu0 %v11419_v40  ;;  %v11501_v40 = vld [vmem:[#allocation21 + $0x398] ss:$12 sps:$4 sm:$0xff]  }
 0xf01   : > { %8307 = vmatpush1.bf16.msra.mxu1 %v11416_v8  ;;  %v11505_v8 = vld [vmem:[#allocation21 + $0x470] ss:$12 sps:$4 sm:$0xff]  }
 0xf02   : > { %10026 = vmatpush3.bf16.msra.mxu0 %v11420_v15  ;;  %8308 = vmatprep.subr.bf16.mxu1 %v11423_v42  ;;  %v11467_v15 = vld [vmem:[#allocation21 + $0x228] ss:$12 sps:$4 sm:$0xff]   ;;  %v11474_v42 = vld [vmem:[#allocation21 + $0x244] ss:$12 sps:$4 sm:$0xff]  }
 0xf03   : > { %10027 = vmatprep.subr.bf16.mxu0 %v11424_v41  ;;  %v11506_v41 = vld [vmem:[#allocation21 + $0x3b0] ss:$12 sps:$4 sm:$0xff]  }
 0xf05   : > { %8309 = vmatpush1.bf16.msra.mxu1 %v11421_v47  ;;  %v11510_v47 = vld [vmem:[#allocation21 + $0x548] ss:$12 sps:$4 sm:$0xff]  }
 0xf06   : > { %10028 = vmatpush3.bf16.msra.mxu0 %v11425_v36  ;;  %8310 = vmatprep.subr.bf16.mxu1 %v11428_v1  ;;  %v11472_v36 = vld [vmem:[#allocation21 + $0x240] ss:$12 sps:$4 sm:$0xff]   ;;  %v11479_v1 = vld [vmem:[#allocation21 + $0x25c] ss:$12 sps:$4 sm:$0xff]  }
 0xf07   : > { %10029 = vmatprep.subr.bf16.mxu0 %v11429_v37  ;;  %v11477_v37 = vld [vmem:[#allocation21 + $0x258] ss:$12 sps:$4 sm:$0xff]  }
 0xf09   : > { %8311 = vmatpush1.bf16.msra.mxu1 %v11426_v51  ;;  %v11484_v51 = vld [vmem:[#allocation21 + $0x274] ss:$12 sps:$4 sm:$0xff]  }
 0xf0a   : > { %10030 = vmatpush3.bf16.msra.mxu0 %v11430_v35  ;;  %8312 = vmatprep.subr.bf16.mxu1 %v11433_v52  ;;  %v11482_v35 = vld [vmem:[#allocation21 + $0x270] ss:$12 sps:$4 sm:$0xff]   ;;  %v11489_v52 = vld [vmem:[#allocation21 + $0x28c] ss:$12 sps:$4 sm:$0xff]  }
 0xf0b   : > { %10031 = vmatprep.subr.bf16.mxu0 %v11434_v14  ;;  %v11487_v14 = vld [vmem:[#allocation21 + $0x288] ss:$12 sps:$4 sm:$0xff]  }
 0xf0d   : > { %8313 = vmatpush1.bf16.msra.mxu1 %v11431_v53  ;;  %v11494_v53 = vld [vmem:[#allocation21 + $0x2a4] ss:$12 sps:$4 sm:$0xff]  }
 0xf0e   : > { %10032 = vmatpush3.bf16.msra.mxu0 %v11435_v45  ;;  %8314 = vmatprep.subr.bf16.mxu1 %v11438_v54  ;;  %v4315_v45 = vsub.s32 4, %v12839_v24  ;;  %v11492_v54 = vld [vmem:[#allocation21 + $0x2a0] ss:$12 sps:$4 sm:$0xff]  }
 0xf0f   : > { %10033 = vmatprep.subr.bf16.mxu0 %v11439_v49  ;;  %v4323_v49 = vsub.s32 6, %v12839_v24 }
 0xf11   : > { %8315 = vmatpush1.bf16.msra.mxu1 %v11436_v10  ;;  %v4319_v10 = vsub.s32 5, %v12839_v24 }
 0xf12   : > { %10034 = vmatpush3.bf16.msra.mxu0 %v11440_v11  ;;  %8316 = vmatprep.subr.bf16.mxu1 %v11443_v61  ;;  %v4327_v11 = vsub.s32 7, %v12839_v24  ;;  %v11499_v61 = vld [vmem:[#allocation21 + $0x2bc] ss:$12 sps:$4 sm:$0xff]  }
 0xf13   : > { %10035 = vmatprep.subr.bf16.mxu0 %v11444_v55  ;;  %v4316_v55 = vrot.slane %v13179_v34, %v4315_v45  ;;  %v11521_v45 = vld [vmem:[#allocation21 + $0x4b8] ss:$12 sps:$4 sm:$0xff]  }
 0xf15   : > { %8317 = vmatpush1.bf16.msra.mxu1 %v11441_v50  ;;  %v4324_v50 = vrot.slane %v13179_v34, %v4323_v49  ;;  %v11522_v49 = vld [vmem:[#allocation21 + $0x330] ss:$12 sps:$4 sm:$0xff]  }
 0xf16   : > { %10036 = vmatpush3.bf16.msra.mxu0 %v11445_v46  ;;  %8329 = vmatprep.subr.bf16.mxu1 %v11448_v56  ;;  %v4320_v46 = vrot.slane %v13179_v34, %v4319_v10  ;;  %v11497_v56 = vld [vmem:[#allocation21 + $0x2b8] ss:$12 sps:$4 sm:$0xff]  }
 0xf17   : > { %10043 = vmatprep.subr.bf16.mxu0 %v11470_v57  ;;  %v4328_v57 = vrot.slane %v13179_v34, %v4327_v11  ;;  %v11529_v10 = vld [vmem:[#allocation21 + $0x34c] ss:$12 sps:$4 sm:$0xff]   ;;  %v11526_v11 = vld [vmem:[#allocation21 + $0x4d0] ss:$12 sps:$4 sm:$0xff]  }
 0xf18   : > { %8319 = vmatmul.mubr.bf16.vlgmr.msra.gmra.mrb[48].mxu1 %v13191_v22  ;;  %v11460_v22 = vld [vmem:[#allocation21 + $0x1e4] ss:$12 sps:$4 sm:$0xff]  }
 0xf19   : > { %8618 = vmatmul.mubr.bf16.vlgmr.msra.gmra.mrb[68].mxu0 %v13193_v16  ;;  %8330 = vmatpush1.bf16.msra.mxu1 %v11446_v58  ;;  %v11504_v58 = vld [vmem:[#allocation21 + $0x2d4] ss:$12 sps:$4 sm:$0xff]  }
 0xf1a   : > { %8361 = vmatprep.mubr.bf16.mxu1 %v13195_v12  ;;  %8331 = vmatprep.subr.bf16.mxu1 %v11451_v48  ;;  %v11458_v12 = vld [vmem:[#allocation21 + $0x1e0] ss:$12 sps:$4 sm:$0xff]  }
 0xf1b   : > { %10044 = vmatpush3.bf16.msra.mxu0 %v11471_v31 }
 0xf1c   : > { %10045 = vmatprep.subr.bf16.mxu0 %v11475_v59 }
 0xf1d   : > { %8332 = vmatpush1.bf16.msra.mxu1 %v11449_v44 }
 0xf1e   : > { %8333 = vmatprep.subr.bf16.mxu1 %v11454_v2 }
 0xf1f   : > { %10046 = vmatpush3.bf16.msra.mxu0 %v11476_v60 }
 0xf20   : > { %10047 = vmatprep.subr.bf16.mxu0 %v11480_v62 }
 0xf21   : > { %8334 = vmatpush1.bf16.msra.mxu1 %v11452_v3 }
 0xf22   : > { %8335 = vmatprep.subr.bf16.mxu1 %v11457_v6  ;;  %v11502_v6 = vld [vmem:[#allocation21 + $0x2d0] ss:$12 sps:$4 sm:$0xff]  }
 0xf23   : > { %10048 = vmatpush3.bf16.msra.mxu0 %v11481_v7 }
 0xf24   : > { %10049 = vmatprep.subr.bf16.mxu0 %v11485_v20 }
 0xf25   : > { %8336 = vmatpush1.bf16.msra.mxu1 %v11455_v21 }
 0xf26   : > { %8337 = vmatprep.subr.bf16.mxu1 %v11460_v22 }
 0xf27   : > { %10050 = vmatpush3.bf16.msra.mxu0 %v11486_v33  ;;  %v11509_v33 = vld [vmem:[#allocation21 + $0x2ec] ss:$12 sps:$4 sm:$0xff]  }
 0xf28   : > { %10051 = vmatprep.subr.bf16.mxu0 %v11490_v5 }
 0xf29   : > { %8338 = vmatpush1.bf16.msra.mxu1 %v11458_v12 }
 0xf2a   : > { %8339 = vmatprep.subr.bf16.mxu1 %v11463_v19 }
 0xf2b   : > { %10052 = vmatpush3.bf16.msra.mxu0 %v11491_v23 }
 0xf2c   : > { %10053 = vmatprep.subr.bf16.mxu0 %v11495_v25 }
 0xf2d   : > { %8340 = vmatpush1.bf16.msra.mxu1 %v11461_v29 }
 0xf2e   : > { %8341 = vmatprep.subr.bf16.mxu1 %v11466_v30 }
 0xf2f   : > { %10054 = vmatpush3.bf16.msra.mxu0 %v11496_v32 }
 0xf30   : > { %10055 = vmatprep.subr.bf16.mxu0 %v11500_v17 }
 0xf31   : > { %8342 = vmatpush1.bf16.msra.mxu1 %v11464_v43  ;;  %v11507_v43 = vld [vmem:[#allocation21 + $0x2e8] ss:$12 sps:$4 sm:$0xff]  }
 0xf32   : > { %8343 = vmatprep.subr.bf16.mxu1 %v11469_v39 }
 0xf33   : > { %10056 = vmatpush3.bf16.msra.mxu0 %v11501_v40 }
 0xf34   : > { %10057 = vmatprep.subr.bf16.mxu0 %v11505_v8 }
 0xf35   : > { %8344 = vmatpush1.bf16.msra.mxu1 %v11467_v15  ;;  %v11514_v15 = vld [vmem:[#allocation21 + $0x304] ss:$12 sps:$4 sm:$0xff]  }
 0xf36   : > { %8345 = vmatprep.subr.bf16.mxu1 %v11474_v42 }
 0xf37   : > { %10058 = vmatpush3.bf16.msra.mxu0 %v11506_v41 }
 0xf38   : > { %10065 = vmatprep.subr.bf16.mxu0 %v11510_v47  ;;  %v11511_v47 = vld [vmem:[#allocation21 + $0x488] ss:$12 sps:$4 sm:$0xff]  }
 0xf39   : > { %8346 = vmatpush1.bf16.msra.mxu1 %v11472_v36 }
 0xf3a   : > { %8347 = vmatprep.subr.bf16.mxu1 %v11479_v1  ;;  %v11515_v1 = vld [vmem:[#allocation21 + $0x560] ss:$12 sps:$4 sm:$0xff]  }
 0xf3d   : > { %8348 = vmatpush1.bf16.msra.mxu1 %v11477_v37  ;;  %v11512_v37 = vld [vmem:[#allocation21 + $0x300] ss:$12 sps:$4 sm:$0xff]  }
 0xf3e   : > { %8349 = vmatprep.subr.bf16.mxu1 %v11484_v51  ;;  %v11519_v51 = vld [vmem:[#allocation21 + $0x31c] ss:$12 sps:$4 sm:$0xff]  }
 0xf41   : > { %8350 = vmatpush1.bf16.msra.mxu1 %v11482_v35  ;;  %v11516_v35 = vld [vmem:[#allocation21 + $0x4a0] ss:$12 sps:$4 sm:$0xff]  }
 0xf42   : > { %8351 = vmatprep.subr.bf16.mxu1 %v11489_v52  ;;  %v11520_v52 = vld [vmem:[#allocation21 + $0x578] ss:$12 sps:$4 sm:$0xff]  }
 0xf45   : > { %8352 = vmatpush1.bf16.msra.mxu1 %v11487_v14  ;;  %v11517_v14 = vld [vmem:[#allocation21 + $0x318] ss:$12 sps:$4 sm:$0xff]  }
 0xf46   : > { %8353 = vmatprep.subr.bf16.mxu1 %v11494_v53  ;;  %v11524_v53 = vld [vmem:[#allocation21 + $0x334] ss:$12 sps:$4 sm:$0xff]  }
 0xf49   : > { %8354 = vmatpush1.bf16.msra.mxu1 %v11492_v54  ;;  %v11525_v54 = vld [vmem:[#allocation21 + $0x590] ss:$12 sps:$4 sm:$0xff]  }
 0xf4a   : > { %8355 = vmatprep.subr.bf16.mxu1 %v11499_v61  ;;  %v11530_v61 = vld [vmem:[#allocation21 + $0x5a8] ss:$12 sps:$4 sm:$0xff]  }
 0xf4b   : > { %v6046_v48 = vpop.f32.mrb[40].mxu1 }
 0xf4c   : > { %v10259_v31 = vadd.f32 %v6046_v48, %v4316_v55  ;;  %v6132_v59 = vpop.f32.mrb[56].mxu0  ;;  %v6048_v44 = vpop.f32.mrb[41].mxu1  ;;  %v11540_v48 = vld [vmem:[#allocation21 + $0x5d8] ss:$12 sps:$4 sm:$0xff]  }
 0xf4d   : > { %v10263_v2 = vadd.f32 %v6132_v59, %v4324_v50  ;;  %v10260_v60 = vadd.f32 %v6048_v44, %v4320_v46  ;;  %v6134_v62 = vpop.f32.mrb[57].mxu0  ;;  %v6050_v3 = vpop.f32.mrb[42].mxu1  ;;  %8356 = vmatpush1.bf16.msra.mxu1 %v11497_v56  ;;  %v11532_v56 = vld [vmem:[#allocation21 + $0x360] ss:$12 sps:$4 sm:$0xff]   ;;  %v11541_v44 = vld [vmem:[#allocation21 + $0x518] ss:$12 sps:$4 sm:$0xff]  }
 0xf4e   : > { %v10264_v7 = vadd.f32 %v6134_v62, %v4328_v57  ;;  %v10261_v20 = vadd.f32 %v6050_v3, %v4316_v55  ;;  %v6136_v21 = vpop.f32.mrb[58].mxu0  ;;  %v6052_v22 = vpop.f32.mrb[43].mxu1  ;;  %8357 = vmatprep.subr.bf16.mxu1 %v11504_v58  ;;  %v6317_v19 = vmax.f32 %v10259_v31, 0.0  ;;  %v11534_v55 = vld [vmem:[#allocation21 + $0x364] ss:$12 sps:$4 sm:$0xff]  }
 0xf4f   : > { %v10265_v5 = vadd.f32 %v6136_v21, %v4324_v50  ;;  %v10262_v34 = vadd.f32 %v6052_v22, %v4320_v46  ;;  %v6138_v12 = vpop.f32.mrb[59].mxu0  ;;  %v6319_v29 = vmax.f32 %v10263_v2, 0.0  ;;  %v6318_v30 = vmax.f32 %v10260_v60, 0.0  ;;  %v11531_v50 = vld [vmem:[#allocation21 + $0x4e8] ss:$12 sps:$4 sm:$0xff]  }
 0xf50   : > { %v6329_v23 = vmax.f32 %v10261_v20, 0.0  ;;  %v10266_v25 = vadd.f32 %v6138_v12, %v4328_v57  ;;  %v6320_v39 = vmax.f32 %v10264_v7, 0.0  ;;  %v11535_v46 = vld [vmem:[#allocation21 + $0x5c0] ss:$12 sps:$4 sm:$0xff]   ;;  %v11539_v57 = vld [vmem:[#allocation21 + $0x37c] ss:$12 sps:$4 sm:$0xff]  }
 0xf51   : > { %v6331_v32 = vmax.f32 %v10265_v5, 0.0  ;;  %v6330_v17 = vmax.f32 %v10262_v34, 0.0  ;;  %8358 = vmatpush1.bf16.msra.mxu1 %v11502_v6  ;;  %v11536_v58 = vld [vmem:[#allocation21 + $0x500] ss:$12 sps:$4 sm:$0xff]   ;;  %v11537_v31 = vld [vmem:[#allocation21 + $0x378] ss:$12 sps:$4 sm:$0xff]  }
 0xf52   : > { %v13210_v40 = vpack.c.bf16 %v6329_v23, %v6317_v19  ;;  %v6332_v8 = vmax.f32 %v10266_v25, 0.0  ;;  %8359 = vmatprep.subr.bf16.mxu1 %v11509_v33  ;;  %v11544_v59 = vld [vmem:[#allocation21 + $0x394] ss:$12 sps:$4 sm:$0xff]   ;;  %v11545_v2 = vld [vmem:[#allocation21 + $0x5f0] ss:$12 sps:$4 sm:$0xff]  }
 0xf53   : > { %v13212_v42 = vpack.c.bf16 %v6331_v32, %v6319_v29  ;;  %v6342_v41 = vpack.c.bf16 %v6330_v17, %v6318_v30  ;;  %v11542_v60 = vld [vmem:[#allocation21 + $0x390] ss:$12 sps:$4 sm:$0xff]   ;;  %v11549_v62 = vld [vmem:[#allocation21 + $0x3ac] ss:$12 sps:$4 sm:$0xff]   ;;  %v11574_v6 = vld [vmem:[#allocation21 + $0x6c8] ss:$12 sps:$4 sm:$0xff]  }
 0xf54   : > { %v13214_v36 = vpack.c.bf16 %v6332_v8, %v6320_v39  ;;  %v11546_v3 = vld [vmem:[#allocation21 + $0x530] ss:$12 sps:$4 sm:$0xff]   ;;  %v11547_v7 = vld [vmem:[#allocation21 + $0x3a8] ss:$12 sps:$4 sm:$0xff]   ;;  %v11579_v22 = vld [vmem:[#allocation21 + $0x6e0] ss:$12 sps:$4 sm:$0xff]  }
 0xf55   : > { %8360 = vmatpush1.bf16.msra.mxu1 %v11507_v43  ;;  %8658 = vmatprep.mubr.bf16.mxu0 %v6342_v41  ;;  %v11552_v20 = vld [vmem:[#allocation21 + $0x3c4] ss:$12 sps:$4 sm:$0xff]   ;;  %v11575_v21 = vld [vmem:[#allocation21 + $0x608] ss:$12 sps:$4 sm:$0xff]   ;;  %v11550_v33 = vld [vmem:[#allocation21 + $0x3c0] ss:$12 sps:$4 sm:$0xff]  }
 0xf56   : > { %8659 = vmatmul.mubr.bf16.vlgmr.msra.gmra.mrb[72].mxu0 %v13210_v40  ;;  %8372 = vmatprep.subr.bf16.mxu1 %v11514_v15  ;;  %v11555_v5 = vld [vmem:[#allocation21 + $0x3dc] ss:$12 sps:$4 sm:$0xff]   ;;  %v11580_v34 = vld [vmem:[#allocation21 + $0x620] ss:$12 sps:$4 sm:$0xff]   ;;  %v11584_v12 = vld [vmem:[#allocation21 + $0x6f8] ss:$12 sps:$4 sm:$0xff]  }
 0xf57   : > { %10066 = vmatpush3.bf16.msra.mxu0 %v11511_v47  ;;  %8699 = vmatprep.mubr.bf16.mxu0 %v13214_v36  ;;  %v11553_v19 = vld [vmem:[#allocation21 + $0x3d8] ss:$12 sps:$4 sm:$0xff]   ;;  %v11558_v23 = vld [vmem:[#allocation21 + $0x3f4] ss:$12 sps:$4 sm:$0xff]   ;;  %v11589_v29 = vld [vmem:[#allocation21 + $0x710] ss:$12 sps:$4 sm:$0xff]  }
 0xf58   : > { %8362 = vmatmul.mubr.bf16.vlgmr.msra.gmra.mrb[48].mxu1 %v13193_v16  ;;  %10067 = vmatprep.subr.bf16.mxu0 %v11515_v1  ;;  %v11527_v16 = vld [vmem:[#allocation21 + $0x348] ss:$12 sps:$4 sm:$0xff]   ;;  %v11585_v25 = vld [vmem:[#allocation21 + $0x638] ss:$12 sps:$4 sm:$0xff]   ;;  %v11556_v30 = vld [vmem:[#allocation21 + $0x3f0] ss:$12 sps:$4 sm:$0xff]  }
 0xf59   : > { %8373 = vmatpush1.bf16.msra.mxu1 %v11512_v37  ;;  %8404 = vmatprep.mubr.bf16.mxu1 %v6342_v41  ;;  %v11561_v32 = vld [vmem:[#allocation21 + $0x40c] ss:$12 sps:$4 sm:$0xff]   ;;  %v11590_v17 = vld [vmem:[#allocation21 + $0x650] ss:$12 sps:$4 sm:$0xff]   ;;  %v11594_v43 = vld [vmem:[#allocation21 + $0x728] ss:$12 sps:$4 sm:$0xff]  }
 0xf5a   : > { %8374 = vmatprep.subr.bf16.mxu1 %v11519_v51  ;;  %v11559_v39 = vld [vmem:[#allocation21 + $0x408] ss:$12 sps:$4 sm:$0xff]   ;;  %v11564_v8 = vld [vmem:[#allocation21 + $0x424] ss:$12 sps:$4 sm:$0xff]   ;;  %v11599_v41 = vld [vmem:[#allocation21 + $0x740] ss:$12 sps:$4 sm:$0xff]  }
 0xf5b   : > { %10068 = vmatpush3.bf16.msra.mxu0 %v11516_v35  ;;  %v11595_v15 = vld [vmem:[#allocation21 + $0x668] ss:$12 sps:$4 sm:$0xff]   ;;  %v11562_v47 = vld [vmem:[#allocation21 + $0x420] ss:$12 sps:$4 sm:$0xff]   ;;  %v11604_v51 = vld [vmem:[#allocation21 + $0x758] ss:$12 sps:$4 sm:$0xff]  }
 0xf5c   : > { %10069 = vmatprep.subr.bf16.mxu0 %v11520_v52  ;;  %v11567_v1 = vld [vmem:[#allocation21 + $0x43c] ss:$12 sps:$4 sm:$0xff]   ;;  %v11600_v37 = vld [vmem:[#allocation21 + $0x680] ss:$12 sps:$4 sm:$0xff]   ;;  %v11565_v35 = vld [vmem:[#allocation21 + $0x438] ss:$12 sps:$4 sm:$0xff]  }
 0xf5d   : > { %8375 = vmatpush1.bf16.msra.mxu1 %v11517_v14  ;;  %v11570_v52 = vld [vmem:[#allocation21 + $0x454] ss:$12 sps:$4 sm:$0xff]   ;;  %v11605_v14 = vld [vmem:[#allocation21 + $0x698] ss:$12 sps:$4 sm:$0xff]  }
 0xf5e   : > { %8376 = vmatprep.subr.bf16.mxu1 %v11524_v53  ;;  %v11609_v53 = vld [vmem:[#allocation21 + $0x770] ss:$12 sps:$4 sm:$0xff]  }
 0xf5f   : > { %10070 = vmatpush3.bf16.msra.mxu0 %v11521_v45  ;;  %v11568_v45 = vld [vmem:[#allocation21 + $0x450] ss:$12 sps:$4 sm:$0xff]  }
 0xf60   : > { %10071 = vmatprep.subr.bf16.mxu0 %v11525_v54  ;;  %v11573_v54 = vld [vmem:[#allocation21 + $0x46c] ss:$12 sps:$4 sm:$0xff]  }
 0xf61   : > { %8377 = vmatpush1.bf16.msra.mxu1 %v11522_v49  ;;  %v11610_v49 = vld [vmem:[#allocation21 + $0x6b0] ss:$12 sps:$4 sm:$0xff]  }
 0xf62   : > { %8378 = vmatprep.subr.bf16.mxu1 %v11529_v10  ;;  %v11614_v10 = vld [vmem:[#allocation21 + $0x848] ss:$12 sps:$4 sm:$0xff]  }
 0xf63   : > { %10072 = vmatpush3.bf16.msra.mxu0 %v11526_v11  ;;  %v11571_v11 = vld [vmem:[#allocation21 + $0x468] ss:$12 sps:$4 sm:$0xff]  }
 0xf64   : > { %10073 = vmatprep.subr.bf16.mxu0 %v11530_v61  ;;  %v11578_v61 = vld [vmem:[#allocation21 + $0x484] ss:$12 sps:$4 sm:$0xff]  }
 0xf65   : > { %8379 = vmatpush1.bf16.msra.mxu1 %v11527_v16  ;;  %v11576_v16 = vld [vmem:[#allocation21 + $0x480] ss:$12 sps:$4 sm:$0xff]  }
 0xf66   : > { %8380 = vmatprep.subr.bf16.mxu1 %v11534_v55  ;;  %v11583_v55 = vld [vmem:[#allocation21 + $0x49c] ss:$12 sps:$4 sm:$0xff]  }
 0xf67   : > { %10074 = vmatpush3.bf16.msra.mxu0 %v11531_v50  ;;  %v11581_v50 = vld [vmem:[#allocation21 + $0x498] ss:$12 sps:$4 sm:$0xff]  }
 0xf68   : > { %10075 = vmatprep.subr.bf16.mxu0 %v11535_v46  ;;  %v11588_v46 = vld [vmem:[#allocation21 + $0x4b4] ss:$12 sps:$4 sm:$0xff]  }
 0xf69   : > { %8381 = vmatpush1.bf16.msra.mxu1 %v11532_v56  ;;  %v11586_v56 = vld [vmem:[#allocation21 + $0x4b0] ss:$12 sps:$4 sm:$0xff]  }
 0xf6a   : > { %8382 = vmatprep.subr.bf16.mxu1 %v11539_v57  ;;  %v11593_v57 = vld [vmem:[#allocation21 + $0x4cc] ss:$12 sps:$4 sm:$0xff]  }
 0xf6b   : > { %10076 = vmatpush3.bf16.msra.mxu0 %v11536_v58  ;;  %v11591_v58 = vld [vmem:[#allocation21 + $0x4c8] ss:$12 sps:$4 sm:$0xff]  }
 0xf6c   : > { %10077 = vmatprep.subr.bf16.mxu0 %v11540_v48  ;;  %v11598_v48 = vld [vmem:[#allocation21 + $0x4e4] ss:$12 sps:$4 sm:$0xff]  }
 0xf6d   : > { %8383 = vmatpush1.bf16.msra.mxu1 %v11537_v31  ;;  %v11596_v31 = vld [vmem:[#allocation21 + $0x4e0] ss:$12 sps:$4 sm:$0xff]  }
 0xf6e   : > { %8384 = vmatprep.subr.bf16.mxu1 %v11544_v59  ;;  %v4294_v59 = vld [vmem:[#allocation20 + $0x8] sm:$0xf] }
 0xf6f   : > { %10078 = vmatpush3.bf16.msra.mxu0 %v11541_v44  ;;  %v11603_v44 = vld [vmem:[#allocation21 + $0x4fc] ss:$12 sps:$4 sm:$0xff]  }
 0xf70   : > { %10079 = vmatprep.subr.bf16.mxu0 %v11545_v2  ;;  %v4336_v2 = vrot.slane %v4294_v59, %v12842_v26 }
 0xf71   : > { %8385 = vmatpush1.bf16.msra.mxu1 %v11542_v60  ;;  %v11601_v60 = vld [vmem:[#allocation21 + $0x4f8] ss:$12 sps:$4 sm:$0xff]  }
 0xf72   : > { %8386 = vmatprep.subr.bf16.mxu1 %v11549_v62  ;;  %v4344_v62 = vrot.slane %v4294_v59, %v4311_v38 }
 0xf73   : > { %10080 = vmatpush3.bf16.msra.mxu0 %v11546_v3  ;;  %v11608_v3 = vld [vmem:[#allocation21 + $0x514] ss:$12 sps:$4 sm:$0xff]  }
 0xf74   : > { %10087 = vmatprep.subr.bf16.mxu0 %v11574_v6 }
 0xf75   : > { %8387 = vmatpush1.bf16.msra.mxu1 %v11547_v7 }
 0xf76   : > { %8700 = vmatmul.mubr.bf16.vlgmr.msra.gmra.mrb[76].mxu0 %v13212_v42  ;;  %8388 = vmatprep.subr.bf16.mxu1 %v11552_v20 }
 0xf77   : > { %10088 = vmatpush3.bf16.msra.mxu0 %v11575_v21 }
 0xf78   : > { %10089 = vmatprep.subr.bf16.mxu0 %v11579_v22 }
 0xf79   : > { %8389 = vmatpush1.bf16.msra.mxu1 %v11550_v33 }
 0xf7a   : > { %8390 = vmatprep.subr.bf16.mxu1 %v11555_v5 }
 0xf7b   : > { %10090 = vmatpush3.bf16.msra.mxu0 %v11580_v34 }
 0xf7c   : > { %10091 = vmatprep.subr.bf16.mxu0 %v11584_v12  ;;  %v11606_v12 = vld [vmem:[#allocation21 + $0x510] ss:$12 sps:$4 sm:$0xff]  }
 0xf7d   : > { %8391 = vmatpush1.bf16.msra.mxu1 %v11553_v19 }
 0xf7e   : > { %8392 = vmatprep.subr.bf16.mxu1 %v11558_v23 }
 0xf7f   : > { %10092 = vmatpush3.bf16.msra.mxu0 %v11585_v25 }
 0xf80   : > { %10093 = vmatprep.subr.bf16.mxu0 %v11589_v29 }
 0xf81   : > { %8393 = vmatpush1.bf16.msra.mxu1 %v11556_v30  ;;  %v11613_v30 = vld [vmem:[#allocation21 + $0x52c] ss:$12 sps:$4 sm:$0xff]  }
 0xf82   : > { %8394 = vmatprep.subr.bf16.mxu1 %v11561_v32 }
 0xf83   : > { %10094 = vmatpush3.bf16.msra.mxu0 %v11590_v17 }
 0xf84   : > { %10095 = vmatprep.subr.bf16.mxu0 %v11594_v43 }
 0xf85   : > { %8395 = vmatpush1.bf16.msra.mxu1 %v11559_v39 }
 0xf86   : > { %8396 = vmatprep.subr.bf16.mxu1 %v11564_v8 }
 0xf87   : > { %10096 = vmatpush3.bf16.msra.mxu0 %v11595_v15 }
 0xf88   : > { %10097 = vmatprep.subr.bf16.mxu0 %v11599_v41 }
 0xf89   : > { %8397 = vmatpush1.bf16.msra.mxu1 %v11562_v47 }
 0xf8a   : > { %8398 = vmatprep.subr.bf16.mxu1 %v11567_v1  ;;  %v11611_v1 = vld [vmem:[#allocation21 + $0x528] ss:$12 sps:$4 sm:$0xff]  }
 0xf8b   : > { %10098 = vmatpush3.bf16.msra.mxu0 %v11600_v37 }
 0xf8c   : > { %10099 = vmatprep.subr.bf16.mxu0 %v11604_v51 }
 0xf8d   : > { %8399 = vmatpush1.bf16.msra.mxu1 %v11565_v35 }
 0xf8e   : > { %8400 = vmatprep.subr.bf16.mxu1 %v11570_v52  ;;  %v11618_v52 = vld [vmem:[#allocation21 + $0x544] ss:$12 sps:$4 sm:$0xff]  }
 0xf8f   : > { %10100 = vmatpush3.bf16.msra.mxu0 %v11605_v14 }
 0xf90   : > { %10101 = vmatprep.subr.bf16.mxu0 %v11609_v53 }
 0xf91   : > { %8401 = vmatpush1.bf16.msra.mxu1 %v11568_v45  ;;  %v11615_v45 = vld [vmem:[#allocation21 + $0x788] ss:$12 sps:$4 sm:$0xff]  }
 0xf92   : > { %8402 = vmatprep.subr.bf16.mxu1 %v11573_v54 }
 0xf93   : > { %10102 = vmatpush3.bf16.msra.mxu0 %v11610_v49  ;;  %v11619_v49 = vld [vmem:[#allocation21 + $0x860] ss:$12 sps:$4 sm:$0xff]  }
 0xf94   : > { %10109 = vmatprep.subr.bf16.mxu0 %v11614_v10  ;;  %v11616_v10 = vld [vmem:[#allocation21 + $0x540] ss:$12 sps:$4 sm:$0xff]  }
 0xf95   : > { %8403 = vmatpush1.bf16.msra.mxu1 %v11571_v11  ;;  %v11623_v11 = vld [vmem:[#allocation21 + $0x55c] ss:$12 sps:$4 sm:$0xff]  }
 0xf96   : > { %8415 = vmatprep.subr.bf16.mxu1 %v11578_v61  ;;  %v11620_v61 = vld [vmem:[#allocation21 + $0x7a0] ss:$12 sps:$4 sm:$0xff]  }
 0xf98   : > { %8405 = vmatmul.mubr.bf16.vlgmr.msra.gmra.mrb[48].mxu1 %v13210_v40  ;;  %v4332_v40 = vrot.slane %v4294_v59, %v12848_v28 }
 0xf99   : > { %8416 = vmatpush1.bf16.msra.mxu1 %v11576_v16  ;;  %8447 = vmatprep.mubr.bf16.mxu1 %v13214_v36  ;;  %v4340_v36 = vrot.slane %v4294_v59, %v12845_v27  ;;  %v11624_v16 = vld [vmem:[#allocation21 + $0x878] ss:$12 sps:$4 sm:$0xff]   ;;  %v11631_v59 = vld [vmem:[#allocation21 + $0x588] ss:$12 sps:$4 sm:$0xff]  }
 0xf9a   : > { %8417 = vmatprep.subr.bf16.mxu1 %v11583_v55  ;;  %v11621_v55 = vld [vmem:[#allocation21 + $0x558] ss:$12 sps:$4 sm:$0xff]  }
 0xf9d   : > { %8418 = vmatpush1.bf16.msra.mxu1 %v11581_v50  ;;  %v11628_v50 = vld [vmem:[#allocation21 + $0x574] ss:$12 sps:$4 sm:$0xff]  }
 0xf9e   : > { %8419 = vmatprep.subr.bf16.mxu1 %v11588_v46  ;;  %v11625_v46 = vld [vmem:[#allocation21 + $0x7b8] ss:$12 sps:$4 sm:$0xff]  }
 0xfa1   : > { %8420 = vmatpush1.bf16.msra.mxu1 %v11586_v56  ;;  %v11629_v56 = vld [vmem:[#allocation21 + $0x890] ss:$12 sps:$4 sm:$0xff]  }
 0xfa2   : > { %8421 = vmatprep.subr.bf16.mxu1 %v11593_v57  ;;  %v11626_v57 = vld [vmem:[#allocation21 + $0x570] ss:$12 sps:$4 sm:$0xff]  }
 0xfa5   : > { %8422 = vmatpush1.bf16.msra.mxu1 %v11591_v58  ;;  %v11633_v58 = vld [vmem:[#allocation21 + $0x58c] ss:$12 sps:$4 sm:$0xff]  }
 0xfa6   : > { %8423 = vmatprep.subr.bf16.mxu1 %v11598_v48  ;;  %v11630_v48 = vld [vmem:[#allocation21 + $0x7d0] ss:$12 sps:$4 sm:$0xff]  }
 0xfa9   : > { %8424 = vmatpush1.bf16.msra.mxu1 %v11596_v31  ;;  %v11634_v31 = vld [vmem:[#allocation21 + $0x8a8] ss:$12 sps:$4 sm:$0xff]  }
 0xfaa   : > { %8425 = vmatprep.subr.bf16.mxu1 %v11603_v44  ;;  %v11638_v44 = vld [vmem:[#allocation21 + $0x5a4] ss:$12 sps:$4 sm:$0xff]  }
 0xfab   : > { %v6218_v6 = vpop.f32.mrb[44].mxu1 }
 0xfac   : > { %v10267_v7 = vadd.f32 %v6218_v6, %v4332_v40  ;;  %v6304_v20 = vpop.f32.mrb[60].mxu0  ;;  %v6220_v21 = vpop.f32.mrb[45].mxu1  ;;  %v11641_v6 = vld [vmem:[#allocation21 + $0x5b8] ss:$12 sps:$4 sm:$0xff]  }
 0xfad   : > { %v10271_v22 = vadd.f32 %v6304_v20, %v4340_v36  ;;  %v10268_v33 = vadd.f32 %v6220_v21, %v4336_v2  ;;  %v6306_v5 = vpop.f32.mrb[61].mxu0  ;;  %v6222_v34 = vpop.f32.mrb[46].mxu1  ;;  %8426 = vmatpush1.bf16.msra.mxu1 %v11601_v60  ;;  %v11643_v60 = vld [vmem:[#allocation21 + $0x5bc] ss:$12 sps:$4 sm:$0xff]   ;;  %v11645_v20 = vld [vmem:[#allocation21 + $0x818] ss:$12 sps:$4 sm:$0xff]  }
 0xfae   : > { %v10272_v19 = vadd.f32 %v6306_v5, %v4344_v62  ;;  %v10269_v23 = vadd.f32 %v6222_v34, %v4332_v40  ;;  %v6308_v25 = vpop.f32.mrb[62].mxu0  ;;  %v6224_v29 = vpop.f32.mrb[47].mxu1  ;;  %8427 = vmatprep.subr.bf16.mxu1 %v11608_v3  ;;  %v6321_v17 = vmax.f32 %v10267_v7, 0.0  ;;  %v11635_v40 = vld [vmem:[#allocation21 + $0x7e8] ss:$12 sps:$4 sm:$0xff]  }
 0xfaf   : > { %v10273_v24 = vadd.f32 %v6308_v25, %v4340_v36  ;;  %v10270_v38 = vadd.f32 %v6224_v29, %v4336_v2  ;;  %v6310_v32 = vpop.f32.mrb[63].mxu0  ;;  %v6323_v8 = vmax.f32 %v10271_v22, 0.0  ;;  %v6322_v15 = vmax.f32 %v10268_v33, 0.0  ;;  %v11639_v36 = vld [vmem:[#allocation21 + $0x8c0] ss:$12 sps:$4 sm:$0xff]  }
 0xfb0   : > { %v6333_v43 = vmax.f32 %v10269_v23, 0.0  ;;  %v10274_v39 = vadd.f32 %v6310_v32, %v4344_v62  ;;  %v6324_v37 = vmax.f32 %v10272_v19, 0.0  ;;  %v11636_v2 = vld [vmem:[#allocation21 + $0x5a0] ss:$12 sps:$4 sm:$0xff]   ;;  %v11644_v3 = vld [vmem:[#allocation21 + $0x8d8] ss:$12 sps:$4 sm:$0xff]  }
 0xfb1   : > { %v6335_v41 = vmax.f32 %v10273_v24, 0.0  ;;  %v6334_v47 = vmax.f32 %v10270_v38, 0.0  ;;  %8428 = vmatpush1.bf16.msra.mxu1 %v11606_v12  ;;  %v11640_v62 = vld [vmem:[#allocation21 + $0x800] ss:$12 sps:$4 sm:$0xff]   ;;  %v11649_v22 = vld [vmem:[#allocation21 + $0x8f0] ss:$12 sps:$4 sm:$0xff]  }
 0xfb2   : > { %v13227_v51 = vpack.c.bf16 %v6333_v43, %v6321_v17  ;;  %v6336_v35 = vmax.f32 %v10274_v39, 0.0  ;;  %8429 = vmatprep.subr.bf16.mxu1 %v11613_v30  ;;  %v11648_v7 = vld [vmem:[#allocation21 + $0x5d4] ss:$12 sps:$4 sm:$0xff]   ;;  %v11646_v5 = vld [vmem:[#allocation21 + $0x5d0] ss:$12 sps:$4 sm:$0xff]  }
 0xfb3   : > { %v13229_v14 = vpack.c.bf16 %v6335_v41, %v6323_v8  ;;  %v13231_v53 = vpack.c.bf16 %v6334_v47, %v6322_v15  ;;  %v11653_v19 = vld [vmem:[#allocation21 + $0x5ec] ss:$12 sps:$4 sm:$0xff]   ;;  %v11650_v25 = vld [vmem:[#allocation21 + $0x830] ss:$12 sps:$4 sm:$0xff]   ;;  %v11651_v30 = vld [vmem:[#allocation21 + $0x5e8] ss:$12 sps:$4 sm:$0xff]  }
 0xfb4   : > { %v13233_v54 = vpack.c.bf16 %v6336_v35, %v6324_v37  ;;  %v11656_v24 = vld [vmem:[#allocation21 + $0x604] ss:$12 sps:$4 sm:$0xff]   ;;  %v11654_v38 = vld [vmem:[#allocation21 + $0x600] ss:$12 sps:$4 sm:$0xff]   ;;  %v11659_v32 = vld [vmem:[#allocation21 + $0x61c] ss:$12 sps:$4 sm:$0xff]  }
 0xfb5   : > { %8430 = vmatpush1.bf16.msra.mxu1 %v11611_v1  ;;  %8740 = vmatprep.mubr.bf16.mxu0 %v13231_v53  ;;  %v11657_v17 = vld [vmem:[#allocation21 + $0x618] ss:$12 sps:$4 sm:$0xff]   ;;  %v11662_v43 = vld [vmem:[#allocation21 + $0x634] ss:$12 sps:$4 sm:$0xff]   ;;  %v11660_v39 = vld [vmem:[#allocation21 + $0x630] ss:$12 sps:$4 sm:$0xff]  }
 0xfb6   : > { %8741 = vmatmul.mubr.bf16.vlgmr.msra.gmra.mrb[80].mxu0 %v13227_v51  ;;  %8431 = vmatprep.subr.bf16.mxu1 %v11618_v52  ;;  %v11665_v8 = vld [vmem:[#allocation21 + $0x64c] ss:$12 sps:$4 sm:$0xff]   ;;  %v11663_v15 = vld [vmem:[#allocation21 + $0x648] ss:$12 sps:$4 sm:$0xff]   ;;  %v11668_v41 = vld [vmem:[#allocation21 + $0x664] ss:$12 sps:$4 sm:$0xff]  }
 0xfb7   : > { %10110 = vmatpush3.bf16.msra.mxu0 %v11615_v45  ;;  %8781 = vmatprep.mubr.bf16.mxu0 %v13233_v54  ;;  %v11666_v47 = vld [vmem:[#allocation21 + $0x660] ss:$12 sps:$4 sm:$0xff]   ;;  %v11671_v1 = vld [vmem:[#allocation21 + $0x67c] ss:$12 sps:$4 sm:$0xff]  }
 0xfb8   : > { %10111 = vmatprep.subr.bf16.mxu0 %v11619_v49  ;;  %v13241_v37 = vld [vmem:[#allocation23] sm:$0x7]  ;;  %v11672_v49 = vld [vmem:[#allocation21 + $0x690] ss:$12 sps:$4 sm:$0xff]  }
 0xfb9   : > { %8432 = vmatpush1.bf16.msra.mxu1 %v11616_v10  ;;  %v6746_v35 = vrot.slane %v13241_v37, %v12845_v27  ;;  %v11674_v52 = vld [vmem:[#allocation21 + $0x694] ss:$12 sps:$4 sm:$0xff]   ;;  %v11680_v27 = vld [vmem:[#allocation21 + $0x6c4] ss:$12 sps:$4 sm:$0xff]  }
 0xfba   : > { %8433 = vmatprep.subr.bf16.mxu1 %v11623_v11 }
 0xfbb   : > { %10112 = vmatpush3.bf16.msra.mxu0 %v11620_v61 }
 0xfbc   : > { %10113 = vmatprep.subr.bf16.mxu0 %v11624_v16  ;;  %v11677_v16 = vld [vmem:[#allocation21 + $0x6ac] ss:$12 sps:$4 sm:$0xff]  }
 0xfbd   : > { %8434 = vmatpush1.bf16.msra.mxu1 %v11621_v55 }
 0xfbe   : > { %8435 = vmatprep.subr.bf16.mxu1 %v11628_v50 }
 0xfbf   : > { %10114 = vmatpush3.bf16.msra.mxu0 %v11625_v46 }
 0xfc0   : > { %10115 = vmatprep.subr.bf16.mxu0 %v11629_v56 }
 0xfc1   : > { %8436 = vmatpush1.bf16.msra.mxu1 %v11626_v57  ;;  %v11675_v57 = vld [vmem:[#allocation21 + $0x6a8] ss:$12 sps:$4 sm:$0xff]  }
 0xfc2   : > { %8437 = vmatprep.subr.bf16.mxu1 %v11633_v58 }
 0xfc3   : > { %10116 = vmatpush3.bf16.msra.mxu0 %v11630_v48  ;;  %v11678_v48 = vld [vmem:[#allocation21 + $0x6c0] ss:$12 sps:$4 sm:$0xff]  }
 0xfc4   : > { %10117 = vmatprep.subr.bf16.mxu0 %v11634_v31  ;;  %v11683_v31 = vld [vmem:[#allocation21 + $0x6dc] ss:$12 sps:$4 sm:$0xff]  }
 0xfc5   : > { %8438 = vmatpush1.bf16.msra.mxu1 %v11631_v59  ;;  %v11681_v59 = vld [vmem:[#allocation21 + $0x6d8] ss:$12 sps:$4 sm:$0xff]  }
 0xfc6   : > { %8439 = vmatprep.subr.bf16.mxu1 %v11638_v44  ;;  %v11686_v44 = vld [vmem:[#allocation21 + $0x6f4] ss:$12 sps:$4 sm:$0xff]  }
 0xfc7   : > { %10118 = vmatpush3.bf16.msra.mxu0 %v11635_v40  ;;  %v11684_v40 = vld [vmem:[#allocation21 + $0x6f0] ss:$12 sps:$4 sm:$0xff]  }
 0xfc8   : > { %10119 = vmatprep.subr.bf16.mxu0 %v11639_v36  ;;  %v11689_v36 = vld [vmem:[#allocation21 + $0x70c] ss:$12 sps:$4 sm:$0xff]  }
 0xfc9   : > { %8440 = vmatpush1.bf16.msra.mxu1 %v11636_v2  ;;  %v11687_v2 = vld [vmem:[#allocation21 + $0x708] ss:$12 sps:$4 sm:$0xff]  }
 0xfca   : > { %8441 = vmatprep.subr.bf16.mxu1 %v11643_v60  ;;  %v11692_v60 = vld [vmem:[#allocation21 + $0x724] ss:$12 sps:$4 sm:$0xff]  }
 0xfcb   : > { %10120 = vmatpush3.bf16.msra.mxu0 %v11640_v62  ;;  %v11690_v62 = vld [vmem:[#allocation21 + $0x720] ss:$12 sps:$4 sm:$0xff]  }
 0xfcc   : > { %v10015_v21 = vpop.f32.mrb[64].mxu0  ;;  %10121 = vmatprep.subr.bf16.mxu0 %v11644_v3  ;;  %v11695_v3 = vld [vmem:[#allocation21 + $0x73c] ss:$12 sps:$4 sm:$0xff]  }
 0xfcd   : > { %v10016_v33 = vpop.f32.mrb[65].mxu0  ;;  %8442 = vmatpush1.bf16.msra.mxu1 %v11641_v6  ;;  %v11693_v6 = vld [vmem:[#allocation21 + $0x738] ss:$12 sps:$4 sm:$0xff]  }
 0xfce   : > { %v10017_v34 = vadd.f32 %v10016_v33, %v10015_v21  ;;  %v10018_v12 = vpop.f32.mrb[66].mxu0  ;;  %8443 = vmatprep.subr.bf16.mxu1 %v11648_v7  ;;  %v11698_v7 = vld [vmem:[#allocation21 + $0x754] ss:$12 sps:$4 sm:$0xff]   ;;  %v11701_v21 = vld [vmem:[#allocation21 + $0x76c] ss:$12 sps:$4 sm:$0xff]  }
 0xfcf   : > { %v10019_v23 = vpop.f32.mrb[67].mxu0  ;;  %10122 = vmatpush3.bf16.msra.mxu0 %v11645_v20  ;;  %v11696_v20 = vld [vmem:[#allocation21 + $0x750] ss:$12 sps:$4 sm:$0xff]  }
 0xfd0   : > { %v10020_v29 = vadd.f32 %v10019_v23, %v10018_v12  ;;  %10123 = vmatprep.subr.bf16.mxu0 %v11649_v22  ;;  %v8579_v10 = vadd.f32 %v10017_v34, %v6746_v35  ;;  %v11699_v22 = vld [vmem:[#allocation21 + $0x768] ss:$12 sps:$4 sm:$0xff]   ;;  %v11704_v33 = vld [vmem:[#allocation21 + $0x784] ss:$12 sps:$4 sm:$0xff]  }
 0xfd1   : > { %8444 = vmatpush1.bf16.msra.mxu1 %v11646_v5  ;;  %v11702_v5 = vld [vmem:[#allocation21 + $0x780] ss:$12 sps:$4 sm:$0xff]   ;;  %v11707_v34 = vld [vmem:[#allocation21 + $0x79c] ss:$12 sps:$4 sm:$0xff]   ;;  %v11705_v12 = vld [vmem:[#allocation21 + $0x798] ss:$12 sps:$4 sm:$0xff]  }
 0xfd2   : > { %8445 = vmatprep.subr.bf16.mxu1 %v11653_v19  ;;  %v8582_v50 = vadd.f32 %v10020_v29, %v6746_v35  ;;  %v11710_v19 = vld [vmem:[#allocation21 + $0x7b4] ss:$12 sps:$4 sm:$0xff]   ;;  %v11708_v23 = vld [vmem:[#allocation21 + $0x7b0] ss:$12 sps:$4 sm:$0xff]  }
 0xfd3   : > { %10124 = vmatpush3.bf16.msra.mxu0 %v11650_v25  ;;  %v11713_v25 = vld [vmem:[#allocation21 + $0x7cc] ss:$12 sps:$4 sm:$0xff]   ;;  %v11711_v29 = vld [vmem:[#allocation21 + $0x7c8] ss:$12 sps:$4 sm:$0xff]  }
 0xfd4   : > { %v11723_v35 = vld [vmem:[#allocation21 + $0x828] ss:$12 sps:$4 sm:$0xff]  }
 0xfd5   : > { %8446 = vmatpush1.bf16.msra.mxu1 %v11651_v30  ;;  %v11716_v30 = vld [vmem:[#allocation21 + $0x7e4] ss:$12 sps:$4 sm:$0xff]  }
 0xfd6   : > { %8782 = vmatmul.mubr.bf16.vlgmr.msra.gmra.mrb[84].mxu0 %v13229_v14  ;;  %8458 = vmatprep.subr.bf16.mxu1 %v11656_v24  ;;  %v11714_v24 = vld [vmem:[#allocation21 + $0x7e0] ss:$12 sps:$4 sm:$0xff]  }
 0xfd8   : > { %8448 = vmatmul.mubr.bf16.vlgmr.msra.gmra.mrb[48].mxu1 %v13212_v42  ;;  %v11669_v42 = vld [vmem:[#allocation21 + $0x678] ss:$12 sps:$4 sm:$0xff]  }
 0xfd9   : > { %8459 = vmatpush1.bf16.msra.mxu1 %v11654_v38  ;;  %8490 = vmatprep.mubr.bf16.mxu1 %v13231_v53  ;;  %v11719_v38 = vld [vmem:[#allocation21 + $0x7fc] ss:$12 sps:$4 sm:$0xff]  }
 0xfda   : > { %8460 = vmatprep.subr.bf16.mxu1 %v11659_v32  ;;  %v11717_v32 = vld [vmem:[#allocation21 + $0x7f8] ss:$12 sps:$4 sm:$0xff]  }
 0xfdd   : > { %8461 = vmatpush1.bf16.msra.mxu1 %v11657_v17 }
 0xfde   : > { %8462 = vmatprep.subr.bf16.mxu1 %v11662_v43 }
 0xfe1   : > { %8463 = vmatpush1.bf16.msra.mxu1 %v11660_v39 }
 0xfe2   : > { %8464 = vmatprep.subr.bf16.mxu1 %v11665_v8 }
 0xfe5   : > { %8465 = vmatpush1.bf16.msra.mxu1 %v11663_v15 }
 0xfe6   : > { %8466 = vmatprep.subr.bf16.mxu1 %v11668_v41 }
 0xfe9   : > { %8467 = vmatpush1.bf16.msra.mxu1 %v11666_v47  ;;  %v11720_v47 = vld [vmem:[#allocation21 + $0x810] ss:$12 sps:$4 sm:$0xff]  }
 0xfea   : > { %8468 = vmatprep.subr.bf16.mxu1 %v11671_v1  ;;  %v11725_v1 = vld [vmem:[#allocation21 + $0x82c] ss:$12 sps:$4 sm:$0xff]  }
 0xfec   : > { %v10037_v53 = vpop.f32.mrb[68].mxu0 }
 0xfed   : > { %v10038_v45 = vpop.f32.mrb[69].mxu0  ;;  %8469 = vmatpush1.bf16.msra.mxu1 %v11669_v42 }
 0xfee   : > { %v10039_v11 = vadd.f32 %v10038_v45, %v10037_v53  ;;  %v10040_v61 = vpop.f32.mrb[70].mxu0  ;;  %8470 = vmatprep.subr.bf16.mxu1 %v11674_v52  ;;  %v11728_v52 = vld [vmem:[#allocation21 + $0x844] ss:$12 sps:$4 sm:$0xff]   ;;  %v11726_v53 = vld [vmem:[#allocation21 + $0x840] ss:$12 sps:$4 sm:$0xff]  }
 0xfef   : > { %v10041_v55 = vpop.f32.mrb[71].mxu0  ;;  %v11731_v45 = vld [vmem:[#allocation21 + $0x85c] ss:$12 sps:$4 sm:$0xff]  }
 0xff0   : > { %v13245_v46 = vadd.f32 %v10039_v11, %v8579_v10  ;;  %v10042_v56 = vadd.f32 %v10041_v55, %v10040_v61  ;;  %v11734_v10 = vld [vmem:[#allocation21 + $0x874] ss:$12 sps:$4 sm:$0xff]   ;;  %v11732_v11 = vld [vmem:[#allocation21 + $0x870] ss:$12 sps:$4 sm:$0xff]   ;;  %v11737_v61 = vld [vmem:[#allocation21 + $0x88c] ss:$12 sps:$4 sm:$0xff]  }
 0xff1   : > { %8471 = vmatpush1.bf16.msra.mxu1 %v11672_v49  ;;  %v11729_v49 = vld [vmem:[#allocation21 + $0x858] ss:$12 sps:$4 sm:$0xff]  }
 0xff2   : > { %v13247_v58 = vadd.f32 %v10042_v56, %v8582_v50  ;;  %8472 = vmatprep.subr.bf16.mxu1 %v11677_v16  ;;  %v11735_v16 = vld [vmem:[#allocation21 + $0x888] ss:$12 sps:$4 sm:$0xff]   ;;  %v11740_v55 = vld [vmem:[#allocation21 + $0x8a4] ss:$12 sps:$4 sm:$0xff]   ;;  %v11738_v50 = vld [vmem:[#allocation21 + $0x8a0] ss:$12 sps:$4 sm:$0xff]  }
 0xff5   : > { %8473 = vmatpush1.bf16.msra.mxu1 %v11675_v57  ;;  %v11741_v57 = vld [vmem:[#allocation21 + $0x8b8] ss:$12 sps:$4 sm:$0xff]  }
 0xff6   : > { %8474 = vmatprep.subr.bf16.mxu1 %v11680_v27  ;;  %v11746_v27 = vld [vmem:[#allocation21 + $0x8d4] ss:$12 sps:$4 sm:$0xff]  }
 0xff9   : > { %8475 = vmatpush1.bf16.msra.mxu1 %v11678_v48 }
 0xffa   : > { %8476 = vmatprep.subr.bf16.mxu1 %v11683_v31 }
 0xffd   : > { %8477 = vmatpush1.bf16.msra.mxu1 %v11681_v59 }
 0xffe   : > { %8478 = vmatprep.subr.bf16.mxu1 %v11686_v44 }
0x1001   : > { %8479 = vmatpush1.bf16.msra.mxu1 %v11684_v40 }
0x1002   : > { %8480 = vmatprep.subr.bf16.mxu1 %v11689_v36  ;;  %v11744_v36 = vld [vmem:[#allocation21 + $0x8d0] ss:$12 sps:$4 sm:$0xff]  }
0x1005   : > { %8481 = vmatpush1.bf16.msra.mxu1 %v11687_v2  ;;  %v11749_v2 = vld [vmem:[#allocation21 + $0x8ec] ss:$12 sps:$4 sm:$0xff]  }
0x1006   : > { %8482 = vmatprep.subr.bf16.mxu1 %v11692_v60 }
0x1009   : > { %8483 = vmatpush1.bf16.msra.mxu1 %v11690_v62  ;;  %v11747_v62 = vld [vmem:[#allocation21 + $0x8e8] ss:$12 sps:$4 sm:$0xff]  }
0x100a   : > { %8484 = vmatprep.subr.bf16.mxu1 %v11695_v3 }
0x100d   : > { %8485 = vmatpush1.bf16.msra.mxu1 %v11693_v6 }
0x100e   : > { %8486 = vmatprep.subr.bf16.mxu1 %v11698_v7 }
0x1011   : > { %8487 = vmatpush1.bf16.msra.mxu1 %v11696_v20 }
0x1012   : > { %8488 = vmatprep.subr.bf16.mxu1 %v11701_v21 }
0x1015   : > { %8489 = vmatpush1.bf16.msra.mxu1 %v11699_v22 }
0x1016   : > { %8501 = vmatprep.subr.bf16.mxu1 %v11704_v33 }
0x1018   : > { %8491 = vmatmul.mubr.bf16.vlgmr.msra.gmra.mrb[48].mxu1 %v13227_v51 }
0x1019   : > { %8502 = vmatpush1.bf16.msra.mxu1 %v11702_v5  ;;  %8533 = vmatprep.mubr.bf16.mxu1 %v13233_v54  ;;  %v11722_v54 = vld [vmem:[#allocation21 + $0x814] ss:$12 sps:$4 sm:$0xff]  }
0x101a   : > { %8503 = vmatprep.subr.bf16.mxu1 %v11707_v34 }
0x101d   : > { %8504 = vmatpush1.bf16.msra.mxu1 %v11705_v12 }
0x101e   : > { %8505 = vmatprep.subr.bf16.mxu1 %v11710_v19 }
0x1021   : > { %8506 = vmatpush1.bf16.msra.mxu1 %v11708_v23 }
0x1022   : > { %8507 = vmatprep.subr.bf16.mxu1 %v11713_v25 }
0x1025   : > { %8508 = vmatpush1.bf16.msra.mxu1 %v11711_v29 }
0x1026   : > { %8509 = vmatprep.subr.bf16.mxu1 %v11716_v30 }
0x1029   : > { %8510 = vmatpush1.bf16.msra.mxu1 %v11714_v24  ;;  %v10059_v51 = vpop.f32.mrb[72].mxu0 }
0x102a   : > { %v10060_v17 = vpop.f32.mrb[73].mxu0  ;;  %8511 = vmatprep.subr.bf16.mxu1 %v11719_v38 }
0x102b   : > { %v10061_v43 = vadd.f32 %v10060_v17, %v10059_v51  ;;  %v10062_v39 = vpop.f32.mrb[74].mxu0  ;;  %v6738_v51 = vrot.slane %v13241_v37, %v12848_v28 }
0x102c   : > { %v10063_v8 = vpop.f32.mrb[75].mxu0 }
0x102d   : > { %v8661_v15 = vadd.f32 %v10061_v43, %v13245_v46  ;;  %v10064_v41 = vadd.f32 %v10063_v8, %v10062_v39  ;;  %8512 = vmatpush1.bf16.msra.mxu1 %v11717_v32  ;;  %v11743_v46 = vld [vmem:[#allocation21 + $0x8bc] ss:$12 sps:$4 sm:$0xff]   ;;  %v6742_v32 = vrot.slane %v13241_v37, %v12842_v26 }
0x102e   : > { %8513 = vmatprep.subr.bf16.mxu1 %v11722_v54 }
0x102f   : > { %v8664_v42 = vadd.f32 %v10064_v41, %v13247_v58 }
0x1031   : > { %8514 = vmatpush1.bf16.msra.mxu1 %v11720_v47 }
0x1032   : > { %8515 = vmatprep.subr.bf16.mxu1 %v11725_v1 }
0x1035   : > { %8516 = vmatpush1.bf16.msra.mxu1 %v11723_v35 }
0x1036   : > { %8517 = vmatprep.subr.bf16.mxu1 %v11728_v52 }
0x1039   : > { %8518 = vmatpush1.bf16.msra.mxu1 %v11726_v53 }
0x103a   : > { %8519 = vmatprep.subr.bf16.mxu1 %v11731_v45 }
0x103d   : > { %8520 = vmatpush1.bf16.msra.mxu1 %v11729_v49 }
0x103e   : > { %8521 = vmatprep.subr.bf16.mxu1 %v11734_v10 }
0x1041   : > { %8522 = vmatpush1.bf16.msra.mxu1 %v11732_v11 }
0x1042   : > { %8523 = vmatprep.subr.bf16.mxu1 %v11737_v61 }
0x1045   : > { %8524 = vmatpush1.bf16.msra.mxu1 %v11735_v16 }
0x1046   : > { %8525 = vmatprep.subr.bf16.mxu1 %v11740_v55 }
0x1049   : > { %v10081_v56 = vpop.f32.mrb[76].mxu0  ;;  %8526 = vmatpush1.bf16.msra.mxu1 %v11738_v50 }
0x104a   : > { %v10082_v58 = vpop.f32.mrb[77].mxu0  ;;  %8527 = vmatprep.subr.bf16.mxu1 %v11743_v46 }
0x104b   : > { %v10083_v48 = vadd.f32 %v10082_v58, %v10081_v56  ;;  %v10084_v31 = vpop.f32.mrb[78].mxu0 }
0x104c   : > { %v10085_v59 = vpop.f32.mrb[79].mxu0 }
0x104d   : > { %v8702_v44 = vadd.f32 %v10083_v48, %v8661_v15  ;;  %v10086_v40 = vadd.f32 %v10085_v59, %v10084_v31  ;;  %8528 = vmatpush1.bf16.msra.mxu1 %v11741_v57 }
0x104e   : > { %8529 = vmatprep.subr.bf16.mxu1 %v11746_v27 }
0x104f   : > { %v8705_v60 = vadd.f32 %v10086_v40, %v8664_v42 }
0x1051   : > { %8530 = vmatpush1.bf16.msra.mxu1 %v11744_v36 }
0x1052   : > { %8531 = vmatprep.subr.bf16.mxu1 %v11749_v2 }
0x1055   : > { %8532 = vmatpush1.bf16.msra.mxu1 %v11747_v62 }
0x1058   : > { %8534 = vmatmul.mubr.bf16.vlgmr.msra.gmra.mrb[48].mxu1 %v13229_v14 }
0x1089   : > { %v10103_v3 = vpop.f32.mrb[80].mxu0 }
0x108a   : > { %v10104_v6 = vpop.f32.mrb[81].mxu0 }
0x108b   : > { %v10105_v7 = vadd.f32 %v10104_v6, %v10103_v3  ;;  %v10106_v20 = vpop.f32.mrb[82].mxu0 }
0x108c   : > { %v10107_v21 = vpop.f32.mrb[83].mxu0 }
0x108d   : > { %v8743_v22 = vadd.f32 %v10105_v7, %v8702_v44  ;;  %v10108_v33 = vadd.f32 %v10107_v21, %v10106_v20 }
0x108f   : > { %v8746_v5 = vadd.f32 %v10108_v33, %v8705_v60 }
0x10a9   : > { %v10125_v34 = vpop.f32.mrb[84].mxu0 }
0x10aa   : > { %v10126_v12 = vpop.f32.mrb[85].mxu0 }
0x10ab   : > { %v10127_v19 = vadd.f32 %v10126_v12, %v10125_v34  ;;  %v10128_v23 = vpop.f32.mrb[86].mxu0 }
0x10ac   : > { %v10129_v25 = vpop.f32.mrb[87].mxu0 }
0x10ad   : > { %v8784_v29 = vadd.f32 %v10127_v19, %v8743_v22  ;;  %v10130_v30 = vadd.f32 %v10129_v25, %v10128_v23 }
0x10af   : > { %v8792_v24 = vadd.f32 %v8784_v29, %v13073_v63  ;;  %v8787_v14 = vadd.f32 %v10130_v30, %v8746_v5 }
0x10b1   : > { %8798 = vst [vmem:[%s618_s20 + $0x10] sm:$0xff] %v8792_v24  ;;  %v8795_v38 = vadd.f32 %v8787_v14, %v13081_v18 }
0x10b3   : > { %8801 = vst [vmem:[%s618_s20 + $0x28] sm:$0xff] %v8795_v38 }
0x112b   : > { %v8535_v17 = vpop.f32.mrb[48].mxu1 }
0x112c   : > { %v10275_v54 = vadd.f32 %v8535_v17, %v6738_v51  ;;  %v8537_v43 = vpop.f32.mrb[49].mxu1 }
0x112d   : > { %v10276_v39 = vadd.f32 %v8537_v43, %v6742_v32  ;;  %v8539_v8 = vpop.f32.mrb[50].mxu1 }
0x112e   : > { %v8790_v63 = vadd.f32 %v10275_v54, %v13064_v4  ;;  %v10277_v15 = vadd.f32 %v8539_v8, %v6738_v51  ;;  %v8541_v18 = vpop.f32.mrb[51].mxu1 }
0x112f   : > { %v8791_v28 = vadd.f32 %v10276_v39, %v13067_v9  ;;  %v10278_v26 = vadd.f32 %v8541_v18, %v6742_v32 }
0x1130   : > { %8796 = vst [vmem:[%s618_s20] sm:$0xff] %v8790_v63  ;;  %v8793_v37 = vadd.f32 %v10277_v15, %v13070_v0 }
0x1131   : > { %8797 = vst [vmem:[%s618_s20 + $0x8] sm:$0xff] %v8791_v28  ;;  %v8794_v41 = vadd.f32 %v10278_v26, %v13076_v13 }
0x1132   : > { %8799 = vst [vmem:[%s618_s20 + $0x18] sm:$0xff] %v8793_v37 }
0x1133   : > { %8800 = vst [vmem:[%s618_s20 + $0x20] sm:$0xff] %v8794_v41 }
0x1134   : > { %12191 = shalt.err (!%p12188_p4)
}
0x1135   : > { %s12192_s25 = scalar_lea.hbm %s13271_s22, 768  ;;  %s12196_s15 = scalar_lea.hbm %s13383_s17, 1536 }
0x1136   : > { %p12193_p5 = scmp.ne.s32.totalorder %s13271_s22, %s12192_s25  ;;  %p12197_p3 = scmp.lt.u32.totalorder %s13271_s22, %s13383_s17 }
0x1137   : > { %p12198_p2 = scmp.lt.u32.totalorder %s12196_s15, %s12192_s25  ;;  %p12200_p0 = scmp.lt.u32.totalorder %s12192_s25, %s13271_s22 }
0x1138   : > { %p12194_p13 = pnand %p12193_p5, %p13384_p6 }
0x1139   : > { %p12199_p8 = por %p12198_p2, %p12197_p3 }
0x113a   : > { %p12195_p1 = pneg %p12194_p13 }
0x113b   : > { %p12201_p10 = por %p12200_p0, %p12199_p8 }
0x113d   : > { %p12202_p11 = pnand %p12201_p10, %p12195_p1 }
0x113f   : > { %12205 = shalt.err (!%p12202_p11)
}
0x1140   : > { %s12302_s2 = smov 384   ;;  %s12303_s21 = smov 24  }
0x1141   : > { %10393 = dma.vmem_to_hbm [thread:$0]  (%p13384_p6), %s13263_s29, 768, %s13271_s22, %s13275_s13, %s12302_s2, %s12302_s2, %s12303_s21  }
0x1142 PF: > { %s13385_s19 = sld [smem:[#allocation34_spill]]  ;;  %p13386_p12 = scmp.ne.s32.totalorder %s13363_s30, 0 }
0x1143   : > { %p13387_p7 = scmp.ge.s32.totalorder %s12272_s28, 2 }
0x1145   : > { %p10437_p9 = pnand %p13387_p7, %p13386_p12 }
0x1148   : > { %s8831_s16 = sand.u32 1, %s13385_s19  }
0x1149   : > { %s8832_s25 = scalar_lea.sflag [#allocation5], %s8831_s16 }
0x114a   : > { %12255 = dma.done.wait (!%p10437_p9), %s8832_s25, 768  }
0x114b   : > { %12257 = vsyncadd (!%p10437_p9), %s8832_s25, 4294966528  ;;  %p32_p4 = scmp.ge.s32.totalorder %s12682_s14, 4   ;;  %s13388_s25 = smov %s12264_s26 }
0x114c   : > { %s13389_s26 = smov %s12268_s27  ;;  %s13390_s27 = smov %s12693_s18 }
0x114d   : > { %s13391_s28 = smov %s12682_s14  ;;  %34 = sbr.rel (!%p32_p4) target bundleno = 17 (0x11), region = 166 }
0x1154   :  { %8837 = vsyncpa [#allocation4], 1 }
0x1155   :  { %8839 = vsyncpa [#allocation4 + $0x1], 1 }
0x1156   :  { %8840 = vsyncpa [#allocation7], 1 }
0x1157   :  { %8842 = vsyncpa [#allocation7 + $0x1], 1 }
0x1158   :  { %8843 = vsyncpa [#allocation10], 1 }
0x1159   :  { %8844 = vsyncpa [#allocation13], 1 }
0x115a   :  { %8845 = vsyncpa [#allocation16], 1 }
0x115b   :  { %8846 = vsyncpa [#allocation19], 1 }
0x115c   :  { %8847 = vsyncpa [#allocation22], 1 }
0x115d   :  { %8848 = vsyncpa [#allocation5], 1 }
0x115e   :  { %8850 = vsyncpa [#allocation5 + $0x1], 1 }

</bundles_post_ra>
